<compile_context>
chip_gen: v7x
topology: tpu7x:2x2x1
jax: 0.10.0
libtpu: 0.0.40
codegen_flags: <defaults>
</compile_context>

<pallas_src>
import functools

import jax
import jax.numpy as jnp
from jax import lax
from jax.experimental import pallas as pl
from jax.experimental.pallas import tpu as pltpu


def _make_kernel(H, W, C, Cr, K, res_scale, softmax_scale):
    L = H * W
    P = K // 2
    f32 = jnp.float32
    HI = lax.Precision.HIGHEST

    # Static lane shifts, tap order (kh, kw)-major.
    #   extraction: dst[l] = src[(l + dh*W + dw) mod L],  dh = kh-P, dw = kw-P
    #   fold:       dst[l] = y_tap[(l - dh*W - dw) mod L]
    ext_shift = [(-((kh - P) * W + (kw - P))) % L
                 for kh in range(K) for kw in range(K)]
    fold_shift = [((kh - P) * W + (kw - P)) % L
                  for kh in range(K) for kw in range(K)]
    # fold tap (kh,kw) uses the boundary mask of tap (K-1-kh, K-1-kw)
    mirror_tap = [(K - 1 - kh) * K + (K - 1 - kw)
                  for kh in range(K) for kw in range(K)]

    def roll_lanes(v, shift):
        return v if shift == 0 else pltpu.roll(v, shift, axis=1)

    def kernel(x_ref, wd_ref, ws_ref, wm1_ref, mc_ref, mcr_ref, alpha_ref, o_ref):
        x = x_ref[0]                             # (C, L)   lane-dense pixels
        mc = mc_ref[...]                         # (K*K*C,  L) boundary masks
        mcr = mcr_ref[...]                       # (K*K*Cr, L)
        ones_row = jnp.ones((1, L), f32)         # bias row (biases folded in weights)

        def prelu(v, a):
            return jnp.where(v >= 0, v, a * v)

        def patch_stack(img, mask):
            # rows [(kh*K+kw)*nch + c, l] = img_zeropad[c, r+kh-P, q+kw-P]
            # XLU rolls + one masked multiply; never leaves vregs.
            parts = [roll_lanes(img, ext_shift[t]) for t in range(K * K)]
            return jnp.concatenate(parts, axis=0) * mask

        # ---------- down_sample: 3x3 conv as one im2col matmul (bias folded) ------
        xs = jnp.concatenate([patch_stack(x, mc), ones_row], axis=0)   # (K*K*C+1, L)
        s_img = prelu(jnp.dot(wd_ref[...], xs, preferred_element_type=f32,
                              precision=HI), alpha_ref[0])             # (C, L)

        # ---------- 1x1 convs (queries from x; assembly+match_2 fused on s_img) ---
        x_aug = jnp.concatenate([x, ones_row], axis=0)                 # (C+1, L)
        match = prelu(jnp.dot(wm1_ref[...], x_aug, preferred_element_type=f32,
                              precision=HI), alpha_ref[2])             # (Cr, L)
        s_aug = jnp.concatenate([s_img, ones_row], axis=0)             # (C+1, L)
        er = jnp.dot(ws_ref[...], s_aug, preferred_element_type=f32,
                     precision=HI)                                     # (C+Cr, L)
        embed = prelu(er[:C], alpha_ref[1])                            # (C, L)  values
        refi = prelu(er[C:], alpha_ref[3])                             # (Cr, L) keys

        # ---------- patch stacks (in-register values, features on sublanes) -------
        qs = patch_stack(match, mcr)                                   # (K*K*Cr, L)
        ks = patch_stack(refi, mcr)                                    # (K*K*Cr, L)
        vs = patch_stack(embed, mc)                                    # (K*K*C,  L)

        # ---------- per-key-patch L2 normalization (escape_NaN = 1e-4) ------------
        ksum = jnp.sum(ks * ks, axis=0, keepdims=True)                 # (1, L)
        kn = ks * lax.rsqrt(jnp.maximum(ksum, 1e-8))                   # == /max(||k||,1e-4)

        # ---------- scores: contract feature dim of both operands (no transpose) --
        s_t = lax.dot_general(kn, qs, (((0,), (0,)), ((), ())),
                              preferred_element_type=f32,
                              precision=HI)                            # (Lk, Lq)

        # ---------- softmax over keys (axis 0) ----------
        z = s_t * softmax_scale
        z = z - jnp.max(z, axis=0, keepdims=True)
        e = jnp.exp(z)
        a_t = e * pl.reciprocal(jnp.sum(e, axis=0, keepdims=True),
                                approx=True)                           # (Lk, Lq)

        # ---------- value aggregation: bf16 MXU operands, f32 accumulation --------
        y_t = jnp.dot(vs.astype(jnp.bfloat16), a_t.astype(jnp.bfloat16),
                      preferred_element_type=f32)                      # (K*K*C, Lq)

        # ---------- fold == conv_transpose2d(stride=1, padding=K//2) --------------
        attn = jnp.zeros((C, L), f32)
        for t in range(K * K):
            blk = roll_lanes(y_t[t * C:(t + 1) * C], fold_shift[t])
            attn = attn + blk * mc[mirror_tap[t] * C:(mirror_tap[t] + 1) * C]

        # ---------- residual composition ----------
        #   CrossScaleAttentionA:  y   = attn + x * res_scale
        #   MultiscaleAttentionA:  out = x + y * res_scale
        o_ref[0] = x + res_scale * (attn + res_scale * x)

    return kernel


@functools.partial(jax.jit, static_argnames=("res_scale", "softmax_scale"))
def multiscale_attention_pallas(x, wd, bd, a_d, wa, ba, a_a, wm1, bm1, a_1,
                                wm2, bm2, a_2, res_scale=1.0, softmax_scale=10.0):
    """x: (N,C,H,W) f32.  Conv weights in PyTorch OIHW layout; biases (Cout,)."""
    N, C, H, W = x.shape
    K = wd.shape[2]
    Cr = wm1.shape[0]
    P = K // 2
    L = H * W
    F_V = K * K * C
    F_QK = K * K * Cr
    f32 = jnp.float32

    # glue: NCHW -> (N, C, H*W) lane-dense slab (free reshape, no transpose)
    x3 = x.reshape(N, C, L).astype(f32)

    # 3x3 conv weight -> (Cout, K*K*Cin) (taps (kh,kw)-major) with bias as last col.
    wd2d = jnp.transpose(wd, (0, 2, 3, 1)).reshape(C, F_V).astype(f32)
    wd_aug = jnp.concatenate([wd2d, bd.reshape(C, 1).astype(f32)], axis=1)
    # fused [conv_assembly; conv_match_2] 1x1 weight with biases folded in.
    ws = jnp.concatenate([wa[:, :, 0, 0], wm2[:, :, 0, 0]], axis=0).astype(f32)
    bs = jnp.concatenate([ba, bm2]).reshape(C + Cr, 1).astype(f32)
    ws_aug = jnp.concatenate([ws, bs], axis=1)                         # (C+Cr, C+1)
    wm1_aug = jnp.concatenate([wm1[:, :, 0, 0].astype(f32),
                               bm1.reshape(Cr, 1).astype(f32)], axis=1)  # (Cr, C+1)
    alphas = jnp.stack([a_d, a_a, a_1, a_2]).astype(f32)

    # per-tap boundary masks, expanded to channel-minor stacks (constant under jit)
    lane = jnp.arange(L, dtype=jnp.int32)
    row, col = lane // W, lane % W
    taps = []
    for kh in range(K):
        for kw in range(K):
            dh, dw = kh - P, kw - P
            ok = ((row + dh >= 0) & (row + dh < H) &
                  (col + dw >= 0) & (col + dw < W))
            taps.append(ok.astype(f32))
    mask_taps = jnp.stack(taps)                       # (K*K, L)
    mask_c = jnp.repeat(mask_taps, C, axis=0)         # (K*K*C,  L)
    mask_cr = jnp.repeat(mask_taps, Cr, axis=0)       # (K*K*Cr, L)

    kernel = _make_kernel(H, W, C, Cr, K, float(res_scale), float(softmax_scale))

    out3 = pl.pallas_call(
        kernel,
        out_shape=jax.ShapeDtypeStruct((N, C, L), f32),
        grid_spec=pltpu.PrefetchScalarGridSpec(
            num_scalar_prefetch=0,
            grid=(N,),
            in_specs=[
                pl.BlockSpec((1, C, L), lambda n: (n, 0, 0)),       # x
                pl.BlockSpec((C, F_V + 1), lambda n: (0, 0)),       # down 3x3 w|b
                pl.BlockSpec((C + Cr, C + 1), lambda n: (0, 0)),    # fused 1x1 w|b
                pl.BlockSpec((Cr, C + 1), lambda n: (0, 0)),        # match_1 1x1 w|b
                pl.BlockSpec((F_V, L), lambda n: (0, 0)),           # masks (C chans)
                pl.BlockSpec((F_QK, L), lambda n: (0, 0)),          # masks (Cr chans)
                pl.BlockSpec(memory_space=pltpu.MemorySpace.SMEM),  # PReLU alphas
            ],
            out_specs=pl.BlockSpec((1, C, L), lambda n: (n, 0, 0)),
        ),
        compiler_params=pltpu.CompilerParams(
            dimension_semantics=("parallel",),
            vmem_limit_bytes=32 * 1024 * 1024),
    )(x3, wd_aug, ws_aug, wm1_aug, mask_c, mask_cr, alphas)

    # glue: (N, C, H*W) -> NCHW
    return out3.reshape(N, C, H, W)


def multiscale_attention_reference(x, wd, bd, a_d, wa, ba, a_a, wm1, bm1, a_1,
                                   wm2, bm2, a_2, res_scale=1.0, softmax_scale=10.0):
    """Pure-JAX reference mirroring the PyTorch forward (independent structure)."""
    N, C, H, W = x.shape
    K = wd.shape[2]
    P = K // 2
    hp = jax.lax.Precision.HIGHEST

    def prelu(v, a):
        return jnp.where(v >= 0, v, a * v)

    s = jax.lax.conv_general_dilated(
        x, wd, window_strides=(1, 1), padding=((P, P), (P, P)),
        dimension_numbers=("NCHW", "OIHW", "NCHW"), precision=hp)
    s = prelu(s + bd.reshape(1, C, 1, 1), a_d)

    def conv1x1(v, w, b):
        return (jnp.einsum("nchw,oc->nohw", v, w[:, :, 0, 0], precision=hp)
                + b.reshape(1, -1, 1, 1))

    embed = prelu(conv1x1(s, wa, ba), a_a)
    match = prelu(conv1x1(x, wm1, bm1), a_1)
    refk = prelu(conv1x1(s, wm2, bm2), a_2)

    def patches(img):
        # (Cc, H, W) -> (H*W, Cc*K*K), row l=(i,j), column order (c, kh, kw)
        p = jnp.pad(img, ((0, 0), (P, P), (P, P)))
        ii = jnp.arange(H)[:, None, None, None] + jnp.arange(K)[None, None, :, None]
        jj = jnp.arange(W)[None, :, None, None] + jnp.arange(K)[None, None, None, :]
        pt = p[:, ii, jj]                                   # (Cc, H, W, K, K)
        return pt.transpose(1, 2, 0, 3, 4).reshape(H * W, -1)

    outs = []
    for b in range(N):
        Kp = patches(refk[b])
        Qp = patches(match[b])
        Vp = patches(embed[b])
        norms = jnp.sqrt(jnp.sum(Kp * Kp, axis=1, keepdims=True))
        Kn = Kp / jnp.maximum(norms, 1e-4)
        S = jnp.dot(Qp, Kn.T, precision=hp)                 # (Lq, Lk)
        A = jax.nn.softmax(S * softmax_scale, axis=1)
        Y = jnp.dot(A, Vp, precision=hp).reshape(H, W, C, K, K)
        acc = jnp.zeros((C, H + 2 * P, W + 2 * P), jnp.float32)
        for kh in range(K):
            for kw in range(K):
                acc = acc.at[:, kh:kh + H, kw:kw + W].add(
                    jnp.transpose(Y[:, :, :, kh, kw], (2, 0, 1)))
        outs.append(acc[:, P:P + H, P:P + W])
    attn = jnp.stack(outs, axis=0)
    y_cs = attn + x * res_scale
    return x + y_cs * res_scale


if __name__ == "__main__":
    # MultiscaleAttentionA(in_channel=4, res_scale=1, kernel_size=3, padding=1)
    N, C, H, W = 2, 4, 16, 16
    K = 3
    reduction = 2                      # CrossScaleAttentionA default
    Cr = C // reduction
    res_scale = 1.0
    softmax_scale = 10.0

    key = jax.random.PRNGKey(0)
    ks = jax.random.split(key, 9)
    x = jax.random.normal(ks[0], (N, C, H, W), dtype=jnp.float32)
    wd = jax.random.normal(ks[1], (C, C, K, K), dtype=jnp.float32) * 0.1
    bd = jax.random.normal(ks[2], (C,), dtype=jnp.float32) * 0.1
    wa = jax.random.normal(ks[3], (C, C, 1, 1), dtype=jnp.float32) * 0.1
    ba = jax.random.normal(ks[4], (C,), dtype=jnp.float32) * 0.1
    wm1 = jax.random.normal(ks[5], (Cr, C, 1, 1), dtype=jnp.float32) * 0.1
    bm1 = jax.random.normal(ks[6], (Cr,), dtype=jnp.float32) * 0.1
    wm2 = jax.random.normal(ks[7], (Cr, C, 1, 1), dtype=jnp.float32) * 0.1
    bm2 = jax.random.normal(ks[8], (Cr,), dtype=jnp.float32) * 0.1
    # nn.PReLU(): one shared slope per BasicBlock (default init 0.25; varied here)
    a_d, a_a, a_1, a_2 = (jnp.float32(0.25), jnp.float32(0.2),
                          jnp.float32(0.15), jnp.float32(0.3))

    out = multiscale_attention_pallas(
        x, wd, bd, a_d, wa, ba, a_a, wm1, bm1, a_1, wm2, bm2, a_2,
        res_scale=res_scale, softmax_scale=softmax_scale)
    out = jax.block_until_ready(out)

    ref = multiscale_attention_reference(
        x, wd, bd, a_d, wa, ba, a_a, wm1, bm1, a_1, wm2, bm2, a_2,
        res_scale=res_scale, softmax_scale=softmax_scale)

    assert out.shape == (N, C, H, W)
    # Tolerance accounts for the intentional precision relaxations from the perf
    # review: bf16 operands on the value-aggregation matmul and the approx EUP
    # reciprocal in the softmax (score/key path is kept at f32-HIGHEST).
    assert jnp.allclose(out, ref, atol=1e-2, rtol=1e-2), "mismatch vs reference"
    print("KERNEL_OK")
</pallas_src>

<mosaic_0001>
module attributes {stable_mosaic.version = 11 : i64} {
  func.func @kernel(%arg0: i32, %arg1: memref<1x4x256xf32, #tpu.memory_space<vmem>>, %arg2: memref<4x37xf32, #tpu.memory_space<vmem>>, %arg3: memref<6x5xf32, #tpu.memory_space<vmem>>, %arg4: memref<2x5xf32, #tpu.memory_space<vmem>>, %arg5: memref<36x256xf32, #tpu.memory_space<vmem>>, %arg6: memref<18x256xf32, #tpu.memory_space<vmem>>, %arg7: memref<4xf32, #tpu.memory_space<smem>>, %arg8: memref<1x4x256xf32, #tpu.memory_space<vmem>>) attributes {dimension_semantics = [#tpu.dimension_semantics<parallel>], iteration_bounds = array<i64: 2>, scalar_prefetch = 0 : i64, scratch_operands = 0 : i64, tpu.core_type = #tpu.core_type<tc>, window_params = [{transform_indices = @transform_0, window_bounds = array<i64: 1, 4, 256>}, {pipeline_mode = #tpu.pipeline_mode<synchronous>, transform_indices = @transform_1, window_bounds = array<i64: 4, 37>}, {pipeline_mode = #tpu.pipeline_mode<synchronous>, transform_indices = @transform_2, window_bounds = array<i64: 6, 5>}, {pipeline_mode = #tpu.pipeline_mode<synchronous>, transform_indices = @transform_3, window_bounds = array<i64: 2, 5>}, {pipeline_mode = #tpu.pipeline_mode<synchronous>, transform_indices = @transform_4, window_bounds = array<i64: 36, 256>}, {pipeline_mode = #tpu.pipeline_mode<synchronous>, transform_indices = @transform_5, window_bounds = array<i64: 18, 256>}, {transform_indices = @transform_6, window_bounds = array<i64: 4>}, {transform_indices = @transform_7, window_bounds = array<i64: 1, 4, 256>}]} {
    %c0 = arith.constant 0 : index
    %c0_0 = arith.constant 0 : index
    %c0_1 = arith.constant 0 : index
    %0 = vector.load %arg1[%c0, %c0_0, %c0_1] : memref<1x4x256xf32, #tpu.memory_space<vmem>>, vector<1x4x256xf32>
    %1 = vector.shape_cast %0 : vector<1x4x256xf32> to vector<4x256xf32>
    %c0_2 = arith.constant 0 : index
    %c0_3 = arith.constant 0 : index
    %2 = vector.load %arg5[%c0_2, %c0_3] : memref<36x256xf32, #tpu.memory_space<vmem>>, vector<36x256xf32>
    %c0_4 = arith.constant 0 : index
    %c0_5 = arith.constant 0 : index
    %3 = vector.load %arg6[%c0_4, %c0_5] : memref<18x256xf32, #tpu.memory_space<vmem>>, vector<18x256xf32>
    %cst = arith.constant 1.000000e+00 : f32
    %4 = vector.broadcast %cst : f32 to vector<1x256xf32>
    %c17_i32 = arith.constant 17 : i32
    %5 = tpu.dynamic_rotate %1 by %c17_i32 dim 1 : vector<4x256xf32>, i32 -> vector<4x256xf32>
    %c16_i32 = arith.constant 16 : i32
    %6 = tpu.dynamic_rotate %1 by %c16_i32 dim 1 : vector<4x256xf32>, i32 -> vector<4x256xf32>
    %c15_i32 = arith.constant 15 : i32
    %7 = tpu.dynamic_rotate %1 by %c15_i32 dim 1 : vector<4x256xf32>, i32 -> vector<4x256xf32>
    %c1_i32 = arith.constant 1 : i32
    %8 = tpu.dynamic_rotate %1 by %c1_i32 dim 1 : vector<4x256xf32>, i32 -> vector<4x256xf32>
    %c255_i32 = arith.constant 255 : i32
    %9 = tpu.dynamic_rotate %1 by %c255_i32 dim 1 : vector<4x256xf32>, i32 -> vector<4x256xf32>
    %c241_i32 = arith.constant 241 : i32
    %10 = tpu.dynamic_rotate %1 by %c241_i32 dim 1 : vector<4x256xf32>, i32 -> vector<4x256xf32>
    %c240_i32 = arith.constant 240 : i32
    %11 = tpu.dynamic_rotate %1 by %c240_i32 dim 1 : vector<4x256xf32>, i32 -> vector<4x256xf32>
    %c239_i32 = arith.constant 239 : i32
    %12 = tpu.dynamic_rotate %1 by %c239_i32 dim 1 : vector<4x256xf32>, i32 -> vector<4x256xf32>
    %13 = tpu.concatenate %5, %6, %7, %8, %1, %9, %10, %11, %12 in 0 : vector<4x256xf32>, vector<4x256xf32>, vector<4x256xf32>, vector<4x256xf32>, vector<4x256xf32>, vector<4x256xf32>, vector<4x256xf32>, vector<4x256xf32>, vector<4x256xf32> -> vector<36x256xf32>
    %14 = arith.mulf %13, %2 : vector<36x256xf32>
    %15 = tpu.concatenate %14, %4 in 0 : vector<36x256xf32>, vector<1x256xf32> -> vector<37x256xf32>
    %c0_6 = arith.constant 0 : index
    %c0_7 = arith.constant 0 : index
    %16 = vector.load %arg2[%c0_6, %c0_7] : memref<4x37xf32, #tpu.memory_space<vmem>>, vector<4x37xf32>
    %cst_8 = arith.constant dense<0.000000e+00> : vector<4x256xf32>
    %17 = tpu.matmul %16, %15, %cst_8 {dimension_numbers = #tpu.dot_dimension_numbers<[1], [0], [0], [1], [0, 0, 1, 1], [], []>, precision = #tpu.contract_precision<fp32>} : vector<4x37xf32>, vector<37x256xf32>, vector<4x256xf32> -> vector<4x256xf32>
    %c0_9 = arith.constant 0 : index
    %18 = memref.load %arg7[%c0_9] : memref<4xf32, #tpu.memory_space<smem>>
    %cst_10 = arith.constant 0.000000e+00 : f32
    %19 = vector.broadcast %cst_10 : f32 to vector<4x256xf32>
    %20 = arith.cmpf oge, %17, %19 : vector<4x256xf32>
    %21 = vector.broadcast %18 : f32 to vector<4x256xf32>
    %22 = arith.mulf %21, %17 : vector<4x256xf32>
    %23 = arith.select %20, %17, %22 : vector<4x256xi1>, vector<4x256xf32>
    %24 = tpu.concatenate %1, %4 in 0 : vector<4x256xf32>, vector<1x256xf32> -> vector<5x256xf32>
    %c0_11 = arith.constant 0 : index
    %c0_12 = arith.constant 0 : index
    %25 = vector.load %arg4[%c0_11, %c0_12] : memref<2x5xf32, #tpu.memory_space<vmem>>, vector<2x5xf32>
    %cst_13 = arith.constant dense<0.000000e+00> : vector<2x256xf32>
    %26 = tpu.matmul %25, %24, %cst_13 {dimension_numbers = #tpu.dot_dimension_numbers<[1], [0], [0], [1], [0, 0, 1, 1], [], []>, precision = #tpu.contract_precision<fp32>} : vector<2x5xf32>, vector<5x256xf32>, vector<2x256xf32> -> vector<2x256xf32>
    %c2 = arith.constant 2 : index
    %27 = memref.load %arg7[%c2] : memref<4xf32, #tpu.memory_space<smem>>
    %cst_14 = arith.constant 0.000000e+00 : f32
    %28 = vector.broadcast %cst_14 : f32 to vector<2x256xf32>
    %29 = arith.cmpf oge, %26, %28 : vector<2x256xf32>
    %30 = vector.broadcast %27 : f32 to vector<2x256xf32>
    %31 = arith.mulf %30, %26 : vector<2x256xf32>
    %32 = arith.select %29, %26, %31 : vector<2x256xi1>, vector<2x256xf32>
    %33 = tpu.concatenate %23, %4 in 0 : vector<4x256xf32>, vector<1x256xf32> -> vector<5x256xf32>
    %c0_15 = arith.constant 0 : index
    %c0_16 = arith.constant 0 : index
    %34 = vector.load %arg3[%c0_15, %c0_16] : memref<6x5xf32, #tpu.memory_space<vmem>>, vector<6x5xf32>
    %cst_17 = arith.constant dense<0.000000e+00> : vector<6x256xf32>
    %35 = tpu.matmul %34, %33, %cst_17 {dimension_numbers = #tpu.dot_dimension_numbers<[1], [0], [0], [1], [0, 0, 1, 1], [], []>, precision = #tpu.contract_precision<fp32>} : vector<6x5xf32>, vector<5x256xf32>, vector<6x256xf32> -> vector<6x256xf32>
    %36 = vector.extract_strided_slice %35 {offsets = [0, 0], sizes = [4, 256], strides = [1, 1]} : vector<6x256xf32> to vector<4x256xf32>
    %c1 = arith.constant 1 : index
    %37 = memref.load %arg7[%c1] : memref<4xf32, #tpu.memory_space<smem>>
    %cst_18 = arith.constant 0.000000e+00 : f32
    %38 = vector.broadcast %cst_18 : f32 to vector<4x256xf32>
    %39 = arith.cmpf oge, %36, %38 : vector<4x256xf32>
    %40 = vector.broadcast %37 : f32 to vector<4x256xf32>
    %41 = arith.mulf %40, %36 : vector<4x256xf32>
    %42 = arith.select %39, %36, %41 : vector<4x256xi1>, vector<4x256xf32>
    %43 = vector.extract_strided_slice %35 {offsets = [4, 0], sizes = [2, 256], strides = [1, 1]} : vector<6x256xf32> to vector<2x256xf32>
    %c3 = arith.constant 3 : index
    %44 = memref.load %arg7[%c3] : memref<4xf32, #tpu.memory_space<smem>>
    %cst_19 = arith.constant 0.000000e+00 : f32
    %45 = vector.broadcast %cst_19 : f32 to vector<2x256xf32>
    %46 = arith.cmpf oge, %43, %45 : vector<2x256xf32>
    %47 = vector.broadcast %44 : f32 to vector<2x256xf32>
    %48 = arith.mulf %47, %43 : vector<2x256xf32>
    %49 = arith.select %46, %43, %48 : vector<2x256xi1>, vector<2x256xf32>
    %c17_i32_20 = arith.constant 17 : i32
    %50 = tpu.dynamic_rotate %32 by %c17_i32_20 dim 1 : vector<2x256xf32>, i32 -> vector<2x256xf32>
    %c16_i32_21 = arith.constant 16 : i32
    %51 = tpu.dynamic_rotate %32 by %c16_i32_21 dim 1 : vector<2x256xf32>, i32 -> vector<2x256xf32>
    %c15_i32_22 = arith.constant 15 : i32
    %52 = tpu.dynamic_rotate %32 by %c15_i32_22 dim 1 : vector<2x256xf32>, i32 -> vector<2x256xf32>
    %c1_i32_23 = arith.constant 1 : i32
    %53 = tpu.dynamic_rotate %32 by %c1_i32_23 dim 1 : vector<2x256xf32>, i32 -> vector<2x256xf32>
    %c255_i32_24 = arith.constant 255 : i32
    %54 = tpu.dynamic_rotate %32 by %c255_i32_24 dim 1 : vector<2x256xf32>, i32 -> vector<2x256xf32>
    %c241_i32_25 = arith.constant 241 : i32
    %55 = tpu.dynamic_rotate %32 by %c241_i32_25 dim 1 : vector<2x256xf32>, i32 -> vector<2x256xf32>
    %c240_i32_26 = arith.constant 240 : i32
    %56 = tpu.dynamic_rotate %32 by %c240_i32_26 dim 1 : vector<2x256xf32>, i32 -> vector<2x256xf32>
    %c239_i32_27 = arith.constant 239 : i32
    %57 = tpu.dynamic_rotate %32 by %c239_i32_27 dim 1 : vector<2x256xf32>, i32 -> vector<2x256xf32>
    %58 = tpu.concatenate %50, %51, %52, %53, %32, %54, %55, %56, %57 in 0 : vector<2x256xf32>, vector<2x256xf32>, vector<2x256xf32>, vector<2x256xf32>, vector<2x256xf32>, vector<2x256xf32>, vector<2x256xf32>, vector<2x256xf32>, vector<2x256xf32> -> vector<18x256xf32>
    %59 = arith.mulf %58, %3 : vector<18x256xf32>
    %c17_i32_28 = arith.constant 17 : i32
    %60 = tpu.dynamic_rotate %49 by %c17_i32_28 dim 1 : vector<2x256xf32>, i32 -> vector<2x256xf32>
    %c16_i32_29 = arith.constant 16 : i32
    %61 = tpu.dynamic_rotate %49 by %c16_i32_29 dim 1 : vector<2x256xf32>, i32 -> vector<2x256xf32>
    %c15_i32_30 = arith.constant 15 : i32
    %62 = tpu.dynamic_rotate %49 by %c15_i32_30 dim 1 : vector<2x256xf32>, i32 -> vector<2x256xf32>
    %c1_i32_31 = arith.constant 1 : i32
    %63 = tpu.dynamic_rotate %49 by %c1_i32_31 dim 1 : vector<2x256xf32>, i32 -> vector<2x256xf32>
    %c255_i32_32 = arith.constant 255 : i32
    %64 = tpu.dynamic_rotate %49 by %c255_i32_32 dim 1 : vector<2x256xf32>, i32 -> vector<2x256xf32>
    %c241_i32_33 = arith.constant 241 : i32
    %65 = tpu.dynamic_rotate %49 by %c241_i32_33 dim 1 : vector<2x256xf32>, i32 -> vector<2x256xf32>
    %c240_i32_34 = arith.constant 240 : i32
    %66 = tpu.dynamic_rotate %49 by %c240_i32_34 dim 1 : vector<2x256xf32>, i32 -> vector<2x256xf32>
    %c239_i32_35 = arith.constant 239 : i32
    %67 = tpu.dynamic_rotate %49 by %c239_i32_35 dim 1 : vector<2x256xf32>, i32 -> vector<2x256xf32>
    %68 = tpu.concatenate %60, %61, %62, %63, %49, %64, %65, %66, %67 in 0 : vector<2x256xf32>, vector<2x256xf32>, vector<2x256xf32>, vector<2x256xf32>, vector<2x256xf32>, vector<2x256xf32>, vector<2x256xf32>, vector<2x256xf32>, vector<2x256xf32> -> vector<18x256xf32>
    %69 = arith.mulf %68, %3 : vector<18x256xf32>
    %c17_i32_36 = arith.constant 17 : i32
    %70 = tpu.dynamic_rotate %42 by %c17_i32_36 dim 1 : vector<4x256xf32>, i32 -> vector<4x256xf32>
    %c16_i32_37 = arith.constant 16 : i32
    %71 = tpu.dynamic_rotate %42 by %c16_i32_37 dim 1 : vector<4x256xf32>, i32 -> vector<4x256xf32>
    %c15_i32_38 = arith.constant 15 : i32
    %72 = tpu.dynamic_rotate %42 by %c15_i32_38 dim 1 : vector<4x256xf32>, i32 -> vector<4x256xf32>
    %c1_i32_39 = arith.constant 1 : i32
    %73 = tpu.dynamic_rotate %42 by %c1_i32_39 dim 1 : vector<4x256xf32>, i32 -> vector<4x256xf32>
    %c255_i32_40 = arith.constant 255 : i32
    %74 = tpu.dynamic_rotate %42 by %c255_i32_40 dim 1 : vector<4x256xf32>, i32 -> vector<4x256xf32>
    %c241_i32_41 = arith.constant 241 : i32
    %75 = tpu.dynamic_rotate %42 by %c241_i32_41 dim 1 : vector<4x256xf32>, i32 -> vector<4x256xf32>
    %c240_i32_42 = arith.constant 240 : i32
    %76 = tpu.dynamic_rotate %42 by %c240_i32_42 dim 1 : vector<4x256xf32>, i32 -> vector<4x256xf32>
    %c239_i32_43 = arith.constant 239 : i32
    %77 = tpu.dynamic_rotate %42 by %c239_i32_43 dim 1 : vector<4x256xf32>, i32 -> vector<4x256xf32>
    %78 = tpu.concatenate %70, %71, %72, %73, %42, %74, %75, %76, %77 in 0 : vector<4x256xf32>, vector<4x256xf32>, vector<4x256xf32>, vector<4x256xf32>, vector<4x256xf32>, vector<4x256xf32>, vector<4x256xf32>, vector<4x256xf32>, vector<4x256xf32> -> vector<36x256xf32>
    %79 = arith.mulf %78, %2 : vector<36x256xf32>
    %80 = arith.mulf %69, %69 : vector<18x256xf32>
    %cst_44 = arith.constant dense<0.000000e+00> : vector<256xf32>
    %81 = vector.multi_reduction <add>, %80, %cst_44 [0] : vector<18x256xf32> to vector<256xf32>
    %82 = vector.shape_cast %81 : vector<256xf32> to vector<1x256xf32>
    %cst_45 = arith.constant 9.99999993E-9 : f32
    %83 = vector.broadcast %cst_45 : f32 to vector<1x256xf32>
    %84 = arith.maximumf %82, %83 : vector<1x256xf32>
    %85 = math.rsqrt %84 : vector<1x256xf32>
    %86 = vector.broadcast %85 : vector<1x256xf32> to vector<18x256xf32>
    %87 = arith.mulf %69, %86 : vector<18x256xf32>
    %cst_46 = arith.constant dense<0.000000e+00> : vector<256x256xf32>
    %88 = tpu.matmul %87, %59, %cst_46 {dimension_numbers = #tpu.dot_dimension_numbers<[0], [0], [1], [1], [0, 1, 1, 1], [], []>, precision = #tpu.contract_precision<fp32>} : vector<18x256xf32>, vector<18x256xf32>, vector<256x256xf32> -> vector<256x256xf32>
    %cst_47 = arith.constant 1.000000e+01 : f32
    %89 = vector.broadcast %cst_47 : f32 to vector<256x256xf32>
    %90 = arith.mulf %88, %89 : vector<256x256xf32>
    %cst_48 = arith.constant dense<0xFF800000> : vector<256xf32>
    %91 = vector.multi_reduction <maximumf>, %90, %cst_48 [0] : vector<256x256xf32> to vector<256xf32>
    %92 = vector.shape_cast %91 : vector<256xf32> to vector<1x256xf32>
    %93 = vector.broadcast %92 : vector<1x256xf32> to vector<256x256xf32>
    %94 = arith.subf %90, %93 : vector<256x256xf32>
    %95 = math.exp %94 : vector<256x256xf32>
    %cst_49 = arith.constant dense<0.000000e+00> : vector<256xf32>
    %96 = vector.multi_reduction <add>, %95, %cst_49 [0] : vector<256x256xf32> to vector<256xf32>
    %97 = vector.shape_cast %96 : vector<256xf32> to vector<1x256xf32>
    %98 = tpu.reciprocal %97 {approx = true} : vector<1x256xf32> -> vector<1x256xf32>
    %99 = vector.broadcast %98 : vector<1x256xf32> to vector<256x256xf32>
    %100 = arith.mulf %95, %99 : vector<256x256xf32>
    %101 = arith.truncf %79 : vector<36x256xf32> to vector<36x256xbf16>
    %102 = arith.truncf %100 : vector<256x256xf32> to vector<256x256xbf16>
    %cst_50 = arith.constant dense<0.000000e+00> : vector<36x256xf32>
    %103 = tpu.matmul %101, %102, %cst_50 {dimension_numbers = #tpu.dot_dimension_numbers<[1], [0], [0], [1], [0, 0, 1, 1], [], []>} : vector<36x256xbf16>, vector<256x256xbf16>, vector<36x256xf32> -> vector<36x256xf32>
    %cst_51 = arith.constant 0.000000e+00 : f32
    %104 = vector.broadcast %cst_51 : f32 to vector<4x256xf32>
    %105 = vector.extract_strided_slice %103 {offsets = [0, 0], sizes = [4, 256], strides = [1, 1]} : vector<36x256xf32> to vector<4x256xf32>
    %c239_i32_52 = arith.constant 239 : i32
    %106 = tpu.dynamic_rotate %105 by %c239_i32_52 dim 1 : vector<4x256xf32>, i32 -> vector<4x256xf32>
    %107 = vector.extract_strided_slice %2 {offsets = [32, 0], sizes = [4, 256], strides = [1, 1]} : vector<36x256xf32> to vector<4x256xf32>
    %108 = arith.mulf %106, %107 : vector<4x256xf32>
    %109 = arith.addf %104, %108 : vector<4x256xf32>
    %110 = vector.extract_strided_slice %103 {offsets = [4, 0], sizes = [4, 256], strides = [1, 1]} : vector<36x256xf32> to vector<4x256xf32>
    %c240_i32_53 = arith.constant 240 : i32
    %111 = tpu.dynamic_rotate %110 by %c240_i32_53 dim 1 : vector<4x256xf32>, i32 -> vector<4x256xf32>
    %112 = vector.extract_strided_slice %2 {offsets = [28, 0], sizes = [4, 256], strides = [1, 1]} : vector<36x256xf32> to vector<4x256xf32>
    %113 = arith.mulf %111, %112 : vector<4x256xf32>
    %114 = arith.addf %109, %113 : vector<4x256xf32>
    %115 = vector.extract_strided_slice %103 {offsets = [8, 0], sizes = [4, 256], strides = [1, 1]} : vector<36x256xf32> to vector<4x256xf32>
    %c241_i32_54 = arith.constant 241 : i32
    %116 = tpu.dynamic_rotate %115 by %c241_i32_54 dim 1 : vector<4x256xf32>, i32 -> vector<4x256xf32>
    %117 = vector.extract_strided_slice %2 {offsets = [24, 0], sizes = [4, 256], strides = [1, 1]} : vector<36x256xf32> to vector<4x256xf32>
    %118 = arith.mulf %116, %117 : vector<4x256xf32>
    %119 = arith.addf %114, %118 : vector<4x256xf32>
    %120 = vector.extract_strided_slice %103 {offsets = [12, 0], sizes = [4, 256], strides = [1, 1]} : vector<36x256xf32> to vector<4x256xf32>
    %c255_i32_55 = arith.constant 255 : i32
    %121 = tpu.dynamic_rotate %120 by %c255_i32_55 dim 1 : vector<4x256xf32>, i32 -> vector<4x256xf32>
    %122 = vector.extract_strided_slice %2 {offsets = [20, 0], sizes = [4, 256], strides = [1, 1]} : vector<36x256xf32> to vector<4x256xf32>
    %123 = arith.mulf %121, %122 : vector<4x256xf32>
    %124 = arith.addf %119, %123 : vector<4x256xf32>
    %125 = vector.extract_strided_slice %103 {offsets = [16, 0], sizes = [4, 256], strides = [1, 1]} : vector<36x256xf32> to vector<4x256xf32>
    %126 = vector.extract_strided_slice %2 {offsets = [16, 0], sizes = [4, 256], strides = [1, 1]} : vector<36x256xf32> to vector<4x256xf32>
    %127 = arith.mulf %125, %126 : vector<4x256xf32>
    %128 = arith.addf %124, %127 : vector<4x256xf32>
    %129 = vector.extract_strided_slice %103 {offsets = [20, 0], sizes = [4, 256], strides = [1, 1]} : vector<36x256xf32> to vector<4x256xf32>
    %c1_i32_56 = arith.constant 1 : i32
    %130 = tpu.dynamic_rotate %129 by %c1_i32_56 dim 1 : vector<4x256xf32>, i32 -> vector<4x256xf32>
    %131 = vector.extract_strided_slice %2 {offsets = [12, 0], sizes = [4, 256], strides = [1, 1]} : vector<36x256xf32> to vector<4x256xf32>
    %132 = arith.mulf %130, %131 : vector<4x256xf32>
    %133 = arith.addf %128, %132 : vector<4x256xf32>
    %134 = vector.extract_strided_slice %103 {offsets = [24, 0], sizes = [4, 256], strides = [1, 1]} : vector<36x256xf32> to vector<4x256xf32>
    %c15_i32_57 = arith.constant 15 : i32
    %135 = tpu.dynamic_rotate %134 by %c15_i32_57 dim 1 : vector<4x256xf32>, i32 -> vector<4x256xf32>
    %136 = vector.extract_strided_slice %2 {offsets = [8, 0], sizes = [4, 256], strides = [1, 1]} : vector<36x256xf32> to vector<4x256xf32>
    %137 = arith.mulf %135, %136 : vector<4x256xf32>
    %138 = arith.addf %133, %137 : vector<4x256xf32>
    %139 = vector.extract_strided_slice %103 {offsets = [28, 0], sizes = [4, 256], strides = [1, 1]} : vector<36x256xf32> to vector<4x256xf32>
    %c16_i32_58 = arith.constant 16 : i32
    %140 = tpu.dynamic_rotate %139 by %c16_i32_58 dim 1 : vector<4x256xf32>, i32 -> vector<4x256xf32>
    %141 = vector.extract_strided_slice %2 {offsets = [4, 0], sizes = [4, 256], strides = [1, 1]} : vector<36x256xf32> to vector<4x256xf32>
    %142 = arith.mulf %140, %141 : vector<4x256xf32>
    %143 = arith.addf %138, %142 : vector<4x256xf32>
    %144 = vector.extract_strided_slice %103 {offsets = [32, 0], sizes = [4, 256], strides = [1, 1]} : vector<36x256xf32> to vector<4x256xf32>
    %c17_i32_59 = arith.constant 17 : i32
    %145 = tpu.dynamic_rotate %144 by %c17_i32_59 dim 1 : vector<4x256xf32>, i32 -> vector<4x256xf32>
    %146 = vector.extract_strided_slice %2 {offsets = [0, 0], sizes = [4, 256], strides = [1, 1]} : vector<36x256xf32> to vector<4x256xf32>
    %147 = arith.mulf %145, %146 : vector<4x256xf32>
    %148 = arith.addf %143, %147 : vector<4x256xf32>
    %cst_60 = arith.constant 1.000000e+00 : f32
    %149 = vector.broadcast %cst_60 : f32 to vector<4x256xf32>
    %150 = arith.mulf %149, %1 : vector<4x256xf32>
    %151 = arith.addf %148, %150 : vector<4x256xf32>
    %cst_61 = arith.constant 1.000000e+00 : f32
    %152 = vector.broadcast %cst_61 : f32 to vector<4x256xf32>
    %153 = arith.mulf %152, %151 : vector<4x256xf32>
    %154 = arith.addf %1, %153 : vector<4x256xf32>
    %c0_62 = arith.constant 0 : index
    %c0_63 = arith.constant 0 : index
    %c0_64 = arith.constant 0 : index
    %155 = vector.load %arg8[%c0_62, %c0_63, %c0_64] : memref<1x4x256xf32, #tpu.memory_space<vmem>>, vector<1x4x256xf32>
    %156 = vector.shape_cast %155 : vector<1x4x256xf32> to vector<4x256xf32>
    %157 = vector.shape_cast %154 : vector<4x256xf32> to vector<1x4x256xf32>
    tpu.vector_store %arg8[%c0_62, %c0_63, %c0_64], %157 {strides = array<i32>} : memref<1x4x256xf32, #tpu.memory_space<vmem>>, vector<1x4x256xf32>,
    return
  }
  func.func @transform_0(%arg0: i32) -> (i32, i32, i32) {
    %c0_i32 = arith.constant 0 : i32
    %c0_i32_0 = arith.constant 0 : i32
    %c0_i32_1 = arith.constant 0 : i32
    return %arg0, %c0_i32, %c0_i32_0 : i32, i32, i32
  }
  func.func @transform_1(%arg0: i32) -> (i32, i32) {
    %c0_i32 = arith.constant 0 : i32
    %c0_i32_0 = arith.constant 0 : i32
    %c0_i32_1 = arith.constant 0 : i32
    return %c0_i32, %c0_i32_0 : i32, i32
  }
  func.func @transform_2(%arg0: i32) -> (i32, i32) {
    %c0_i32 = arith.constant 0 : i32
    %c0_i32_0 = arith.constant 0 : i32
    %c0_i32_1 = arith.constant 0 : i32
    return %c0_i32, %c0_i32_0 : i32, i32
  }
  func.func @transform_3(%arg0: i32) -> (i32, i32) {
    %c0_i32 = arith.constant 0 : i32
    %c0_i32_0 = arith.constant 0 : i32
    %c0_i32_1 = arith.constant 0 : i32
    return %c0_i32, %c0_i32_0 : i32, i32
  }
  func.func @transform_4(%arg0: i32) -> (i32, i32) {
    %c0_i32 = arith.constant 0 : i32
    %c0_i32_0 = arith.constant 0 : i32
    %c0_i32_1 = arith.constant 0 : i32
    return %c0_i32, %c0_i32_0 : i32, i32
  }
  func.func @transform_5(%arg0: i32) -> (i32, i32) {
    %c0_i32 = arith.constant 0 : i32
    %c0_i32_0 = arith.constant 0 : i32
    %c0_i32_1 = arith.constant 0 : i32
    return %c0_i32, %c0_i32_0 : i32, i32
  }
  func.func @transform_6(%arg0: i32) -> i32 {
    %c0_i32 = arith.constant 0 : i32
    %c0_i32_0 = arith.constant 0 : i32
    return %c0_i32 : i32
  }
  func.func @transform_7(%arg0: i32) -> (i32, i32, i32) {
    %c0_i32 = arith.constant 0 : i32
    %c0_i32_0 = arith.constant 0 : i32
    %c0_i32_1 = arith.constant 0 : i32
    return %arg0, %c0_i32, %c0_i32_0 : i32, i32, i32
  }
}

</mosaic_0001>

<bundles_post_ra>
// kernel: multiscale_attention_pallas.1
= control target key start
LH: loop header
LB: loop body
LE: loop exit
PB: predicated region body
PF: predicated region fallthrough
CT: control target
= control target key end

     0   :  { %12 = vsyncpa [#allocation3], 0  ;;  %s5998_s24 = smov 0   ;;  %s8669_s0 = inlined_call_operand.vmem [shape: f32[2,4,256], index: 0, kind: input, shape index: {}]   ;;  %s8670_s1 = inlined_call_operand.vmem [shape: f32[4,37], index: 1, kind: input, shape index: {}]   ;;  %s8671_s2 = inlined_call_operand.vmem [shape: f32[6,5], index: 2, kind: input, shape index: {}]   ;;  %s8672_s3 = inlined_call_operand.vmem [shape: f32[2,5], index: 3, kind: input, shape index: {}]   ;;  %s8673_s4 = inlined_call_operand.vmem [shape: f32[36,256], index: 4, kind: input, shape index: {}]   ;;  %s8674_s5 = inlined_call_operand.vmem [shape: f32[18,256], index: 5, kind: input, shape index: {}]   ;;  %s8675_s6 = inlined_call_operand.vmem [shape: f32[4], index: 6, kind: input, shape index: {}]   ;;  %s8676_s7 = inlined_call_operand.vmem [shape: f32[2,4,256], index: 7, kind: output, shape index: {}]  }
   0x1 LB: > { %s5297_s25 = sadd.s32 4294967295, %s5946_s24   ;;  %p5299_p0 = scmp.ge.s32.totalorder %s5946_s24, 1  ;;  %s5946_s24 = sphi %s5998_s24, %s18_s24  }
   0x2   : > { %p201_p1 = scmp.lt.s32.totalorder %s5946_s24, 3  ;;  %s229_s28 = sshll.u32 %s8675_s6, 4  ;;  %s230_s28 = int_to_ptr.vmem [resolvable:$true] %s229_s28 }
   0x3   : > { %p5749_p3 = scmp.eq.s32.totalorder %s5297_s25, 0  ;;  %s5921_s30 = scalar_lea.vmem %s230_s28, 16 }
   0x4   : > { %p6009_p2 = pnand %p5299_p0, %p201_p1  ;;  %p5922_p6 = scmp.ne.s32.totalorder %s230_s28, %s5921_s30 }
   0x5   : > { %p5929_p10 = scmp.lt.s32.totalorder %s230_s28, %s230_s28  ;;  %p5930_p11 = scmp.lt.s32.totalorder %s5921_s30, %s5921_s30 }
   0x6   : > { %p5745_p4 = pneg %p6009_p2 }
   0x7   : > { %p5931_p12 = por %p5930_p11, %p5929_p10 }
   0x8   : > { %p5746_p5 = pnand %p5749_p3, %p5745_p4 }
   0xa   : > { %p5923_p7 = pneg %p5746_p5 }
   0xc   : > { %p5924_p8 = pnand %p5923_p7, %p5922_p6 }
   0xe   : > { %p5925_p9 = pneg %p5924_p8 }
  0x10   : > { %p5932_p13 = pnand %p5931_p12, %p5925_p9 }
  0x12   : > { %5935 = shalt.err (!%p5932_p13)
}
  0x13   : > { %s5948_s8 = smov [#allocation2]   ;;  %250 = sbr.rel (%p6009_p2) target bundleno = 2271 (0x8df), region = 48 }
  0x14   : > { %5748 = dma.vmem_to_smem (!%p5746_p5), %s230_s28, 16, %s5948_s8, [#allocation3]  }
  0x1a   : > { %5941 = dma.done.wait (%p5749_p3), [#allocation3], 16  }
  0x1b   : > { %5943 = vsyncadd (%p5749_p3), [#allocation3], 4294967280 }
  0x1c   : > { %256 = sfence }
  0x1d   : > { %p283_p0 = scmp.lt.s32.totalorder %s5297_s25, 1  ;;  %s5949_s13 = smov 1   ;;  %v8690_v2 = vmov 0.0   ;;  %vm395_vm0 = vcmask 1043456   ;;  %vm421_vm1 = vcmask 1044480   ;;  %vm1008_vm2 = vcmask 39936  }
  0x1e   : > { %s5950_s14 = smov 16   ;;  %s5951_s15 = smov 17   ;;  %502 = vmatprep.mubr.f32.mxu0 %v8690_v2  ;;  %1084 = vmatprep.mubr.f32.mxu1 %v8690_v2  ;;  %v1007_v5 = vld [vmem:[%s8672_s3] sm:$0x3]  ;;  %v317_v24 = vlaneseq  ;;  %vm417_vm6 = vcmask 302080   ;;  %v295_v39 = vld [vmem:[%s8673_s4 + $0x8] sm:$0xff] }
  0x1f   : > { %s9040_s25 = smov (!%p283_p0, %s5297_s25), 1  ;;  %s5952_s16 = smov 15   ;;  %v1010_v8 = vsel %vm1008_vm2, %v1007_v5, 0  ;;  %v416_v32 = vld [vmem:[%s8670_s1] sm:$0xf]  ;;  %v296_v49 = vld [vmem:[%s8673_s4 + $0x10] sm:$0xff] }
  0x20   : > { %s5313_s9 = sshll.u32 %s9040_s25, 3  ;;  %s5953_s17 = smov 127   ;;  %v6081_v11 = vand.u32 4294901760, %v1010_v8  ;;  %v6089_v27 = vand.u32 127, %v317_v24  ;;  %v294_v42 = vld [vmem:[%s8673_s4] sm:$0xff]  ;;  %v419_v43 = vsel %vm417_vm6, %v416_v32, 0 }
  0x21   : > { %s6028_s12 = scalar_lea.vmem %s8669_s0, %s5313_s9  ;;  %s5954_s18 = smov 112   ;;  %v297_v50 = vld [vmem:[%s8673_s4 + $0x18] sm:$0xff]  ;;  %v6135_v61 = vand.u32 4294901760, %v419_v43  ;;  %vm2066_vm6 = vcmask 1041408  }
  0x22   : > { %v6031_v0 = vld [vmem:[%s6028_s12] sm:$0xff]  ;;  %s5955_s19 = smov 113   ;;  %s5957_s20 = smov 111   ;;  %v1086_v13 = vsub.f32 %v1010_v8, %v6081_v11  ;;  %8798 = vst [vmem:[#allocation6_spill] sm:$0xff] %v6089_v27  ;;  %vm340_vm3 = vcmp.lt.s32.totalorder %v6089_v27, 1  ;;  %vm326_vm4 = vcmp.lt.s32.totalorder %v6089_v27, 16 }
  0x23   : > { %336 = vrot.lane.b32.xlu1 %v6031_v0, %s5949_s13  ;;  %322 = vrot.lane.b32.xlu0 %v6031_v0, %s5950_s14  ;;  %v6039_v1 = vcombine.high %v6031_v0, %v6031_v0  ;;  %v1005_v4 = vsel %vm395_vm0, %v6031_v0, 1.0  ;;  %vm319_vm5 = vcmp.lt.s32.totalorder %v6089_v27, 17  ;;  %vm333_vm7 = vcmp.lt.s32.totalorder %v6089_v27, 15  ;;  %s997_s27 = sld [smem:[#allocation2]]  ;;  %s5309_s28 = sld [smem:[#allocation2 + $0x1]] }
  0x24   : > { %v1013_v7 = vsel %vm421_vm1, %v1005_v4, 0  ;;  %v1087_v15 = vand.u32 4294901760, %v1086_v13  ;;  %vm347_vm8 = vcmp.lt.s32.totalorder %v6089_v27, 127  ;;  %vm361_vm9 = vcmp.lt.s32.totalorder %v6089_v27, 112  ;;  %s5310_s29 = sld [smem:[#allocation2 + $0x3]]  ;;  %s5308_s30 = sld [smem:[#allocation2 + $0x2]] }
  0x25   : > { %8797 = vst [vmem:[#allocation5_spill] sm:$0xff] %v6039_v1  ;;  %v1006_v3 = vsel %vm395_vm0, %v6039_v1, 1.0  ;;  %v1020_v10 = vand.u32 4294901760, %v1013_v7  ;;  %vm354_vm10 = vcmp.lt.s32.totalorder %v6089_v27, 113  ;;  %vm368_vm11 = vcmp.lt.s32.totalorder %v6089_v27, 111  ;;  %s292_s10 = scalar_lea.vmem %s8676_s7, %s5313_s9 }
  0x26   : > { %v1016_v6 = vsel %vm421_vm1, %v1006_v3, 0  ;;  %v1088_v18 = vsub.f32 %v1086_v13, %v1087_v15 }
  0x27   : > { %313 = vrot.lane.b32.xlu0 %v6031_v0, %s5951_s15  ;;  %338 = vrot.lane.b32.xlu1 %v6039_v1, %s5949_s13  ;;  %v1018_v9 = vand.u32 4294901760, %v1016_v6  ;;  %v1103_v12 = vsub.f32 %v1013_v7, %v1020_v10 }
  0x28   : > { %v1089_v21 = vand.u32 4294901760, %v1088_v18 }
  0x29   : > { %1019 = vmatprep.subr.mxu1 %v1018_v9  ;;  %v1097_v14 = vsub.f32 %v1016_v6, %v1018_v9  ;;  %v1104_v17 = vand.u32 4294901760, %v1103_v12 }
  0x2a   : > { %1021 = vmatpush1.msra.mxu1 %v1020_v10 }
  0x2b   : > { %315 = vrot.lane.b32.xlu1 %v6039_v1, %s5951_s15  ;;  %324 = vrot.lane.b32.xlu0 %v6039_v1, %s5950_s14  ;;  %v1098_v16 = vand.u32 4294901760, %v1097_v14  ;;  %v1105_v20 = vsub.f32 %v1103_v12, %v1104_v17 }
  0x2c   : > { %1090 = vmatmul.mubr.f32.vlgmr.msra.gmra.mrb[0].mxu1 %v1089_v21 }
  0x2d   : > { %v1099_v19 = vsub.f32 %v1097_v14, %v1098_v16  ;;  %v1106_v23 = vand.u32 4294901760, %v1105_v20  ;;  %1170 = vmatprep.mubr.f32.mxu1 %v8690_v2 }
  0x2f   : > { %331 = vrot.lane.b32.xlu1 %v6039_v1, %s5952_s16  ;;  %329 = vrot.lane.b32.xlu0 %v6031_v0, %s5952_s16  ;;  %v1100_v22 = vand.u32 4294901760, %v1099_v19 }
  0x31   : > { %1101 = vmatprep.subr.mxu1 %v1100_v22 }
  0x32   : > { %1107 = vmatpush1.msra.mxu1 %v1106_v23 }
  0x33   : > { %345 = vrot.lane.b32.xlu1 %v6039_v1, %s5953_s17  ;;  %343 = vrot.lane.b32.xlu0 %v6031_v0, %s5953_s17 }
  0x34   : > { %1180 = vmatprep.subr.mxu1 %v1097_v14  ;;  %1172 = vmatmul.mubr.f32.vlgmr.msra.gmra.mrb[0].mxu1 %v6081_v11  ;;  %v6153_v14 = vsub.f32 %v419_v43, %v6135_v61 }
  0x35   : > { %1183 = vmatpush1.msra.mxu1 %v1103_v12  ;;  %1246 = vmatprep.mubr.f32.mxu1 %v8690_v2 }
  0x36   : > { %1256 = vmatprep.subr.mxu1 %v1018_v9 }
  0x37   : > { %359 = vrot.lane.b32.xlu1 %v6039_v1, %s5954_s18  ;;  %357 = vrot.lane.b32.xlu0 %v6031_v0, %s5954_s18 }
  0x3b   : > { %352 = vrot.lane.b32.xlu1 %v6039_v1, %s5955_s19  ;;  %350 = vrot.lane.b32.xlu0 %v6031_v0, %s5955_s19 }
  0x3c   : > { %1249 = vmatmul.mubr.f32.vlgmr.msra.gmra.mrb[0].mxu1 %v1086_v13 }
  0x3d   : > { %1258 = vmatpush1.msra.mxu1 %v1020_v10  ;;  %1321 = vmatprep.mubr.f32.mxu1 %v8690_v2 }
  0x3e   : > { %1334 = vmatprep.subr.mxu1 %v1098_v16 }
  0x3f   : > { %366 = vrot.lane.b32.xlu1 %v6039_v1, %s5957_s20  ;;  %364 = vrot.lane.b32.xlu0 %v6031_v0, %s5957_s20 }
  0x44   : > { %1325 = vmatmul.mubr.f32.vlgmr.msra.gmra.mrb[0].mxu1 %v1087_v15 }
  0x45   : > { %1338 = vmatpush1.msra.mxu1 %v1104_v17  ;;  %1401 = vmatprep.mubr.f32.mxu1 %v8690_v2 }
  0x46   : > { %1410 = vmatprep.subr.mxu1 %v1018_v9 }
  0x4c   : > { %1403 = vmatmul.mubr.f32.vlgmr.msra.gmra.mrb[0].mxu1 %v6081_v11 }
  0x4d   : > { %1412 = vmatpush1.msra.mxu1 %v1020_v10  ;;  %1475 = vmatprep.mubr.f32.mxu1 %v8690_v2  ;;  %v299_v10 = vld [vmem:[%s8673_s4 + $0x28] sm:$0xff] }
  0x54   : > { %1477 = vmatmul.mubr.f32.vlgmr.msra.gmra.mrb[0].mxu1 %v6081_v11  ;;  %v298_v11 = vld [vmem:[%s8673_s4 + $0x20] sm:$0xff] }
  0x55   : > { %1569 = vmatprep.mubr.f32.mxu1 %v8690_v2 }
  0x95   : > { %v337_v25 = vpop.permute.xlu1 %336  ;;  %v323_v26 = vpop.permute.xlu0 %322 }
  0x99   : > { %v314_v28 = vpop.permute.xlu0 %313  ;;  %v339_v29 = vpop.permute.xlu1 %338 }
  0x9a   : > { %v341_v33 = vsel %vm340_vm3, %v337_v25, %v339_v29  ;;  %v342_v34 = vsel %vm340_vm3, %v339_v29, %v337_v25  ;;  %v505_v29 = vand.u32 4294901760, %v6153_v14 }
  0x9b   : > { %v379_v44 = vrot.slane %v342_v34, 4  ;;  %v380_v45 = vrot.slane %v341_v33, 4  ;;  %v300_v33 = vld [vmem:[%s8673_s4 + $0x30] sm:$0xff]  ;;  %v301_v34 = vld [vmem:[%s8673_s4 + $0x38] sm:$0xff] }
  0x9d   : > { %v316_v30 = vpop.permute.xlu1 %315  ;;  %v325_v31 = vpop.permute.xlu0 %324 }
  0x9e   : > { %v327_v35 = vsel %vm326_vm4, %v323_v26, %v325_v31  ;;  %v328_v36 = vsel %vm326_vm4, %v325_v31, %v323_v26  ;;  %v320_v40 = vsel %vm319_vm5, %v314_v28, %v316_v30  ;;  %v321_v41 = vsel %vm319_vm5, %v316_v30, %v314_v28 }
  0x9f   : > { %v373_v37 = vrot.slane %v328_v36, 4  ;;  %v374_v38 = vrot.slane %v327_v35, 4 }
  0xa1   : > { %v396_v46 = vsel %vm395_vm0, %v321_v41, %v373_v37  ;;  %v397_v47 = vsel %vm395_vm0, %v320_v40, %v374_v38  ;;  %v332_v48 = vpop.permute.xlu1 %331  ;;  %v330_v51 = vpop.permute.xlu0 %329 }
  0xa2   : > { %v334_v52 = vsel %vm333_vm7, %v330_v51, %v332_v48  ;;  %v335_v53 = vsel %vm333_vm7, %v332_v48, %v330_v51  ;;  %v405_v54 = vmul.f32 %v397_v47, %v295_v39  ;;  %v404_v57 = vmul.f32 %v396_v46, %v294_v42  ;;  %v302_v47 = vld [vmem:[%s8673_s4 + $0x40] sm:$0xf]  ;;  %v303_v48 = vld [vmem:[%s8673_s4 + $0x48] sm:$0xf] }
  0xa3   : > { %v398_v55 = vsel %vm395_vm0, %v335_v53, %v379_v44  ;;  %v399_v56 = vsel %vm395_vm0, %v334_v52, %v380_v45 }
  0xa4   : > { %v406_v58 = vmul.f32 %v398_v55, %v296_v49  ;;  %v407_v59 = vmul.f32 %v399_v56, %v297_v50  ;;  %v428_v60 = vand.u32 4294901760, %v405_v54  ;;  %v430_v8 = vand.u32 4294901760, %v404_v57 }
  0xa5   : > { %v346_v62 = vpop.permute.xlu1 %345  ;;  %v344_v63 = vpop.permute.xlu0 %343  ;;  %v506_v49 = vsub.f32 %v6153_v14, %v505_v29 }
  0xa6   : > { %v348_v3 = vsel %vm347_vm8, %v344_v63, %v346_v62  ;;  %v349_v4 = vsel %vm347_vm8, %v346_v62, %v344_v63  ;;  %v432_v5 = vand.u32 4294901760, %v407_v59  ;;  %v434_v9 = vand.u32 4294901760, %v406_v58 }
  0xa7   : > { %v385_v6 = vrot.slane %v348_v3, 4  ;;  %v386_v7 = vrot.slane %v349_v4, 4  ;;  %v6150_v13 = vsub.f32 %v405_v54, %v428_v60 }
  0xa8   : > { %v6148_v12 = vpack.c.bf16 %v432_v5, %v428_v60  ;;  %v6159_v19 = vsub.f32 %v407_v59, %v432_v5  ;;  %v6161_v20 = vpack.c.bf16 %v434_v9, %v430_v8  ;;  %v6171_v25 = vsub.f32 %v406_v58, %v434_v9 }
  0xa9   : > { %v400_v15 = vsel %vm395_vm0, %v6031_v0, %v385_v6  ;;  %v401_v16 = vsel %vm395_vm0, %v6039_v1, %v386_v7  ;;  %v360_v17 = vpop.permute.xlu1 %359  ;;  %v358_v18 = vpop.permute.xlu0 %357  ;;  %v6169_v0 = vsub.f32 %v404_v57, %v430_v8  ;;  %v516_v28 = vand.u32 4294901760, %v6150_v13 }
  0xaa   : > { %v362_v21 = vsel %vm361_vm9, %v358_v18, %v360_v17  ;;  %v363_v22 = vsel %vm361_vm9, %v360_v17, %v358_v18  ;;  %5316 = vmatprep.subr.bf16.mxu0 %v6148_v12  ;;  %v409_v23 = vmul.f32 %v401_v16, %v299_v10  ;;  %v408_v24 = vmul.f32 %v400_v15, %v298_v11 }
  0xab   : > { %5318 = vmatpush1.bf16.msra.mxu0 %v6161_v20  ;;  %v391_v30 = vrot.slane %v362_v21, 4  ;;  %v392_v31 = vrot.slane %v363_v22, 4  ;;  %v528_v37 = vand.u32 4294901760, %v6159_v19  ;;  %v522_v43 = vand.u32 4294901760, %v6169_v0 }
  0xac   : > { %v436_v26 = vand.u32 4294901760, %v409_v23  ;;  %v438_v36 = vand.u32 4294901760, %v408_v24  ;;  %v534_v44 = vand.u32 4294901760, %v6171_v25  ;;  %v517_v53 = vsub.f32 %v6150_v13, %v516_v28 }
  0xad   : > { %v353_v32 = vpop.permute.xlu1 %352  ;;  %v351_v35 = vpop.permute.xlu0 %350  ;;  %v529_v54 = vsub.f32 %v6159_v19, %v528_v37  ;;  %v523_v63 = vsub.f32 %v6169_v0, %v522_v43 }
  0xae   : > { %v355_v38 = vsel %vm354_vm10, %v351_v35, %v353_v32  ;;  %v356_v39 = vsel %vm354_vm10, %v353_v32, %v351_v35  ;;  %v6188_v40 = vsub.f32 %v409_v23, %v436_v26  ;;  %v6203_v52 = vsub.f32 %v408_v24, %v438_v36 }
  0xaf   : > { %v402_v41 = vsel %vm395_vm0, %v355_v38, %v391_v30  ;;  %v403_v42 = vsel %vm395_vm0, %v356_v39, %v392_v31  ;;  %v535_v3 = vsub.f32 %v6171_v25, %v534_v44  ;;  %v530_v10 = vand.u32 4294901760, %v529_v54 }
  0xb0   : > { %v410_v45 = vmul.f32 %v402_v41, %v300_v33  ;;  %v411_v46 = vmul.f32 %v403_v42, %v301_v34  ;;  %v540_v55 = vand.u32 4294901760, %v6188_v40  ;;  %v546_v11 = vand.u32 4294901760, %v6203_v52 }
  0xb1   : > { %v367_v50 = vpop.permute.xlu1 %366  ;;  %v365_v51 = vpop.permute.xlu0 %364  ;;  %v536_v23 = vand.u32 4294901760, %v535_v3  ;;  %v507_v30 = vand.u32 4294901760, %v506_v49  ;;  %v524_v31 = vand.u32 4294901760, %v523_v63  ;;  %v5349_v63 = vpack.c.bf16 %v534_v44, %v522_v43 }
  0xb2   : > { %v369_v56 = vsel %vm368_vm11, %v365_v51, %v367_v50  ;;  %v370_v57 = vsel %vm368_vm11, %v367_v50, %v365_v51  ;;  %v440_v58 = vand.u32 4294901760, %v411_v46  ;;  %v442_v59 = vand.u32 4294901760, %v410_v45 }
  0xb3   : > { %v412_v60 = vmul.f32 %v369_v56, %v302_v47  ;;  %v413_v62 = vmul.f32 %v370_v57, %v303_v48  ;;  %v541_v17 = vsub.f32 %v6188_v40, %v540_v55  ;;  %v547_v35 = vsub.f32 %v6203_v52, %v546_v11 }
  0xb4   : > { %v6222_v4 = vpack.c.bf16 %v440_v58, %v436_v26  ;;  %v6224_v5 = vsub.f32 %v411_v46, %v440_v58  ;;  %v6226_v6 = vpack.c.bf16 %v442_v59, %v438_v36  ;;  %v6228_v7 = vsub.f32 %v410_v45, %v442_v59 }
  0xb5   : > { %v414_v8 = vsel %vm395_vm0, %v412_v60, 1.0  ;;  %v415_v9 = vsel %vm395_vm0, %v413_v62, 1.0  ;;  %v518_v26 = vand.u32 4294901760, %v517_v53  ;;  %v542_v39 = vand.u32 4294901760, %v541_v17 }
  0xb6   : > { %v423_v15 = vsel %vm421_vm1, %v414_v8, 0  ;;  %v426_v16 = vsel %vm421_vm1, %v415_v9, 0  ;;  %5320 = vmatprep.subr.bf16.mxu0 %v6222_v4  ;;  %v552_v18 = vand.u32 4294901760, %v6224_v5  ;;  %v558_v24 = vand.u32 4294901760, %v6228_v7 }
  0xb7   : > { %v6240_v21 = vand.u32 4294901760, %v426_v16  ;;  %v6242_v22 = vand.u32 4294901760, %v423_v15  ;;  %5322 = vmatpush1.bf16.msra.mxu0 %v6226_v6  ;;  %v5323_v38 = vpack.c.bf16 %v530_v10, %v518_v26  ;;  %v5325_v42 = vpack.c.bf16 %v536_v23, %v524_v31 }
  0xb8   : > { %v553_v32 = vsub.f32 %v6224_v5, %v552_v18  ;;  %v559_v36 = vsub.f32 %v6228_v7, %v558_v24  ;;  %v548_v49 = vand.u32 4294901760, %v547_v35  ;;  %v5331_v57 = vpack.c.bf16 %v6159_v19, %v6150_v13  ;;  %v1493_v19 = vld [vmem:[%s8671_s2] sm:$0x3f] }
  0xb9   : > { %v563_v33 = vsub.f32 %v426_v16, %v6240_v21  ;;  %v569_v34 = vsub.f32 %v423_v15, %v6242_v22  ;;  %445 = vmatprep.subr.mxu0 %v6240_v21  ;;  %v5333_v58 = vpack.c.bf16 %v6171_v25, %v6169_v0  ;;  %v5335_v59 = vpack.c.bf16 %v6224_v5, %v6188_v40 }
  0xba   : > { %v554_v41 = vand.u32 4294901760, %v553_v32  ;;  %v560_v45 = vand.u32 4294901760, %v559_v36  ;;  %v5337_v60 = vpack.c.bf16 %v6228_v7, %v6203_v52  ;;  %v5347_v62 = vpack.c.bf16 %v528_v37, %v516_v28 }
  0xbb   : > { %447 = vmatpush1.msra.mxu0 %v6242_v22  ;;  %v564_v46 = vand.u32 4294901760, %v563_v33  ;;  %v570_v47 = vand.u32 4294901760, %v569_v34  ;;  %v5351_v3 = vpack.c.bf16 %v552_v18, %v540_v55  ;;  %v5353_v13 = vpack.c.bf16 %v558_v24, %v546_v11 }
  0xbc   : > { %5324 = vmatprep.subr.bf16.mxu0 %v5323_v38  ;;  %508 = vmatmul.mubr.f32.vlgmr.msra.gmra.mrb[0].mxu0 %v507_v30  ;;  %v5327_v48 = vpack.c.bf16 %v554_v41, %v542_v39  ;;  %v5329_v51 = vpack.c.bf16 %v560_v45, %v548_v49  ;;  %v1000_v28 = vstv %s997_s27  ;;  %v1971_v24 = vstv %s5309_s28 }
  0xbd   : > { %5326 = vmatpush1.bf16.msra.mxu0 %v5325_v42  ;;  %v565_v50 = vsub.f32 %v563_v33, %v564_v46  ;;  %628 = vmatprep.mubr.f32.mxu0 %v8690_v2  ;;  %v571_v54 = vsub.f32 %v569_v34, %v570_v47  ;;  %v1977_v26 = vstv %s5310_s29 }
  0xbe   : > { %5328 = vmatprep.subr.bf16.mxu0 %v5327_v48 }
  0xbf   : > { %v566_v53 = vand.u32 4294901760, %v565_v50  ;;  %v572_v56 = vand.u32 4294901760, %v571_v54 }
  0xc1   : > { %5330 = vmatpush1.bf16.msra.mxu0 %v5329_v51 }
  0xc2   : > { %567 = vmatprep.subr.mxu0 %v566_v53 }
  0xc5   : > { %573 = vmatpush1.msra.mxu0 %v572_v56 }
  0xc6   : > { %5332 = vmatprep.subr.bf16.mxu0 %v5331_v57  ;;  %630 = vmatmul.mubr.f32.vlgmr.msra.gmra.mrb[0].mxu0 %v6135_v61 }
  0xc7   : > { %5334 = vmatpush1.bf16.msra.mxu0 %v5333_v58  ;;  %720 = vmatprep.mubr.f32.mxu0 %v8690_v2 }
  0xc8   : > { %5336 = vmatprep.subr.bf16.mxu0 %v5335_v59 }
  0xcb   : > { %5338 = vmatpush1.bf16.msra.mxu0 %v5337_v60 }
  0xcc   : > { %662 = vmatprep.subr.mxu0 %v563_v33 }
  0xcf   : > { %665 = vmatpush1.msra.mxu0 %v569_v34 }
  0xd0   : > { %5340 = vmatprep.subr.bf16.mxu0 %v6148_v12  ;;  %723 = vmatmul.mubr.f32.vlgmr.msra.gmra.mrb[0].mxu0 %v6153_v14 }
  0xd1   : > { %5342 = vmatpush1.bf16.msra.mxu0 %v6161_v20  ;;  %803 = vmatprep.mubr.f32.mxu0 %v8690_v2 }
  0xd2   : > { %5344 = vmatprep.subr.bf16.mxu0 %v6222_v4 }
  0xd5   : > { %5346 = vmatpush1.bf16.msra.mxu0 %v6226_v6 }
  0xd6   : > { %746 = vmatprep.subr.mxu0 %v6240_v21 }
  0xd9   : > { %748 = vmatpush1.msra.mxu0 %v6242_v22 }
  0xda   : > { %5348 = vmatprep.subr.bf16.mxu0 %v5347_v62  ;;  %807 = vmatmul.mubr.f32.vlgmr.msra.gmra.mrb[0].mxu0 %v505_v29 }
  0xdb   : > { %5350 = vmatpush1.bf16.msra.mxu0 %v5349_v63  ;;  %907 = vmatprep.mubr.f32.mxu0 %v8690_v2 }
  0xdc   : > { %5352 = vmatprep.subr.bf16.mxu0 %v5351_v3 }
  0xdf   : > { %5354 = vmatpush1.bf16.msra.mxu0 %v5353_v13 }
  0xe0   : > { %848 = vmatprep.subr.mxu0 %v564_v46  ;;  %v1486_v46 = vstv %s5308_s30 }
  0xe3   : > { %852 = vmatpush1.msra.mxu0 %v570_v47 }
  0xe4   : > { %5356 = vmatprep.subr.bf16.mxu0 %v6148_v12  ;;  %909 = vmatmul.mubr.f32.vlgmr.msra.gmra.mrb[0].mxu0 %v6135_v61 }
  0xe5   : > { %5358 = vmatpush1.bf16.msra.mxu0 %v6161_v20  ;;  %989 = vmatprep.mubr.f32.mxu0 %v8690_v2  ;;  %v1495_v20 = vsel %vm1008_vm2, %v1493_v19, 0 }
  0xe6   : > { %5360 = vmatprep.subr.bf16.mxu0 %v6222_v4  ;;  %v1570_v0 = vand.u32 4294901760, %v1495_v20 }
  0xe8   : > { %v1571_v25 = vsub.f32 %v1495_v20, %v1570_v0 }
  0xe9   : > { %5362 = vmatpush1.bf16.msra.mxu0 %v6226_v6 }
  0xea   : > { %932 = vmatprep.subr.mxu0 %v6240_v21  ;;  %v1572_v29 = vand.u32 4294901760, %v1571_v25 }
  0xec   : > { %v1573_v52 = vsub.f32 %v1571_v25, %v1572_v29 }
  0xed   : > { %934 = vmatpush1.msra.mxu0 %v6242_v22 }
  0xee   : > { %991 = vmatmul.mubr.f32.vlgmr.msra.gmra.mrb[0].mxu0 %v6135_v61  ;;  %v1574_v10 = vand.u32 4294901760, %v1573_v52 }
  0xef   : > { %2555 = vmatprep.mubr.f32.mxu0 %v8690_v2 }
 0x127   : > { %v6299_v14 = vpop.f32.mrb[0].mxu1 }
 0x128   : > { %v6301_v12 = vpop.f32.mrb[1].mxu1  ;;  %v1487_v47 = vmul.f32 %v1486_v46, %v6299_v14 }
 0x129   : > { %v1488_v48 = vmul.f32 %v1486_v46, %v6301_v12  ;;  %vm1485_vm2 = vcmp.ge.f32.partialorder %v6301_v12, 0.0 }
 0x12b   : > { %v6365_v50 = vsel %vm1485_vm2, %v6301_v12, %v1488_v48  ;;  %v6467_v48 = vld [vmem:[%s8674_s5 + $0x28] sm:$0x3] }
 0x1c1   : > { %v992_v37 = vpop.f32.mrb[0].mxu0 }
 0x1c2   : > { %vm998_vm12 = vcmp.ge.f32.partialorder %v992_v37, 0.0  ;;  %v1001_v61 = vmul.f32 %v1000_v28, %v992_v37  ;;  %v994_v40 = vpop.f32.mrb[1].mxu0 }
 0x1c3   : > { %vm999_vm13 = vcmp.ge.f32.partialorder %v994_v40, 0.0  ;;  %v1002_v43 = vmul.f32 %v1000_v28, %v994_v40 }
 0x1c4   : > { %v1003_v44 = vsel %vm998_vm12, %v992_v37, %v1001_v61  ;;  %vm2071_vm12 = vcmask 1045504  }
 0x1c5   : > { %v1491_v55 = vsel %vm395_vm0, %v1003_v44, 1.0  ;;  %v1004_v4 = vsel %vm999_vm13, %v994_v40, %v1002_v43  ;;  %vm2382_vm13 = vcmask 146432  }
 0x1c6   : > { %v1498_v5 = vsel %vm421_vm1, %v1491_v55, 0  ;;  %v1492_v6 = vsel %vm395_vm0, %v1004_v4, 1.0 }
 0x1c7   : > { %v1505_v7 = vand.u32 4294901760, %v1498_v5  ;;  %v1501_v8 = vsel %vm421_vm1, %v1492_v6, 0  ;;  %vm1484_vm1 = vcmp.ge.f32.partialorder %v6299_v14, 0.0 }
 0x1c8   : > { %v1503_v9 = vand.u32 4294901760, %v1501_v8  ;;  %v6362_v49 = vsel %vm1484_vm1, %v6299_v14, %v1487_v47 }
 0x1c9   : > { %v1588_v11 = vsub.f32 %v1498_v5, %v1505_v7 }
 0x1ca   : > { %v1582_v15 = vsub.f32 %v1501_v8, %v1503_v9  ;;  %1504 = vmatprep.subr.mxu1 %v1503_v9 }
 0x1cb   : > { %1506 = vmatpush1.msra.mxu1 %v1505_v7  ;;  %v1589_v16 = vand.u32 4294901760, %v1588_v11 }
 0x1cc   : > { %1575 = vmatmul.mubr.f32.vlgmr.msra.gmra.mrb[2].mxu1 %v1574_v10  ;;  %v1583_v17 = vand.u32 4294901760, %v1582_v15 }
 0x1cd   : > { %v1590_v18 = vsub.f32 %v1588_v11, %v1589_v16  ;;  %1655 = vmatprep.mubr.f32.mxu1 %v8690_v2 }
 0x1ce   : > { %v1584_v21 = vsub.f32 %v1582_v15, %v1583_v17 }
 0x1cf   : > { %v1591_v23 = vand.u32 4294901760, %v1590_v18 }
 0x1d0   : > { %v1585_v22 = vand.u32 4294901760, %v1584_v21 }
 0x1d2   : > { %1586 = vmatprep.subr.mxu1 %v1585_v22  ;;  %v6430_v22 = vld [vmem:[%s8674_s5 + $0x8] sm:$0xff] }
 0x1d3   : > { %1592 = vmatpush1.msra.mxu1 %v1591_v23 }
 0x1d4   : > { %1657 = vmatmul.mubr.f32.vlgmr.msra.gmra.mrb[2].mxu1 %v1570_v0  ;;  %1665 = vmatprep.subr.mxu1 %v1582_v15 }
 0x1d5   : > { %1668 = vmatpush1.msra.mxu1 %v1588_v11  ;;  %1731 = vmatprep.mubr.f32.mxu1 %v8690_v2 }
 0x1d6   : > { %1741 = vmatprep.subr.mxu1 %v1503_v9 }
 0x1dc   : > { %1734 = vmatmul.mubr.f32.vlgmr.msra.gmra.mrb[2].mxu1 %v1571_v25 }
 0x1dd   : > { %1743 = vmatpush1.msra.mxu1 %v1505_v7  ;;  %1806 = vmatprep.mubr.f32.mxu1 %v8690_v2 }
 0x1de   : > { %1819 = vmatprep.subr.mxu1 %v1583_v17 }
 0x1e4   : > { %1810 = vmatmul.mubr.f32.vlgmr.msra.gmra.mrb[2].mxu1 %v1572_v29 }
 0x1e5   : > { %1823 = vmatpush1.msra.mxu1 %v1589_v16  ;;  %1886 = vmatprep.mubr.f32.mxu1 %v8690_v2 }
 0x1e6   : > { %1895 = vmatprep.subr.mxu1 %v1503_v9 }
 0x1ec   : > { %1888 = vmatmul.mubr.f32.vlgmr.msra.gmra.mrb[2].mxu1 %v1570_v0 }
 0x1ed   : > { %1897 = vmatpush1.msra.mxu1 %v1505_v7  ;;  %1960 = vmatprep.mubr.f32.mxu1 %v8690_v2 }
 0x1f4   : > { %1962 = vmatmul.mubr.f32.vlgmr.msra.gmra.mrb[2].mxu1 %v1570_v0 }
 0x1f5   : > { %3519 = vmatprep.mubr.f32.mxu1 %v8690_v2 }
 0x2c7   : > { %v1963_v30 = vpop.f32.mrb[2].mxu1 }
 0x2c8   : > { %vm1969_vm14 = vcmp.ge.f32.partialorder %v1963_v30, 0.0  ;;  %v1972_v31 = vmul.f32 %v1971_v24, %v1963_v30  ;;  %v1978_v32 = vmul.f32 %v1977_v26, %v1963_v30  ;;  %v1965_v33 = vpop.f32.mrb[3].mxu1 }
 0x2c9   : > { %vm1970_vm15 = vcmp.ge.f32.partialorder %v1965_v33, 0.0  ;;  %v1973_v34 = vmul.f32 %v1971_v24, %v1965_v33  ;;  %v1979_v35 = vmul.f32 %v1977_v26, %v1965_v33  ;;  %v6436_v24 = vld [vmem:[%s8674_s5] sm:$0xff] }
 0x2ca   : > { %v6317_v36 = vsel %vm1969_vm14, %v1963_v30, %v1972_v31  ;;  %v1980_v38 = vsel %vm1969_vm14, %v1963_v30, %v1978_v32 }
 0x2cb   : > { %8799 = vst [vmem:[#allocation7_spill] sm:$0xff] %v6317_v36  ;;  %v6319_v39 = vrot.slane %v1980_v38, 4  ;;  %v6321_v41 = vsel %vm1970_vm15, %v1965_v33, %v1973_v34  ;;  %v1981_v42 = vsel %vm1970_vm15, %v1965_v33, %v1979_v35  ;;  %v6450_v34 = vld [vmem:[%s8674_s5 + $0x10] sm:$0xff]  ;;  %v6455_v35 = vld [vmem:[%s8674_s5 + $0x18] sm:$0xff] }
 0x2cc   : > { %8800 = vst [vmem:[#allocation8_spill] sm:$0xff] %v6321_v41  ;;  %v6323_v45 = vrot.slane %v1981_v42, 4 }
 0x2cd   : > { %2098 = vrot.lane.b32.xlu0 %v6319_v39, %s5950_s14 }
 0x2ce   : > { %2100 = vrot.lane.b32.xlu1 %v6323_v45, %s5950_s14 }
 0x2d1   : > { %2116 = vrot.lane.b32.xlu0 %v6319_v39, %s5953_s17 }
 0x2d2   : > { %2118 = vrot.lane.b32.xlu1 %v6323_v45, %s5953_s17 }
 0x2d5   : > { %2104 = vrot.lane.b32.xlu0 %v6319_v39, %s5952_s16 }
 0x2d6   : > { %2106 = vrot.lane.b32.xlu1 %v6323_v45, %s5952_s16 }
 0x2d9   : > { %2122 = vrot.lane.b32.xlu0 %v6319_v39, %s5955_s19 }
 0x2da   : > { %2124 = vrot.lane.b32.xlu1 %v6323_v45, %s5955_s19 }
 0x2dd   : > { %2092 = vrot.lane.b32.xlu0 %v6319_v39, %s5951_s15 }
 0x2de   : > { %2094 = vrot.lane.b32.xlu1 %v6323_v45, %s5951_s15 }
 0x2e1   : > { %2110 = vrot.lane.b32.xlu0 %v6319_v39, %s5949_s13 }
 0x2e2   : > { %2112 = vrot.lane.b32.xlu1 %v6323_v45, %s5949_s13 }
 0x2e5   : > { %2128 = vrot.lane.b32.xlu0 %v6319_v39, %s5954_s18 }
 0x2e6   : > { %2130 = vrot.lane.b32.xlu1 %v6323_v45, %s5954_s18 }
 0x2e9   : > { %2134 = vrot.lane.b32.xlu0 %v6319_v39, %s5957_s20 }
 0x2ea   : > { %2136 = vrot.lane.b32.xlu1 %v6323_v45, %s5957_s20 }
 0x2ed   : > { %1988 = vrot.lane.b32.xlu0 %v6362_v49, %s5950_s14 }
 0x2ee   : > { %1990 = vrot.lane.b32.xlu1 %v6365_v50, %s5950_s14 }
 0x2f1   : > { %2006 = vrot.lane.b32.xlu0 %v6362_v49, %s5953_s17 }
 0x2f2   : > { %2008 = vrot.lane.b32.xlu1 %v6365_v50, %s5953_s17 }
 0x2f5   : > { %1994 = vrot.lane.b32.xlu0 %v6362_v49, %s5952_s16 }
 0x2f6   : > { %1996 = vrot.lane.b32.xlu1 %v6365_v50, %s5952_s16 }
 0x2f9   : > { %2012 = vrot.lane.b32.xlu0 %v6362_v49, %s5955_s19 }
 0x2fa   : > { %2014 = vrot.lane.b32.xlu1 %v6365_v50, %s5955_s19 }
 0x2fd   : > { %1982 = vrot.lane.b32.xlu0 %v6362_v49, %s5951_s15 }
 0x2fe   : > { %1984 = vrot.lane.b32.xlu1 %v6365_v50, %s5951_s15 }
 0x301   : > { %2000 = vrot.lane.b32.xlu0 %v6362_v49, %s5949_s13 }
 0x302   : > { %2002 = vrot.lane.b32.xlu1 %v6365_v50, %s5949_s13 }
 0x305   : > { %2018 = vrot.lane.b32.xlu0 %v6362_v49, %s5954_s18 }
 0x306   : > { %2020 = vrot.lane.b32.xlu1 %v6365_v50, %s5954_s18 }
 0x309   : > { %2024 = vrot.lane.b32.xlu0 %v6362_v49, %s5957_s20 }
 0x30a   : > { %2026 = vrot.lane.b32.xlu1 %v6365_v50, %s5957_s20 }
 0x33f   : > { %v2099_v51 = vpop.permute.xlu0 %2098 }
 0x340   : > { %v2101_v53 = vpop.permute.xlu1 %2100 }
 0x341   : > { %v2102_v62 = vsel %vm326_vm4, %v2099_v51, %v2101_v53  ;;  %v2103_v63 = vsel %vm326_vm4, %v2101_v53, %v2099_v51 }
 0x342   : > { %v2142_v19 = vrot.slane %v2103_v63, 6  ;;  %v2143_v20 = vrot.slane %v2102_v62, 6 }
 0x343   : > { %v2117_v54 = vpop.permute.xlu0 %2116 }
 0x344   : > { %v2119_v56 = vpop.permute.xlu1 %2118 }
 0x345   : > { %v2120_v28 = vsel %vm347_vm8, %v2117_v54, %v2119_v56  ;;  %v2121_v29 = vsel %vm347_vm8, %v2119_v56, %v2117_v54 }
 0x346   : > { %v2160_v7 = vrot.slane %v2120_v28, 6  ;;  %v2161_v8 = vrot.slane %v2121_v29, 6 }
 0x347   : > { %v2105_v57 = vpop.permute.xlu0 %2104 }
 0x348   : > { %v2107_v58 = vpop.permute.xlu1 %2106  ;;  %v2182_v32 = vsel %vm2066_vm6, %v6319_v39, %v2160_v7  ;;  %v2183_v33 = vsel %vm2066_vm6, %v6323_v45, %v2161_v8  ;;  %v6462_v45 = vld [vmem:[%s8674_s5 + $0x20] sm:$0x3] }
 0x349   : > { %v2108_v0 = vsel %vm333_vm7, %v2105_v57, %v2107_v58  ;;  %v2109_v25 = vsel %vm333_vm7, %v2107_v58, %v2105_v57 }
 0x34a   : > { %v2148_v55 = vrot.slane %v2109_v25, 4  ;;  %v2149_v4 = vrot.slane %v2108_v0, 4 }
 0x34b   : > { %v2123_v59 = vpop.permute.xlu0 %2122 }
 0x34c   : > { %v2125_v60 = vpop.permute.xlu1 %2124 }
 0x34d   : > { %v2126_v61 = vsel %vm354_vm10, %v2123_v59, %v2125_v60  ;;  %v2127_v40 = vsel %vm354_vm10, %v2125_v60, %v2123_v59 }
 0x34e   : > { %v2166_v11 = vrot.slane %v2126_v61, 4  ;;  %v2167_v15 = vrot.slane %v2127_v40, 4 }
 0x34f   : > { %v2093_v3 = vpop.permute.xlu0 %2092 }
 0x350   : > { %v2095_v13 = vpop.permute.xlu1 %2094  ;;  %v2184_v46 = vsel %vm395_vm0, %v2182_v32, %v2166_v11  ;;  %v2185_v47 = vsel %vm395_vm0, %v2183_v33, %v2167_v15 }
 0x351   : > { %v2096_v14 = vsel %vm319_vm5, %v2093_v3, %v2095_v13  ;;  %v2097_v12 = vsel %vm319_vm5, %v2095_v13, %v2093_v3 }
 0x352   : > { %v2176_v43 = vsel %vm2066_vm6, %v2097_v12, %v2142_v19  ;;  %v2177_v44 = vsel %vm2066_vm6, %v2096_v14, %v2143_v20 }
 0x353   : > { %v2111_v37 = vpop.permute.xlu0 %2110  ;;  %v2178_v16 = vsel %vm395_vm0, %v2176_v43, %v2148_v55  ;;  %v2179_v17 = vsel %vm395_vm0, %v2177_v44, %v2149_v4 }
 0x354   : > { %v2113_v52 = vpop.permute.xlu1 %2112 }
 0x355   : > { %v2114_v5 = vsel %vm340_vm3, %v2111_v37, %v2113_v52  ;;  %v2115_v6 = vsel %vm340_vm3, %v2113_v52, %v2111_v37 }
 0x356   : > { %v2154_v9 = vrot.slane %v2115_v6, 2  ;;  %v2155_v10 = vrot.slane %v2114_v5, 2 }
 0x357   : > { %v2129_v18 = vpop.permute.xlu0 %2128 }
 0x358   : > { %v2131_v21 = vpop.permute.xlu1 %2130  ;;  %v2181_v23 = vsel %vm2071_vm12, %v2179_v17, %v2155_v10  ;;  %v2180_v26 = vsel %vm2071_vm12, %v2178_v16, %v2154_v9 }
 0x359   : > { %v2132_v30 = vsel %vm361_vm9, %v2129_v18, %v2131_v21  ;;  %v2133_v31 = vsel %vm361_vm9, %v2131_v21, %v2129_v18  ;;  %v6470_v51 = vmul.f32 %v2181_v23, %v6430_v22  ;;  %v6473_v53 = vmul.f32 %v2180_v26, %v6436_v24 }
 0x35a   : > { %v2172_v38 = vrot.slane %v2132_v30, 2  ;;  %v2173_v42 = vrot.slane %v2133_v31, 2 }
 0x35b   : > { %v2135_v39 = vpop.permute.xlu0 %2134  ;;  %v2285_v14 = vmul.f32 %v6470_v51, %v6470_v51  ;;  %v2284_v19 = vmul.f32 %v6473_v53, %v6473_v53 }
 0x35c   : > { %v2186_v54 = vsel %vm2071_vm12, %v2184_v46, %v2172_v38  ;;  %v2187_v56 = vsel %vm2071_vm12, %v2185_v47, %v2173_v42  ;;  %v2137_v57 = vpop.permute.xlu1 %2136 }
 0x35d   : > { %v6478_v58 = vmul.f32 %v2186_v54, %v6450_v34  ;;  %v6481_v59 = vmul.f32 %v2187_v56, %v6455_v35  ;;  %v2138_v60 = vsel %vm368_vm11, %v2135_v39, %v2137_v57  ;;  %v2139_v62 = vsel %vm368_vm11, %v2137_v57, %v2135_v39 }
 0x35e   : > { %v6488_v63 = vmul.f32 %v2138_v60, %v6462_v45  ;;  %v6491_v3 = vmul.f32 %v2139_v62, %v6467_v48 }
 0x35f   : > { %v1989_v13 = vpop.permute.xlu0 %1988  ;;  %v2287_v12 = vmul.f32 %v6481_v59, %v6481_v59  ;;  %v2286_v20 = vmul.f32 %v6478_v58, %v6478_v58 }
 0x360   : > { %v2288_v0 = vmul.f32 %v6488_v63, %v6488_v63  ;;  %v2289_v25 = vmul.f32 %v6491_v3, %v6491_v3  ;;  %v1991_v28 = vpop.permute.xlu1 %1990 }
 0x361   : > { %v2299_v29 = vadd.f32 %v2287_v12, %v2285_v14  ;;  %v2290_v37 = vadd.f32 %v2286_v20, %v2284_v19  ;;  %v1992_v26 = vsel %vm326_vm4, %v1989_v13, %v1991_v28  ;;  %v1993_v30 = vsel %vm326_vm4, %v1991_v28, %v1989_v13 }
 0x362   : > { %v2291_v61 = vsel %vm2066_vm6, %v2288_v0, 0.0  ;;  %v2300_v40 = vsel %vm2066_vm6, %v2289_v25, 0.0  ;;  %v2032_v54 = vrot.slane %v1993_v30, 6  ;;  %v2033_v56 = vrot.slane %v1992_v26, 6 }
 0x363   : > { %v2007_v43 = vpop.permute.xlu0 %2006  ;;  %v2301_v44 = vadd.f32 %v2300_v40, %v2299_v29  ;;  %v2292_v52 = vadd.f32 %v2291_v61, %v2290_v37 }
 0x364   : > { %v2009_v55 = vpop.permute.xlu1 %2008 }
 0x365   : > { %v2302_v4 = vrot.slane %v2301_v44, 4  ;;  %v2293_v5 = vrot.slane %v2292_v52, 4  ;;  %v2010_v62 = vsel %vm347_vm8, %v2007_v43, %v2009_v55  ;;  %v2011_v13 = vsel %vm347_vm8, %v2009_v55, %v2007_v43 }
 0x366   : > { %v2050_v40 = vrot.slane %v2010_v62, 6  ;;  %v2051_v43 = vrot.slane %v2011_v13, 6 }
 0x367   : > { %v1995_v6 = vpop.permute.xlu0 %1994  ;;  %v2303_v7 = vadd.f32 %v2302_v4, %v2301_v44  ;;  %v2294_v8 = vadd.f32 %v2293_v5, %v2292_v52 }
 0x368   : > { %v1997_v9 = vpop.permute.xlu1 %1996 }
 0x369   : > { %v2304_v10 = vrot.slane %v2303_v7, 2  ;;  %v2295_v11 = vrot.slane %v2294_v8, 2  ;;  %v1998_v57 = vsel %vm333_vm7, %v1995_v6, %v1997_v9  ;;  %v1999_v60 = vsel %vm333_vm7, %v1997_v9, %v1995_v6 }
 0x36a   : > { %v2038_v28 = vrot.slane %v1999_v60, 4  ;;  %v2039_v29 = vrot.slane %v1998_v57, 4 }
 0x36b   : > { %v2013_v15 = vpop.permute.xlu0 %2012  ;;  %v2305_v16 = vadd.f32 %v2304_v10, %v2303_v7  ;;  %v2296_v17 = vadd.f32 %v2295_v11, %v2294_v8 }
 0x36c   : > { %v2015_v18 = vpop.permute.xlu1 %2014 }
 0x36d   : > { %v2306_v21 = vrot.slane %v2305_v16, 1  ;;  %v2297_v23 = vrot.slane %v2296_v17, 1  ;;  %v2016_v14 = vsel %vm354_vm10, %v2013_v15, %v2015_v18  ;;  %v2017_v19 = vsel %vm354_vm10, %v2015_v18, %v2013_v15 }
 0x36e   : > { %v2056_v55 = vrot.slane %v2016_v14, 4  ;;  %v2057_v4 = vrot.slane %v2017_v19, 4  ;;  %v2074_v18 = vsel %vm2066_vm6, %v6362_v49, %v2050_v40 }
 0x36f   : > { %v1983_v31 = vpop.permute.xlu0 %1982  ;;  %v2307_v32 = vadd.f32 %v2306_v21, %v2305_v16  ;;  %v2298_v33 = vadd.f32 %v2297_v23, %v2296_v17  ;;  %v2075_v21 = vsel %vm2066_vm6, %v6365_v50, %v2051_v43 }
 0x370   : > { %v1985_v38 = vpop.permute.xlu1 %1984  ;;  %v2076_v30 = vsel %vm395_vm0, %v2074_v18, %v2056_v55 }
 0x371   : > { %v1986_v42 = vsel %vm319_vm5, %v1983_v31, %v1985_v38  ;;  %v1987_v46 = vsel %vm319_vm5, %v1985_v38, %v1983_v31  ;;  %v2309_v47 = vmax.f32 %v2307_v32, 1e-08  ;;  %v2308_v39 = vmax.f32 %v2298_v33, 1e-08 }
 0x372   : > { %v2067_v20 = vsel %vm2066_vm6, %v1987_v46, %v2032_v54  ;;  %v2068_v0 = vsel %vm2066_vm6, %v1986_v42, %v2033_v56  ;;  %v2077_v31 = vsel %vm395_vm0, %v2075_v21, %v2057_v4 }
 0x373   : > { %v2001_v12 = vpop.permute.xlu0 %2000  ;;  %5770 = vrsqrt.f32 %v2309_v47  ;;  %v2069_v5 = vsel %vm395_vm0, %v2067_v20, %v2038_v28  ;;  %v2070_v6 = vsel %vm395_vm0, %v2068_v0, %v2039_v29 }
 0x374   : > { %v2003_v25 = vpop.permute.xlu1 %2002  ;;  %5772 = vrsqrt.f32 %v2308_v39 }
 0x375   : > { %v2004_v37 = vsel %vm340_vm3, %v2001_v12, %v2003_v25  ;;  %v2005_v61 = vsel %vm340_vm3, %v2003_v25, %v2001_v12 }
 0x376   : > { %v2044_v44 = vrot.slane %v2005_v61, 2  ;;  %v2045_v52 = vrot.slane %v2004_v37, 2 }
 0x377   : > { %v2019_v7 = vpop.permute.xlu0 %2018 }
 0x378   : > { %v2021_v8 = vpop.permute.xlu1 %2020  ;;  %v2073_v9 = vsel %vm2071_vm12, %v2070_v6, %v2045_v52  ;;  %v2072_v10 = vsel %vm2071_vm12, %v2069_v5, %v2044_v44 }
 0x379   : > { %v2022_v11 = vsel %vm361_vm9, %v2019_v7, %v2021_v8  ;;  %v2023_v15 = vsel %vm361_vm9, %v2021_v8, %v2019_v7  ;;  %v2081_v16 = vmul.f32 %v2073_v9, %v6430_v22  ;;  %v2080_v17 = vmul.f32 %v2072_v10, %v6436_v24 }
 0x37a   : > { %v2062_v23 = vrot.slane %v2022_v11, 2  ;;  %v2063_v26 = vrot.slane %v2023_v15, 2 }
 0x37b   : > { %v2025_v32 = vpop.permute.xlu0 %2024  ;;  %v2485_v33 = vand.u32 4294901760, %v2081_v16  ;;  %v2487_v24 = vand.u32 4294901760, %v2080_v17 }
 0x37c   : > { %v2078_v38 = vsel %vm2071_vm12, %v2076_v30, %v2062_v23  ;;  %v2079_v22 = vsel %vm2071_vm12, %v2077_v31, %v2063_v26  ;;  %v2027_v42 = vpop.permute.xlu1 %2026 }
 0x37d   : > { %v5771_v46 = vpop.eup %5770  ;;  %v2082_v49 = vmul.f32 %v2078_v38, %v6450_v34  ;;  %v2083_v47 = vmul.f32 %v2079_v22, %v6455_v35  ;;  %v2028_v50 = vsel %vm368_vm11, %v2025_v32, %v2027_v42  ;;  %v2029_v39 = vsel %vm368_vm11, %v2027_v42, %v2025_v32 }
 0x37e   : > { %v5773_v54 = vpop.eup %5772  ;;  %v2084_v56 = vmul.f32 %v2028_v50, %v6462_v45  ;;  %v2085_v57 = vmul.f32 %v2029_v39, %v6467_v48  ;;  %v2313_v60 = vmul.f32 %v5771_v46, %v6470_v51  ;;  %v2909_v34 = vsub.f32 %v2081_v16, %v2485_v33 }
 0x37f   : > { %v2491_v62 = vand.u32 4294901760, %v2082_v49  ;;  %v2312_v13 = vmul.f32 %v5773_v54, %v6473_v53  ;;  %v2489_v14 = vand.u32 4294901760, %v2083_v47  ;;  %v2915_v12 = vsub.f32 %v2080_v17, %v2487_v24 }
 0x380   : > { %v2483_v35 = vsel %vm2066_vm6, %v2085_v57, 0  ;;  %2350 = vxpose.xlu0.b32.start [1/3] (short) %v2313_v60, 128  ;;  %v2480_v20 = vsel %vm2066_vm6, %v2084_v56, 0  ;;  %v2315_v51 = vmul.f32 %v5771_v46, %v6481_v59  ;;  %v2314_v53 = vmul.f32 %v5773_v54, %v6478_v58 }
 0x381   : > { %v2927_v19 = vsub.f32 %v2082_v49, %v2491_v62  ;;  %2318 = vxpose.xlu1.b32.start [1/3] (short) %v2312_v13, 128  ;;  %v6563_v0 = vpack.c.bf16 %v2489_v14, %v2485_v33  ;;  %v6565_v45 = vand.u32 4294901760, %v2483_v35  ;;  %v2921_v48 = vsub.f32 %v2083_v47, %v2489_v14 }
 0x382   : > { %v6568_v25 = vpack.c.bf16 %v2491_v62, %v2487_v24  ;;  %v2910_v29 = vand.u32 4294901760, %v2909_v34  ;;  %v2916_v40 = vand.u32 4294901760, %v2915_v12  ;;  %v6577_v43 = vand.u32 4294901760, %v2480_v20 }
 0x383   : > { %8801 = vst [vmem:[#allocation9_spill] sm:$0xff] %v6565_v45  ;;  %5364 = vmatprep.subr.bf16.mxu0 %v6563_v0  ;;  %v6572_v28 = vpack.c.bf16 %v2927_v19, %v2915_v12  ;;  %v6575_v37 = vpack.c.bf16 %v2921_v48, %v2909_v34  ;;  %v2922_v61 = vand.u32 4294901760, %v2921_v48  ;;  %v2317_v59 = vmul.f32 %v5771_v46, %v6491_v3 }
 0x384   : > { %8802 = vst [vmem:[#allocation10_spill] sm:$0xff] %v6568_v25  ;;  %2351 = vxpose.xlu0.b32.cont [2/3] (short) %v2315_v51, 128  ;;  %5366 = vmatpush1.bf16.msra.mxu0 %v6568_v25  ;;  %8803 = vst [vmem:[#allocation11_spill] sm:$0xff] %v6577_v43  ;;  %v2911_v44 = vsub.f32 %v2909_v34, %v2910_v29  ;;  %v2928_v52 = vand.u32 4294901760, %v2927_v19  ;;  %v6582_v58 = vsub.f32 %v2483_v35, %v6565_v45 }
 0x385   : > { %2319 = vxpose.xlu1.b32.cont [2/3] (short) %v2314_v53, 128  ;;  %2494 = vmatprep.subr.mxu0 %v6565_v45  ;;  %v2923_v55 = vsub.f32 %v2921_v48, %v2922_v61  ;;  %v2917_v4 = vsub.f32 %v2915_v12, %v2916_v40  ;;  %v6585_v5 = vpack.c.bf16 %v2922_v61, %v2910_v29 }
 0x386   : > { %5387 = vmatprep.subr.bf16.mxu1 %v6575_v37  ;;  %v2316_v6 = vmul.f32 %v5773_v54, %v6488_v63  ;;  %v2929_v7 = vsub.f32 %v2927_v19, %v2928_v52  ;;  %v2912_v3 = vand.u32 4294901760, %v2911_v44  ;;  %v6590_v9 = vpack.c.bf16 %v2928_v52, %v2916_v40 }
 0x387   : > { %5389 = vmatpush1.bf16.msra.mxu1 %v6572_v28  ;;  %v2924_v8 = vand.u32 4294901760, %v2923_v55  ;;  %v6593_v10 = vsub.f32 %v2480_v20, %v6577_v43  ;;  %v2918_v11 = vand.u32 4294901760, %v2917_v4  ;;  %v8688_v38 = vand.u32 4294901760, %v6582_v58 }
 0x388   : > { %5388 = vmatprep.subr.mxu1 %v6582_v58  ;;  %2352 = vxpose.xlu0.b32.end [3/3] (short) %v2317_v59, 128  ;;  %v2930_v15 = vand.u32 4294901760, %v2929_v7 }
 0x389   : > { %2320 = vxpose.xlu1.b32.end [3/3] (short) %v2316_v6, 128  ;;  %2496 = vmatpush1.msra.mxu0 %v6577_v43  ;;  %v5367_v16 = vpack.c.bf16 %v2924_v8, %v2912_v3  ;;  %v8685_v49 = vand.u32 4294901760, %v6593_v10  ;;  %v2935_v56 = vsub.f32 %v6582_v58, %v8688_v38 }
 0x38a   : > { %v5369_v63 = vpack.c.bf16 %v2930_v15, %v2918_v11 }
 0x38b   : > { %5390 = vmatpush1.msra.mxu1 %v6593_v10  ;;  %5368 = vmatprep.subr.bf16.mxu0 %v5367_v16  ;;  %v2941_v34 = vsub.f32 %v6593_v10, %v8685_v49  ;;  %v2936_v20 = vand.u32 4294901760, %v2935_v56 }
 0x38c   : > { %5376 = vmatprep.subr.bf16.mxu1 %v6563_v0 }
 0x38d   : > { %v2942_v59 = vand.u32 4294901760, %v2941_v34 }
 0x3db   : > { %2202 = vrot.lane.b32.xlu1 %v6321_v41, %s5950_s14 }
 0x3df   : > { %2214 = vrot.lane.b32.xlu1 %v6321_v41, %s5949_s13 }
 0x3e3   : > { %2196 = vrot.lane.b32.xlu1 %v6321_v41, %s5951_s15 }
 0x3e5   : > { %2200 = vrot.lane.b32.xlu0 %v6317_v36, %s5950_s14 }
 0x3e7   : > { %2208 = vrot.lane.b32.xlu1 %v6321_v41, %s5952_s16 }
 0x3e9   : > { %2212 = vrot.lane.b32.xlu0 %v6317_v36, %s5949_s13 }
 0x3eb   : > { %2220 = vrot.lane.b32.xlu1 %v6321_v41, %s5953_s17 }
 0x3ed   : > { %2194 = vrot.lane.b32.xlu0 %v6317_v36, %s5951_s15 }
 0x3ef   : > { %2232 = vrot.lane.b32.xlu1 %v6321_v41, %s5954_s18 }
 0x3f1   : > { %2206 = vrot.lane.b32.xlu0 %v6317_v36, %s5952_s16 }
 0x3f3   : > { %2226 = vrot.lane.b32.xlu1 %v6321_v41, %s5955_s19 }
 0x3f5   : > { %2218 = vrot.lane.b32.xlu0 %v6317_v36, %s5953_s17 }
 0x3f7   : > { %2238 = vrot.lane.b32.xlu1 %v6321_v41, %s5957_s20 }
 0x3f9   : > { %2230 = vrot.lane.b32.xlu0 %v6317_v36, %s5954_s18 }
 0x3fd   : > { %2224 = vrot.lane.b32.xlu0 %v6317_v36, %s5955_s19 }
 0x400   : > { %v2366_v17 = vpop.trf.xlu0 }
 0x401   : > { %v6629_v18 = vsel %vm2382_vm13, %v2366_v17, 0  ;;  %v2334_v21 = vpop.trf.xlu1  ;;  %2236 = vrot.lane.b32.xlu0 %v6317_v36, %s5957_s20 }
 0x402   : > { %v2384_v23 = vsel %vm2382_vm13, %v2334_v21, 0 }
 0x403   : > { %v6634_v26 = vand.u32 4294901760, %v2384_v23 }
 0x404   : > { %v2367_v30 = vpop.trf.xlu0 }
 0x405   : > { %v6637_v31 = vsub.f32 %v2384_v23, %v6634_v26  ;;  %v6640_v32 = vsel %vm2382_vm13, %v2367_v30, 0  ;;  %v2335_v33 = vpop.trf.xlu1 }
 0x406   : > { %v2387_v22 = vsel %vm2382_vm13, %v2335_v33, 0 }
 0x407   : > { %8804 = vst [vmem:[#allocation12_spill] sm:$0xff] %v6637_v31  ;;  %v8689_v42 = vand.u32 4294901760, %v6637_v31  ;;  %v6645_v24 = vand.u32 4294901760, %v2387_v22 }
 0x408   : > { %v2368_v46 = vpop.trf.xlu0 }
 0x409   : > { %v2559_v47 = vsub.f32 %v6637_v31, %v8689_v42  ;;  %v6652_v50 = vsub.f32 %v2387_v22, %v6645_v24  ;;  %v6655_v39 = vsel %vm2382_vm13, %v2368_v46, 0  ;;  %v2336_v54 = vpop.trf.xlu1 }
 0x40a   : > { %v2390_v57 = vsel %vm2382_vm13, %v2336_v54, 0 }
 0x40b   : > { %8805 = vst [vmem:[#allocation13_spill] sm:$0xff] %v6652_v50  ;;  %v2560_v60 = vand.u32 4294901760, %v2559_v47  ;;  %v8686_v62 = vand.u32 4294901760, %v6652_v50  ;;  %v6662_v13 = vand.u32 4294901760, %v2390_v57 }
 0x40c   : > { %v2369_v14 = vpop.trf.xlu0 }
 0x40d   : > { %v6668_v35 = vsub.f32 %v2390_v57, %v6662_v13  ;;  %v6671_v12 = vsel %vm2382_vm13, %v2369_v14, 0  ;;  %2561 = vmatmul.mubr.f32.vlgmr.msra.gmra.mrb[2].mxu0 %v2560_v60  ;;  %v2337_v19 = vpop.trf.xlu1  ;;  %v2570_v48 = vsub.f32 %v6652_v50, %v8686_v62 }
 0x40e   : > { %5370 = vmatpush1.bf16.msra.mxu0 %v5369_v63  ;;  %v2393_v51 = vsel %vm2382_vm13, %v2337_v19, 0  ;;  %2566 = vmatprep.mubr.f32.mxu0 %v8690_v2 }
 0x40f   : > { %8806 = vst [vmem:[#allocation14_spill] sm:$0xff] %v6668_v35  ;;  %v8684_v53 = vand.u32 4294901760, %v6668_v35  ;;  %v6679_v29 = vand.u32 4294901760, %v2393_v51  ;;  %2937 = vmatprep.subr.mxu0 %v2936_v20  ;;  %v2571_v61 = vand.u32 4294901760, %v2570_v48 }
 0x410   : > { %v2370_v40 = vpop.trf.xlu0 }
 0x411   : > { %v6682_v44 = vsub.f32 %v2393_v51, %v6679_v29  ;;  %v6685_v52 = vsel %vm2382_vm13, %v2370_v40, 0  ;;  %2572 = vmatmul.mubr.f32.gmra.mrb[4].mxu0 %v2571_v61  ;;  %v2338_v55 = vpop.trf.xlu1  ;;  %v2581_v4 = vsub.f32 %v6668_v35, %v8684_v53 }
 0x412   : > { %2943 = vmatpush1.msra.mxu0 %v2942_v59  ;;  %v2396_v6 = vsel %vm2382_vm13, %v2338_v55, 0  ;;  %2577 = vmatprep.mubr.f32.mxu0 %v8690_v2 }
 0x413   : > { %8807 = vst [vmem:[#allocation15_spill] sm:$0xff] %v6682_v44  ;;  %v8682_v7 = vand.u32 4294901760, %v6682_v44  ;;  %v6693_v3 = vand.u32 4294901760, %v2396_v6  ;;  %5372 = vmatprep.subr.bf16.mxu0 %v6575_v37  ;;  %v2582_v8 = vand.u32 4294901760, %v2581_v4 }
 0x414   : > { %v2371_v11 = vpop.trf.xlu0 }
 0x415   : > { %v6697_v15 = vsub.f32 %v2396_v6, %v6693_v3  ;;  %v6700_v16 = vsel %vm2382_vm13, %v2371_v11, 0  ;;  %2583 = vmatmul.mubr.f32.gmra.mrb[6].mxu0 %v2582_v8  ;;  %v2339_v63 = vpop.trf.xlu1  ;;  %v2592_v17 = vsub.f32 %v6682_v44, %v8682_v7 }
 0x416   : > { %v2399_v21 = vsel %vm2382_vm13, %v2339_v63, 0  ;;  %2588 = vmatprep.mubr.f32.mxu0 %v8690_v2 }
 0x417   : > { %8808 = vst [vmem:[#allocation16_spill] sm:$0xff] %v6697_v15  ;;  %v8681_v37 = vand.u32 4294901760, %v6697_v15  ;;  %v6708_v23 = vand.u32 4294901760, %v2399_v21  ;;  %v2593_v30 = vand.u32 4294901760, %v2592_v17 }
 0x418   : > { %v2372_v33 = vpop.trf.xlu0 }
 0x419   : > { %v6711_v22 = vsub.f32 %v2399_v21, %v6708_v23  ;;  %v6714_v46 = vsel %vm2382_vm13, %v2372_v33, 0  ;;  %2594 = vmatmul.mubr.f32.gmra.mrb[8].mxu0 %v2593_v30  ;;  %v2340_v47 = vpop.trf.xlu1  ;;  %v2603_v54 = vsub.f32 %v6697_v15, %v8681_v37 }
 0x41a   : > { %v2402_v56 = vsel %vm2382_vm13, %v2340_v47, 0  ;;  %2599 = vmatprep.mubr.f32.mxu0 %v8690_v2 }
 0x41b   : > { %8809 = vst [vmem:[#allocation17_spill] sm:$0xff] %v6711_v22  ;;  %v8680_v57 = vand.u32 4294901760, %v6711_v22  ;;  %v6722_v60 = vand.u32 4294901760, %v2402_v56  ;;  %v2604_v14 = vand.u32 4294901760, %v2603_v54 }
 0x41c   : > { %v2373_v34 = vpop.trf.xlu0 }
 0x41d   : > { %v6725_v19 = vsub.f32 %v2402_v56, %v6722_v60  ;;  %v6728_v20 = vsel %vm2382_vm13, %v2373_v34, 0  ;;  %2605 = vmatmul.mubr.f32.gmra.mrb[10].mxu0 %v2604_v14  ;;  %v2341_v48 = vpop.trf.xlu1  ;;  %v2614_v51 = vsub.f32 %v6711_v22, %v8680_v57 }
 0x41e   : > { %v2405_v61 = vsel %vm2382_vm13, %v2341_v48, 0  ;;  %2610 = vmatprep.mubr.f32.mxu0 %v8690_v2 }
 0x41f   : > { %8810 = vst [vmem:[#allocation18_spill] sm:$0xff] %v6725_v19  ;;  %v8678_v40 = vand.u32 4294901760, %v6725_v19  ;;  %v6736_v59 = vand.u32 4294901760, %v2405_v61  ;;  %v2615_v55 = vand.u32 4294901760, %v2614_v51 }
 0x420   : > { %v2374_v4 = vpop.trf.xlu0 }
 0x421   : > { %v6739_v6 = vsub.f32 %v2405_v61, %v6736_v59  ;;  %v6742_v8 = vsel %vm2382_vm13, %v2374_v4, 0  ;;  %2616 = vmatmul.mubr.f32.gmra.mrb[12].mxu0 %v2615_v55  ;;  %v2342_v11 = vpop.trf.xlu1  ;;  %v2625_v63 = vsub.f32 %v6725_v19, %v8678_v40 }
 0x422   : > { %v2408_v17 = vsel %vm2382_vm13, %v2342_v11, 0  ;;  %2621 = vmatprep.mubr.f32.mxu0 %v8690_v2 }
 0x423   : > { %v8677_v21 = vand.u32 4294901760, %v6739_v6  ;;  %v6750_v30 = vand.u32 4294901760, %v2408_v17  ;;  %v2626_v33 = vand.u32 4294901760, %v2625_v63 }
 0x424   : > { %v2375_v47 = vpop.trf.xlu0 }
 0x425   : > { %v6753_v54 = vsub.f32 %v2408_v17, %v6750_v30  ;;  %v6756_v56 = vsel %vm2382_vm13, %v2375_v47, 0  ;;  %2627 = vmatmul.mubr.f32.gmra.mrb[14].mxu0 %v2626_v33  ;;  %v2343_v14 = vpop.trf.xlu1  ;;  %v2636_v34 = vsub.f32 %v6739_v6, %v8677_v21 }
 0x426   : > { %v2411_v48 = vsel %vm2382_vm13, %v2343_v14, 0  ;;  %2632 = vmatprep.mubr.f32.mxu0 %v8690_v2 }
 0x427   : > { %v8679_v51 = vand.u32 4294901760, %v6753_v54  ;;  %v6764_v61 = vand.u32 4294901760, %v2411_v48  ;;  %v2637_v55 = vand.u32 4294901760, %v2636_v34 }
 0x428   : > { %v2376_v4 = vpop.trf.xlu0 }
 0x429   : > { %v6767_v11 = vsub.f32 %v2411_v48, %v6764_v61  ;;  %v6770_v63 = vsel %vm2382_vm13, %v2376_v4, 0  ;;  %2638 = vmatmul.mubr.f32.gmra.mrb[16].mxu0 %v2637_v55  ;;  %v2344_v17 = vpop.trf.xlu1  ;;  %v2647_v33 = vsub.f32 %v6753_v54, %v8679_v51 }
 0x42a   : > { %v2414_v47 = vsel %vm2382_vm13, %v2344_v17, 0  ;;  %2643 = vmatprep.mubr.f32.mxu0 %v8690_v2 }
 0x42b   : > { %v8683_v14 = vand.u32 4294901760, %v6767_v11  ;;  %v6778_v34 = vand.u32 4294901760, %v2414_v47  ;;  %v2648_v21 = vand.u32 4294901760, %v2647_v33 }
 0x42c   : > { %v2377_v48 = vpop.trf.xlu0 }
 0x42d   : > { %v6781_v40 = vsub.f32 %v2414_v47, %v6778_v34  ;;  %v2465_v55 = vsel %vm2382_vm13, %v2377_v48, 0  ;;  %2649 = vmatmul.mubr.f32.gmra.mrb[18].mxu0 %v2648_v21  ;;  %v2345_v4 = vpop.trf.xlu1  ;;  %v2658_v51 = vsub.f32 %v6767_v11, %v8683_v14 }
 0x42e   : > { %v6787_v17 = vand.u32 4294901760, %v2465_v55  ;;  %v2417_v57 = vsel %vm2382_vm13, %v2345_v4, 0  ;;  %2654 = vmatprep.mubr.f32.mxu0 %v8690_v2 }
 0x42f   : > { %v8687_v33 = vand.u32 4294901760, %v6781_v40  ;;  %v6792_v37 = vand.u32 4294901760, %v2417_v57  ;;  %v2659_v47 = vand.u32 4294901760, %v2658_v51 }
 0x430   : > { %8811 = vst [vmem:[#allocation19_spill] sm:$0xff] %v6787_v17  ;;  %v6795_v7 = vsub.f32 %v2465_v55, %v6787_v17  ;;  %v2378_v21 = vpop.trf.xlu0 }
 0x431   : > { %v6798_v48 = vsub.f32 %v2417_v57, %v6792_v37  ;;  %v2468_v14 = vsel %vm2382_vm13, %v2378_v21, 0  ;;  %2660 = vmatmul.mubr.f32.gmra.mrb[20].mxu0 %v2659_v47  ;;  %v2346_v53 = vpop.trf.xlu1  ;;  %v2669_v4 = vsub.f32 %v6781_v40, %v8687_v33 }
 0x432   : > { %v6804_v49 = vand.u32 4294901760, %v2468_v14  ;;  %v2420_v62 = vsel %vm2382_vm13, %v2346_v53, 0  ;;  %3522 = vmatmul.mubr.f32.vlgmr.msra.gmra.mrb[4].mxu1 %v6795_v7  ;;  %2665 = vmatprep.mubr.f32.mxu0 %v8690_v2 }
 0x433   : > { %v8693_v51 = vand.u32 4294901760, %v6798_v48  ;;  %v6810_v57 = vand.u32 4294901760, %v2420_v62  ;;  %5378 = vmatpush1.bf16.msra.mxu1 %v6568_v25  ;;  %v2670_v55 = vand.u32 4294901760, %v2669_v4  ;;  %3527 = vmatprep.mubr.f32.mxu1 %v8690_v2  ;;  %v6869_v25 = vand.u32 4294901760, %v6640_v32 }
 0x434   : > { %8812 = vst [vmem:[#allocation20_spill] sm:$0xff] %v6804_v49  ;;  %v6815_v47 = vsub.f32 %v2468_v14, %v6804_v49  ;;  %3569 = vmatprep.subr.mxu1 %v6565_v45  ;;  %v2379_v21 = vpop.trf.xlu0  ;;  %v8814_v14 = vmov 0.0  }
 0x435   : > { %v6819_v53 = vsub.f32 %v2420_v62, %v6810_v57  ;;  %v2471_v33 = vsel %vm2382_vm13, %v2379_v21, 0  ;;  %2671 = vmatmul.mubr.f32.gmra.mrb[22].mxu0 %v2670_v55  ;;  %v2347_v38 = vpop.trf.xlu1  ;;  %v2680_v42 = vsub.f32 %v6798_v48, %v8693_v51 }
 0x436   : > { %v6825_v4 = vand.u32 4294901760, %v2471_v33  ;;  %v2423_v2 = vsel %vm2382_vm13, %v2347_v38, 0  ;;  %3530 = vmatmul.mubr.f32.gmra.mrb[6].mxu1 %v6815_v47  ;;  %2676 = vmatprep.mubr.f32.mxu0 %v8814_v14 }
 0x437   : > { %v6831_v62 = vand.u32 4294901760, %v2423_v2  ;;  %3571 = vmatpush1.msra.mxu1 %v6577_v43  ;;  %v2681_v55 = vand.u32 4294901760, %v2680_v42  ;;  %3535 = vmatprep.mubr.f32.mxu1 %v8814_v14  ;;  %v8815_v41 = vand.u32 4294901760, %v6819_v53 }
 0x438   : > { %8813 = vst [vmem:[#allocation21_spill] sm:$0xff] %v6825_v4  ;;  %v6836_v21 = vsub.f32 %v2471_v33, %v6825_v4  ;;  %5380 = vmatprep.subr.bf16.mxu1 %v6585_v5  ;;  %v2380_v51 = vpop.trf.xlu0  ;;  %v6852_v5 = vand.u32 4294901760, %v6629_v18 }
 0x439   : > { %v6840_v38 = vsub.f32 %v2423_v2, %v6831_v62  ;;  %v2474_v36 = vsel %vm2382_vm13, %v2380_v51, 0  ;;  %2682 = vmatmul.mubr.f32.gmra.mrb[24].mxu0 %v2681_v55  ;;  %v2348_v1 = vpop.trf.xlu1  ;;  %v2691_v49 = vsub.f32 %v6819_v53, %v8815_v41 }
 0x43a   : > { %v6846_v42 = vand.u32 4294901760, %v2474_v36  ;;  %v2426_v17 = vsel %vm2382_vm13, %v2348_v1, 0  ;;  %3538 = vmatmul.mubr.f32.gmra.mrb[8].mxu1 %v6836_v21  ;;  %2687 = vmatprep.mubr.f32.mxu0 %v8814_v14 }
 0x43b   : > { %v8705_v2 = vand.u32 4294901760, %v6840_v38  ;;  %v6855_v33 = vand.u32 4294901760, %v2426_v17  ;;  %v2692_v51 = vand.u32 4294901760, %v2691_v49  ;;  %3543 = vmatprep.mubr.f32.mxu1 %v8814_v14 }
 0x43c   : > { %8816 = vst [vmem:[#allocation22_spill] sm:$0xff] %v6846_v42  ;;  %v6859_v41 = vsub.f32 %v2474_v36, %v6846_v42  ;;  %v2381_v55 = vpop.trf.xlu0 }
 0x43d   : > { %8817 = vst [vmem:[#allocation23_spill] sm:$0xff] %v6855_v33  ;;  %v6862_v1 = vsub.f32 %v2426_v17, %v6855_v33  ;;  %v2477_v4 = vsel %vm2382_vm13, %v2381_v55, 0  ;;  %2693 = vmatmul.mubr.f32.gmra.mrb[26].mxu0 %v2692_v51  ;;  %v2349_v43 = vpop.trf.xlu1  ;;  %v2702_v45 = vsub.f32 %v6840_v38, %v8705_v2  ;;  %v6878_v17 = vsub.f32 %v6629_v18, %v6852_v5 }
 0x43e   : > { %v6871_v49 = vand.u32 4294901760, %v2477_v4  ;;  %v2429_v36 = vsel %vm2382_vm13, %v2349_v43, 0  ;;  %3546 = vmatmul.mubr.f32.gmra.mrb[10].mxu1 %v6859_v41  ;;  %2698 = vmatprep.mubr.f32.mxu0 %v8814_v14  ;;  %v6895_v18 = vsub.f32 %v6640_v32, %v6869_v25 }
 0x43f   : > { %v8710_v51 = vand.u32 4294901760, %v6862_v1  ;;  %v6881_v55 = vand.u32 4294901760, %v2429_v36  ;;  %v2703_v2 = vand.u32 4294901760, %v2702_v45  ;;  %3551 = vmatprep.mubr.f32.mxu1 %v8814_v14 }
 0x440   : > { %8818 = vst [vmem:[#allocation24_spill] sm:$0xff] %v6871_v49  ;;  %v6885_v42 = vsub.f32 %v2477_v4, %v6871_v49  ;;  %v6901_v4 = vand.u32 4294901760, %v6655_v39  ;;  %v8820_v49 = vand.u32 4294901760, %v6637_v31  ;;  %v8823_v31 = vand.u32 4294901760, %v6652_v50 }
 0x441   : > { %v6888_v43 = vsub.f32 %v2429_v36, %v6881_v55  ;;  %2704 = vmatmul.mubr.f32.gmra.mrb[28].mxu0 %v2703_v2  ;;  %v2713_v33 = vsub.f32 %v6862_v1, %v8710_v51 }
 0x442   : > { %3554 = vmatmul.mubr.f32.gmra.mrb[12].mxu1 %v6885_v42  ;;  %2709 = vmatprep.mubr.f32.mxu0 %v8814_v14  ;;  %8819 = vst [vmem:[#allocation25_spill] sm:$0xff] %v6901_v4  ;;  %v6914_v45 = vsub.f32 %v6655_v39, %v6901_v4  ;;  %v8824_v39 = vand.u32 4294901760, %v6895_v18 }
 0x443   : > { %v8713_v36 = vand.u32 4294901760, %v6888_v43  ;;  %v2714_v2 = vand.u32 4294901760, %v2713_v33  ;;  %3630 = vmatprep.mubr.f32.mxu1 %v8814_v14  ;;  %v6917_v33 = vand.u32 4294901760, %v6671_v12 }
 0x445   : > { %2715 = vmatmul.mubr.f32.gmra.mrb[30].mxu0 %v2714_v2  ;;  %v2724_v32 = vsub.f32 %v6888_v43, %v8713_v36  ;;  %v8821_v36 = vand.u32 4294901760, %v6878_v17  ;;  %v6935_v4 = vsub.f32 %v6671_v12, %v6917_v33 }
 0x446   : > { %3634 = vmatmul.mubr.f32.vlgmr.msra.gmra.mrb[14].mxu1 %v8820_v49  ;;  %2720 = vmatprep.mubr.f32.mxu0 %v8814_v14  ;;  %v8822_v49 = vand.u32 4294901760, %v6582_v58 }
 0x447   : > { %5382 = vmatpush1.bf16.msra.mxu1 %v6590_v9  ;;  %v2725_v2 = vand.u32 4294901760, %v2724_v32  ;;  %3639 = vmatprep.mubr.f32.mxu1 %v8814_v14  ;;  %v2735_v51 = vsub.f32 %v6878_v17, %v8821_v36  ;;  %v2746_v9 = vsub.f32 %v6895_v18, %v8824_v39  ;;  %v6938_v36 = vand.u32 4294901760, %v6685_v52 }
 0x448   : > { %3938 = vmatprep.subr.mxu1 %v8822_v49 }
 0x449   : > { %2726 = vmatmul.mubr.f32.gmra.mrb[32].mxu0 %v2725_v2  ;;  %v8825_v2 = vand.u32 4294901760, %v6593_v10  ;;  %v2736_v49 = vand.u32 4294901760, %v2735_v51  ;;  %v2747_v39 = vand.u32 4294901760, %v2746_v9  ;;  %v6950_v32 = vsub.f32 %v6685_v52, %v6938_v36 }
 0x44a   : > { %3643 = vmatmul.mubr.f32.gmra.mrb[16].mxu1 %v8823_v31  ;;  %2731 = vmatprep.mubr.f32.mxu0 %v8814_v14  ;;  %v8826_v31 = vand.u32 4294901760, %v6668_v35  ;;  %v6962_v9 = vand.u32 4294901760, %v6714_v46  ;;  %v8834_v52 = vand.u32 4294901760, %v6697_v15 }
 0x44b   : > { %3942 = vmatpush1.msra.mxu1 %v8825_v2  ;;  %3648 = vmatprep.mubr.f32.mxu1 %v8814_v14  ;;  %v6953_v2 = vand.u32 4294901760, %v6700_v16 }
 0x44c   : > { %5384 = vmatprep.subr.bf16.mxu1 %v6563_v0  ;;  %v8828_v0 = vand.u32 4294901760, %v6914_v45  ;;  %8830 = vst [vmem:[#allocation28_spill] sm:$0xff] %v6962_v9 }
 0x44d   : > { %2737 = vmatmul.mubr.f32.gmra.mrb[34].mxu0 %v2736_v49  ;;  %8827 = vst [vmem:[#allocation26_spill] sm:$0xff] %v6953_v2  ;;  %v6959_v49 = vpop.permute.xlu1 %2202  ;;  %v6970_v12 = vsub.f32 %v6700_v16, %v6953_v2 }
 0x44e   : > { %3652 = vmatmul.mubr.f32.gmra.mrb[18].mxu1 %v8826_v31  ;;  %2742 = vmatprep.mubr.f32.mxu0 %v8814_v14  ;;  %v2757_v51 = vsub.f32 %v6914_v45, %v8828_v0  ;;  %8829 = vst [vmem:[#allocation27_spill] sm:$0xff] %v6959_v49  ;;  %v8831_v31 = vand.u32 4294901760, %v6682_v44  ;;  %v8832_v0 = vand.u32 4294901760, %v6935_v4  ;;  %v6978_v44 = vsub.f32 %v6714_v46, %v6962_v9 }
 0x44f   : > { %3657 = vmatprep.mubr.f32.mxu1 %v8814_v14  ;;  %v7008_v9 = vand.u32 4294901760, %v6742_v8 }
 0x450   : > { %v2758_v35 = vand.u32 4294901760, %v2757_v51 }
 0x451   : > { %2748 = vmatmul.mubr.f32.gmra.mrb[36].mxu0 %v2747_v39  ;;  %v2768_v39 = vsub.f32 %v6935_v4, %v8832_v0  ;;  %v6987_v51 = vpop.permute.xlu1 %2214  ;;  %8839 = vst [vmem:[#allocation32_spill] sm:$0xff] %v7008_v9 }
 0x452   : > { %3661 = vmatmul.mubr.f32.gmra.mrb[20].mxu1 %v8831_v31  ;;  %2753 = vmatprep.mubr.f32.mxu0 %v8814_v14  ;;  %v6981_v31 = vand.u32 4294901760, %v6728_v20  ;;  %8835 = vst [vmem:[#allocation30_spill] sm:$0xff] %v6987_v51 }
 0x453   : > { %3666 = vmatprep.mubr.f32.mxu1 %v8814_v14  ;;  %v2769_v0 = vand.u32 4294901760, %v2768_v39  ;;  %v8838_v39 = vand.u32 4294901760, %v6711_v22 }
 0x454   : > { %8833 = vst [vmem:[#allocation29_spill] sm:$0xff] %v6981_v31  ;;  %v7002_v16 = vsub.f32 %v6728_v20, %v6981_v31 }
 0x455   : > { %2759 = vmatmul.mubr.f32.gmra.mrb[38].mxu0 %v2758_v35  ;;  %v8837_v35 = vand.u32 4294901760, %v6950_v32 }
 0x456   : > { %3670 = vmatmul.mubr.f32.gmra.mrb[22].mxu1 %v8834_v52  ;;  %2764 = vmatprep.mubr.f32.mxu0 %v8814_v14 }
 0x457   : > { %v6989_v50 = vpop.permute.xlu0 %2200  ;;  %3675 = vmatprep.mubr.f32.mxu1 %v8814_v14  ;;  %v2779_v46 = vsub.f32 %v6950_v32, %v8837_v35 }
 0x458   : > { %8836 = vst [vmem:[#allocation31_spill] sm:$0xff] %v6989_v50  ;;  %v2205_v52 = vsel %vm326_vm4, %v6959_v49, %v6989_v50  ;;  %v8843_v49 = vand.u32 4294901760, %v6725_v19 }
 0x459   : > { %2770 = vmatmul.mubr.f32.gmra.mrb[40].mxu0 %v2769_v0  ;;  %v2780_v2 = vand.u32 4294901760, %v2779_v46  ;;  %v8841_v0 = vand.u32 4294901760, %v6970_v12  ;;  %v8844_v46 = vand.u32 4294901760, %v6978_v44 }
 0x45a   : > { %3679 = vmatmul.mubr.f32.gmra.mrb[24].mxu1 %v8838_v39  ;;  %2775 = vmatprep.mubr.f32.mxu0 %v8814_v14  ;;  %v7020_v39 = vpop.permute.xlu1 %2196 }
 0x45b   : > { %v7010_v35 = vpop.permute.xlu0 %2212  ;;  %3684 = vmatprep.mubr.f32.mxu1 %v8814_v14  ;;  %v2790_v15 = vsub.f32 %v6970_v12, %v8841_v0  ;;  %8842 = vst [vmem:[#allocation34_spill] sm:$0xff] %v7020_v39  ;;  %v2801_v22 = vsub.f32 %v6978_v44, %v8844_v46  ;;  %v7031_v0 = vsub.f32 %v6742_v8, %v7008_v9  ;;  %v8846_v8 = vand.u32 4294901760, %v6739_v6 }
 0x45c   : > { %8840 = vst [vmem:[#allocation33_spill] sm:$0xff] %v7010_v35  ;;  %v2217_v20 = vsel %vm340_vm3, %v6987_v51, %v7010_v35  ;;  %v7034_v35 = vand.u32 4294901760, %v6756_v56  ;;  %v2244_v51 = vrot.slane %v2205_v52, 4  ;;  %v8847_v52 = vand.u32 4294901760, %v7002_v16 }
 0x45d   : > { %2781 = vmatmul.mubr.f32.gmra.mrb[42].mxu0 %v2780_v2  ;;  %v2791_v50 = vand.u32 4294901760, %v2790_v15  ;;  %v2802_v19 = vand.u32 4294901760, %v2801_v22 }
 0x45e   : > { %3688 = vmatmul.mubr.f32.gmra.mrb[26].mxu1 %v8843_v49  ;;  %2786 = vmatprep.mubr.f32.mxu0 %v8814_v14  ;;  %v2812_v15 = vsub.f32 %v7002_v16, %v8847_v52  ;;  %v7053_v31 = vsub.f32 %v6756_v56, %v7034_v35  ;;  %v5906_v56 = vld [vmem:[%s8673_s4] sm:$0xff] }
 0x45f   : > { %v7036_v2 = vpop.permute.xlu0 %2194  ;;  %3693 = vmatprep.mubr.f32.mxu1 %v8814_v14 }
 0x460   : > { %8845 = vst [vmem:[#allocation35_spill] sm:$0xff] %v7036_v2  ;;  %v2199_v49 = vsel %vm319_vm5, %v7020_v39, %v7036_v2  ;;  %v7056_v2 = vand.u32 4294901760, %v6770_v63  ;;  %v8850_v39 = vand.u32 4294901760, %v6753_v54 }
 0x461   : > { %v2266_v46 = vsel %vm395_vm0, %v2199_v49, %v2244_v51  ;;  %2792 = vmatmul.mubr.f32.gmra.mrb[44].mxu0 %v2791_v50  ;;  %v7058_v50 = vpop.permute.xlu1 %2208  ;;  %v2250_v51 = vrot.slane %v2217_v20, 4  ;;  %v5907_v20 = vld [vmem:[%s8673_s4 + $0x10] sm:$0xff] }
 0x462   : > { %3697 = vmatmul.mubr.f32.gmra.mrb[28].mxu1 %v8846_v8  ;;  %2797 = vmatprep.mubr.f32.mxu0 %v8814_v14  ;;  %v7071_v52 = vmul.f32 %v5906_v56, %v2266_v46  ;;  %v8851_v46 = vand.u32 4294901760, %v7031_v0 }
 0x463   : > { %v7060_v49 = vpop.permute.xlu0 %2206  ;;  %3702 = vmatprep.mubr.f32.mxu1 %v8814_v14 }
 0x464   : > { %v2211_v22 = vsel %vm333_vm7, %v7058_v50, %v7060_v49  ;;  %8848 = vst [vmem:[#allocation36_spill] sm:$0xff] %v7071_v52  ;;  %v2823_v56 = vsub.f32 %v7031_v0, %v8851_v46  ;;  %v8853_v46 = vand.u32 4294901760, %v6781_v40 }
 0x465   : > { %v2268_v8 = vsel %vm395_vm0, %v2211_v22, %v2250_v51  ;;  %2803 = vmatmul.mubr.f32.gmra.mrb[46].mxu0 %v2802_v19  ;;  %v8737_v51 = vand.u32 4294901760, %v7053_v31  ;;  %v7084_v19 = vsub.f32 %v6770_v63, %v7056_v2  ;;  %v2813_v22 = vand.u32 4294901760, %v2812_v15 }
 0x466   : > { %v7076_v9 = vmul.f32 %v5907_v20, %v2268_v8  ;;  %3706 = vmatmul.mubr.f32.gmra.mrb[30].mxu1 %v8850_v39  ;;  %2808 = vmatprep.mubr.f32.mxu0 %v8814_v14  ;;  %v8852_v39 = vand.u32 4294901760, %v6767_v11  ;;  %v2824_v63 = vand.u32 4294901760, %v2823_v56  ;;  %v8854_v8 = vand.u32 4294901760, %v6798_v48 }
 0x467   : > { %3711 = vmatprep.mubr.f32.mxu1 %v8814_v14  ;;  %v8738_v20 = vand.u32 4294901760, %v7084_v19  ;;  %v2834_v15 = vsub.f32 %v7053_v31, %v8737_v51  ;;  %v8855_v51 = vand.u32 4294901760, %v6819_v53 }
 0x468   : > { %8849 = vst [vmem:[#allocation37_spill] sm:$0xff] %v7076_v9 }
 0x469   : > { %2814 = vmatmul.mubr.f32.gmra.mrb[48].mxu0 %v2813_v22  ;;  %v8739_v22 = vand.u32 4294901760, %v6795_v7  ;;  %v2845_v56 = vsub.f32 %v7084_v19, %v8738_v20  ;;  %v8856_v20 = vand.u32 4294901760, %v6840_v38 }
 0x46a   : > { %3715 = vmatmul.mubr.f32.gmra.mrb[32].mxu1 %v8852_v39  ;;  %2819 = vmatprep.mubr.f32.mxu0 %v8814_v14  ;;  %v2835_v39 = vand.u32 4294901760, %v2834_v15 }
 0x46b   : > { %3720 = vmatprep.mubr.f32.mxu1 %v8814_v14  ;;  %v2856_v15 = vsub.f32 %v6795_v7, %v8739_v22  ;;  %v8857_v22 = vand.u32 4294901760, %v6862_v1 }
 0x46d   : > { %2825 = vmatmul.mubr.f32.gmra.mrb[50].mxu0 %v2824_v63  ;;  %v8740_v63 = vand.u32 4294901760, %v6815_v47 }
 0x46e   : > { %3724 = vmatmul.mubr.f32.gmra.mrb[34].mxu1 %v8853_v46  ;;  %2830 = vmatprep.mubr.f32.mxu0 %v8814_v14  ;;  %v2846_v46 = vand.u32 4294901760, %v2845_v56 }
 0x46f   : > { %3729 = vmatprep.mubr.f32.mxu1 %v8814_v14  ;;  %v2867_v56 = vsub.f32 %v6815_v47, %v8740_v63  ;;  %v8858_v63 = vand.u32 4294901760, %v6888_v43 }
 0x471   : > { %2836 = vmatmul.mubr.f32.gmra.mrb[52].mxu0 %v2835_v39  ;;  %v2877_v39 = vand.u32 4294901760, %v6836_v21 }
 0x472   : > { %3733 = vmatmul.mubr.f32.gmra.mrb[36].mxu1 %v8854_v8  ;;  %2841 = vmatprep.mubr.f32.mxu0 %v8814_v14  ;;  %v2857_v8 = vand.u32 4294901760, %v2856_v15 }
 0x473   : > { %3738 = vmatprep.mubr.f32.mxu1 %v8814_v14  ;;  %v2878_v15 = vsub.f32 %v6836_v21, %v2877_v39  ;;  %v8874_v21 = vld [vmem:[#allocation10_spill] sm:$0xff] }
 0x475   : > { %2847 = vmatmul.mubr.f32.gmra.mrb[54].mxu0 %v2846_v46  ;;  %v8741_v46 = vand.u32 4294901760, %v6859_v41 }
 0x476   : > { %3742 = vmatmul.mubr.f32.gmra.mrb[38].mxu1 %v8855_v51  ;;  %2852 = vmatprep.mubr.f32.mxu0 %v8814_v14  ;;  %v2868_v51 = vand.u32 4294901760, %v2867_v56 }
 0x477   : > { %3747 = vmatprep.mubr.f32.mxu1 %v8814_v14  ;;  %v2889_v56 = vsub.f32 %v6859_v41, %v8741_v46 }
 0x479   : > { %2858 = vmatmul.mubr.f32.gmra.mrb[56].mxu0 %v2857_v8  ;;  %v2899_v8 = vand.u32 4294901760, %v6885_v42 }
 0x47a   : > { %3751 = vmatmul.mubr.f32.gmra.mrb[40].mxu1 %v8856_v20  ;;  %2863 = vmatprep.mubr.f32.mxu0 %v8814_v14  ;;  %v2879_v20 = vand.u32 4294901760, %v2878_v15  ;;  %v8859_v15 = vand.u32 4294901760, %v6878_v17 }
 0x47b   : > { %3756 = vmatprep.mubr.f32.mxu1 %v8814_v14 }
 0x47d   : > { %2869 = vmatmul.mubr.f32.gmra.mrb[58].mxu0 %v2868_v51  ;;  %v2890_v51 = vand.u32 4294901760, %v2889_v56  ;;  %v8866_v56 = vand.u32 4294901760, %v7002_v16 }
 0x47e   : > { %3760 = vmatmul.mubr.f32.gmra.mrb[42].mxu1 %v8857_v22  ;;  %2874 = vmatprep.mubr.f32.mxu0 %v8814_v14  ;;  %v2900_v22 = vsub.f32 %v6885_v42, %v2899_v8  ;;  %v8876_v42 = vld [vmem:[#allocation11_spill] sm:$0xff] }
 0x47f   : > { %3765 = vmatprep.mubr.f32.mxu1 %v8814_v14 }
 0x480   : > { %v2901_v46 = vand.u32 4294901760, %v2900_v22  ;;  %v8868_v22 = vand.u32 4294901760, %v7053_v31 }
 0x481   : > { %2880 = vmatmul.mubr.f32.gmra.mrb[60].mxu0 %v2879_v20  ;;  %v8861_v20 = vand.u32 4294901760, %v6914_v45 }
 0x482   : > { %3769 = vmatmul.mubr.f32.gmra.mrb[44].mxu1 %v8858_v63  ;;  %2885 = vmatprep.mubr.f32.mxu0 %v8814_v14  ;;  %v8860_v63 = vand.u32 4294901760, %v6895_v18 }
 0x483   : > { %3774 = vmatprep.mubr.f32.mxu1 %v8814_v14 }
 0x485   : > { %2891 = vmatmul.mubr.f32.gmra.mrb[62].mxu0 %v2890_v51  ;;  %v8867_v51 = vand.u32 4294901760, %v7031_v0 }
 0x486   : > { %3778 = vmatmul.mubr.f32.gmra.mrb[46].mxu1 %v8859_v15  ;;  %2896 = vmatprep.mubr.f32.mxu0 %v8814_v14  ;;  %v8869_v15 = vand.u32 4294901760, %v7084_v19 }
 0x487   : > { %3783 = vmatprep.mubr.f32.mxu1 %v8814_v14 }
 0x489   : > { %2902 = vmatmul.mubr.f32.gmra.mrb[64].mxu0 %v2901_v46  ;;  %v8862_v46 = vand.u32 4294901760, %v6935_v4 }
 0x48a   : > { %3787 = vmatmul.mubr.f32.gmra.mrb[48].mxu1 %v8860_v63  ;;  %3002 = vmatprep.mubr.f32.mxu0 %v8814_v14  ;;  %v8870_v63 = vand.u32 4294901760, %v6795_v7  ;;  %v8872_v7 = vand.u32 4294901760, %v6859_v41  ;;  %v8875_v41 = vld [vmem:[#allocation9_spill] sm:$0xff] }
 0x48b   : > { %3792 = vmatprep.mubr.f32.mxu1 %v8814_v14 }
 0x48d   : > { %3004 = vmatmul.mubr.f32.vlgmr.msra.gmra.mrb[2].mxu0 %v6634_v26 }
 0x48e   : > { %5374 = vmatpush1.bf16.msra.mxu0 %v6572_v28  ;;  %3796 = vmatmul.mubr.f32.gmra.mrb[50].mxu1 %v8861_v20  ;;  %v8863_v28 = vand.u32 4294901760, %v6950_v32  ;;  %v8871_v20 = vand.u32 4294901760, %v6815_v47  ;;  %v8873_v47 = vld [vmem:[#allocation23_spill] sm:$0xff] }
 0x48f   : > { %3241 = vmatprep.subr.mxu0 %v6582_v58  ;;  %3009 = vmatprep.mubr.f32.mxu0 %v8814_v14  ;;  %v8864_v58 = vand.u32 4294901760, %v6970_v12 }
 0x490   : > { %3801 = vmatprep.mubr.f32.mxu1 %v8814_v14 }
 0x491   : > { %3011 = vmatmul.mubr.f32.gmra.mrb[4].mxu0 %v6645_v24 }
 0x492   : > { %3244 = vmatpush1.msra.mxu0 %v6593_v10  ;;  %3805 = vmatmul.mubr.f32.gmra.mrb[52].mxu1 %v8862_v46  ;;  %v8865_v10 = vand.u32 4294901760, %v6978_v44  ;;  %v8879_v46 = vld [vmem:[#allocation28_spill] sm:$0xff] }
 0x493   : > { %3016 = vmatprep.mubr.f32.mxu0 %v8814_v14  ;;  %3810 = vmatprep.mubr.f32.mxu1 %v8814_v14 }
 0x495   : > { %3018 = vmatmul.mubr.f32.gmra.mrb[6].mxu0 %v6662_v13 }
 0x496   : > { %3814 = vmatmul.mubr.f32.gmra.mrb[54].mxu1 %v8863_v28  ;;  %3023 = vmatprep.mubr.f32.mxu0 %v8814_v14  ;;  %v8880_v28 = vld [vmem:[#allocation29_spill] sm:$0xff] }
 0x497   : > { %3819 = vmatprep.mubr.f32.mxu1 %v8814_v14 }
 0x499   : > { %3025 = vmatmul.mubr.f32.gmra.mrb[8].mxu0 %v6679_v29 }
 0x49a   : > { %3823 = vmatmul.mubr.f32.gmra.mrb[56].mxu1 %v8864_v58  ;;  %3030 = vmatprep.mubr.f32.mxu0 %v8814_v14  ;;  %v8881_v58 = vld [vmem:[#allocation32_spill] sm:$0xff] }
 0x49b   : > { %3828 = vmatprep.mubr.f32.mxu1 %v8814_v14 }
 0x49d   : > { %3032 = vmatmul.mubr.f32.gmra.mrb[10].mxu0 %v6693_v3 }
 0x49e   : > { %3832 = vmatmul.mubr.f32.gmra.mrb[58].mxu1 %v8865_v10  ;;  %3037 = vmatprep.mubr.f32.mxu0 %v8814_v14  ;;  %v8882_v10 = vld [vmem:[#allocation19_spill] sm:$0xff] }
 0x49f   : > { %3837 = vmatprep.mubr.f32.mxu1 %v8814_v14 }
 0x4a1   : > { %3039 = vmatmul.mubr.f32.gmra.mrb[12].mxu0 %v6708_v23 }
 0x4a2   : > { %3841 = vmatmul.mubr.f32.gmra.mrb[60].mxu1 %v8866_v56  ;;  %3044 = vmatprep.mubr.f32.mxu0 %v8814_v14  ;;  %v8883_v56 = vld [vmem:[#allocation20_spill] sm:$0xff] }
 0x4a3   : > { %3846 = vmatprep.mubr.f32.mxu1 %v8814_v14 }
 0x4a5   : > { %3046 = vmatmul.mubr.f32.gmra.mrb[14].mxu0 %v6722_v60 }
 0x4a6   : > { %3850 = vmatmul.mubr.f32.gmra.mrb[62].mxu1 %v8867_v51  ;;  %3051 = vmatprep.mubr.f32.mxu0 %v8814_v14  ;;  %v8884_v51 = vld [vmem:[#allocation21_spill] sm:$0xff] }
 0x4a7   : > { %3855 = vmatprep.mubr.f32.mxu1 %v8814_v14 }
 0x4a9   : > { %3053 = vmatmul.mubr.f32.gmra.mrb[16].mxu0 %v6736_v59 }
 0x4aa   : > { %3859 = vmatmul.mubr.f32.gmra.mrb[64].mxu1 %v8868_v22  ;;  %3058 = vmatprep.mubr.f32.mxu0 %v8814_v14  ;;  %v8885_v22 = vld [vmem:[#allocation22_spill] sm:$0xff] }
 0x4ab   : > { %3864 = vmatprep.mubr.f32.mxu1 %v8814_v14 }
 0x4ad   : > { %3060 = vmatmul.mubr.f32.gmra.mrb[18].mxu0 %v6750_v30 }
 0x4ae   : > { %3868 = vmatmul.mubr.f32.gmra.mrb[66].mxu1 %v8869_v15  ;;  %3065 = vmatprep.mubr.f32.mxu0 %v8814_v14  ;;  %v8886_v15 = vld [vmem:[#allocation24_spill] sm:$0xff] }
 0x4af   : > { %3873 = vmatprep.mubr.f32.mxu1 %v8814_v14 }
 0x4b1   : > { %3067 = vmatmul.mubr.f32.gmra.mrb[20].mxu0 %v6764_v61 }
 0x4b2   : > { %3877 = vmatmul.mubr.f32.gmra.mrb[4].mxu1 %v8870_v63  ;;  %3072 = vmatprep.mubr.f32.mxu0 %v8814_v14  ;;  %v8887_v63 = vld [vmem:[#allocation12_spill] sm:$0xff] }
 0x4b3   : > { %3882 = vmatprep.mubr.f32.mxu1 %v8814_v14 }
 0x4b5   : > { %3074 = vmatmul.mubr.f32.gmra.mrb[22].mxu0 %v6778_v34 }
 0x4b6   : > { %3886 = vmatmul.mubr.f32.gmra.mrb[6].mxu1 %v8871_v20  ;;  %3079 = vmatprep.mubr.f32.mxu0 %v8814_v14  ;;  %v8888_v20 = vld [vmem:[#allocation13_spill] sm:$0xff] }
 0x4b7   : > { %3891 = vmatprep.mubr.f32.mxu1 %v8814_v14 }
 0x4b9   : > { %3081 = vmatmul.mubr.f32.gmra.mrb[24].mxu0 %v6792_v37 }
 0x4ba   : > { %3895 = vmatmul.mubr.f32.gmra.mrb[8].mxu1 %v2877_v39  ;;  %3086 = vmatprep.mubr.f32.mxu0 %v8814_v14  ;;  %v8877_v39 = vld [vmem:[#allocation25_spill] sm:$0xff] }
 0x4bb   : > { %3900 = vmatprep.mubr.f32.mxu1 %v8814_v14 }
 0x4bd   : > { %3088 = vmatmul.mubr.f32.gmra.mrb[26].mxu0 %v6810_v57 }
 0x4be   : > { %3904 = vmatmul.mubr.f32.gmra.mrb[10].mxu1 %v8872_v7  ;;  %3093 = vmatprep.mubr.f32.mxu0 %v8814_v14  ;;  %v8889_v7 = vld [vmem:[#allocation14_spill] sm:$0xff] }
 0x4bf   : > { %3909 = vmatprep.mubr.f32.mxu1 %v8814_v14 }
 0x4c1   : > { %3095 = vmatmul.mubr.f32.gmra.mrb[28].mxu0 %v6831_v62 }
 0x4c2   : > { %3913 = vmatmul.mubr.f32.gmra.mrb[12].mxu1 %v2899_v8  ;;  %3100 = vmatprep.mubr.f32.mxu0 %v8814_v14  ;;  %v8878_v8 = vld [vmem:[#allocation26_spill] sm:$0xff] }
 0x4c3   : > { %4001 = vmatprep.mubr.f32.mxu1 %v8814_v14 }
 0x4c5   : > { %3102 = vmatmul.mubr.f32.gmra.mrb[30].mxu0 %v8873_v47 }
 0x4c6   : > { %4003 = vmatmul.mubr.f32.vlgmr.msra.gmra.mrb[14].mxu1 %v6634_v26  ;;  %3107 = vmatprep.mubr.f32.mxu0 %v8814_v14 }
 0x4c7   : > { %5386 = vmatpush1.bf16.msra.mxu1 %v8874_v21  ;;  %4008 = vmatprep.mubr.f32.mxu1 %v8814_v14  ;;  %v8890_v21 = vld [vmem:[#allocation15_spill] sm:$0xff] }
 0x4c8   : > { %4235 = vmatprep.subr.mxu1 %v8875_v41  ;;  %v8891_v41 = vld [vmem:[#allocation16_spill] sm:$0xff] }
 0x4c9   : > { %3109 = vmatmul.mubr.f32.gmra.mrb[32].mxu0 %v6881_v55 }
 0x4ca   : > { %4010 = vmatmul.mubr.f32.gmra.mrb[16].mxu1 %v6645_v24  ;;  %3114 = vmatprep.mubr.f32.mxu0 %v8814_v14 }
 0x4cb   : > { %4237 = vmatpush1.msra.mxu1 %v8876_v42  ;;  %4015 = vmatprep.mubr.f32.mxu1 %v8814_v14  ;;  %v8892_v42 = vld [vmem:[#allocation17_spill] sm:$0xff] }
 0x4cd   : > { %3116 = vmatmul.mubr.f32.gmra.mrb[34].mxu0 %v6852_v5 }
 0x4ce   : > { %4017 = vmatmul.mubr.f32.gmra.mrb[18].mxu1 %v6662_v13  ;;  %3121 = vmatprep.mubr.f32.mxu0 %v8814_v14 }
 0x4cf   : > { %4022 = vmatprep.mubr.f32.mxu1 %v8814_v14 }
 0x4d1   : > { %3123 = vmatmul.mubr.f32.gmra.mrb[36].mxu0 %v6869_v25 }
 0x4d2   : > { %4024 = vmatmul.mubr.f32.gmra.mrb[20].mxu1 %v6679_v29  ;;  %3128 = vmatprep.mubr.f32.mxu0 %v8814_v14 }
 0x4d3   : > { %4029 = vmatprep.mubr.f32.mxu1 %v8814_v14 }
 0x4d5   : > { %3130 = vmatmul.mubr.f32.gmra.mrb[38].mxu0 %v8877_v39 }
 0x4d6   : > { %4031 = vmatmul.mubr.f32.gmra.mrb[22].mxu1 %v6693_v3  ;;  %3135 = vmatprep.mubr.f32.mxu0 %v8814_v14 }
 0x4d7   : > { %4036 = vmatprep.mubr.f32.mxu1 %v8814_v14 }
 0x4d9   : > { %3137 = vmatmul.mubr.f32.gmra.mrb[40].mxu0 %v6917_v33 }
 0x4da   : > { %4038 = vmatmul.mubr.f32.gmra.mrb[24].mxu1 %v6708_v23  ;;  %3142 = vmatprep.mubr.f32.mxu0 %v8814_v14 }
 0x4db   : > { %4043 = vmatprep.mubr.f32.mxu1 %v8814_v14 }
 0x4dd   : > { %3144 = vmatmul.mubr.f32.gmra.mrb[42].mxu0 %v6938_v36 }
 0x4de   : > { %4045 = vmatmul.mubr.f32.gmra.mrb[26].mxu1 %v6722_v60  ;;  %3149 = vmatprep.mubr.f32.mxu0 %v8814_v14 }
 0x4df   : > { %4050 = vmatprep.mubr.f32.mxu1 %v8814_v14 }
 0x4e1   : > { %3151 = vmatmul.mubr.f32.gmra.mrb[44].mxu0 %v8878_v8 }
 0x4e2   : > { %4052 = vmatmul.mubr.f32.gmra.mrb[28].mxu1 %v6736_v59  ;;  %3156 = vmatprep.mubr.f32.mxu0 %v8814_v14 }
 0x4e3   : > { %4057 = vmatprep.mubr.f32.mxu1 %v8814_v14 }
 0x4e5   : > { %3158 = vmatmul.mubr.f32.gmra.mrb[46].mxu0 %v8879_v46 }
 0x4e6   : > { %4059 = vmatmul.mubr.f32.gmra.mrb[30].mxu1 %v6750_v30  ;;  %3163 = vmatprep.mubr.f32.mxu0 %v8814_v14 }
 0x4e7   : > { %4064 = vmatprep.mubr.f32.mxu1 %v8814_v14 }
 0x4e9   : > { %3165 = vmatmul.mubr.f32.gmra.mrb[48].mxu0 %v8880_v28 }
 0x4ea   : > { %4066 = vmatmul.mubr.f32.gmra.mrb[32].mxu1 %v6764_v61  ;;  %3170 = vmatprep.mubr.f32.mxu0 %v8814_v14 }
 0x4eb   : > { %4071 = vmatprep.mubr.f32.mxu1 %v8814_v14 }
 0x4ed   : > { %3172 = vmatmul.mubr.f32.gmra.mrb[50].mxu0 %v8881_v58 }
 0x4ee   : > { %4073 = vmatmul.mubr.f32.gmra.mrb[34].mxu1 %v6778_v34  ;;  %3177 = vmatprep.mubr.f32.mxu0 %v8814_v14 }
 0x4ef   : > { %4078 = vmatprep.mubr.f32.mxu1 %v8814_v14 }
 0x4f1   : > { %3179 = vmatmul.mubr.f32.gmra.mrb[52].mxu0 %v7034_v35 }
 0x4f2   : > { %4080 = vmatmul.mubr.f32.gmra.mrb[36].mxu1 %v6792_v37  ;;  %3184 = vmatprep.mubr.f32.mxu0 %v8814_v14 }
 0x4f3   : > { %4085 = vmatprep.mubr.f32.mxu1 %v8814_v14 }
 0x4f5   : > { %3186 = vmatmul.mubr.f32.gmra.mrb[54].mxu0 %v7056_v2 }
 0x4f6   : > { %4087 = vmatmul.mubr.f32.gmra.mrb[38].mxu1 %v6810_v57  ;;  %3191 = vmatprep.mubr.f32.mxu0 %v8814_v14 }
 0x4f7   : > { %4092 = vmatprep.mubr.f32.mxu1 %v8814_v14 }
 0x4f9   : > { %3193 = vmatmul.mubr.f32.gmra.mrb[56].mxu0 %v8882_v10 }
 0x4fa   : > { %4094 = vmatmul.mubr.f32.gmra.mrb[40].mxu1 %v6831_v62  ;;  %3198 = vmatprep.mubr.f32.mxu0 %v8814_v14 }
 0x4fb   : > { %4099 = vmatprep.mubr.f32.mxu1 %v8814_v14 }
 0x4fd   : > { %3200 = vmatmul.mubr.f32.gmra.mrb[58].mxu0 %v8883_v56 }
 0x4fe   : > { %4101 = vmatmul.mubr.f32.gmra.mrb[42].mxu1 %v8873_v47  ;;  %3205 = vmatprep.mubr.f32.mxu0 %v8814_v14 }
 0x4ff   : > { %4106 = vmatprep.mubr.f32.mxu1 %v8814_v14 }
 0x501   : > { %3207 = vmatmul.mubr.f32.gmra.mrb[60].mxu0 %v8884_v51 }
 0x502   : > { %4108 = vmatmul.mubr.f32.gmra.mrb[44].mxu1 %v6881_v55  ;;  %3212 = vmatprep.mubr.f32.mxu0 %v8814_v14 }
 0x503   : > { %4113 = vmatprep.mubr.f32.mxu1 %v8814_v14 }
 0x505   : > { %3214 = vmatmul.mubr.f32.gmra.mrb[62].mxu0 %v8885_v22 }
 0x506   : > { %4115 = vmatmul.mubr.f32.gmra.mrb[46].mxu1 %v6852_v5  ;;  %3219 = vmatprep.mubr.f32.mxu0 %v8814_v14 }
 0x507   : > { %4120 = vmatprep.mubr.f32.mxu1 %v8814_v14 }
 0x509   : > { %3221 = vmatmul.mubr.f32.gmra.mrb[64].mxu0 %v8886_v15 }
 0x50a   : > { %4122 = vmatmul.mubr.f32.gmra.mrb[48].mxu1 %v6869_v25  ;;  %3303 = vmatprep.mubr.f32.mxu0 %v8814_v14 }
 0x50b   : > { %4127 = vmatprep.mubr.f32.mxu1 %v8814_v14 }
 0x50d   : > { %3306 = vmatmul.mubr.f32.vlgmr.msra.gmra.mrb[2].mxu0 %v8887_v63  ;;  %v8893_v63 = vld [vmem:[#allocation18_spill] sm:$0xff] }
 0x50e   : > { %4129 = vmatmul.mubr.f32.gmra.mrb[50].mxu1 %v8877_v39  ;;  %3311 = vmatprep.mubr.f32.mxu0 %v8814_v14 }
 0x50f   : > { %4134 = vmatprep.mubr.f32.mxu1 %v8814_v14 }
 0x511   : > { %3314 = vmatmul.mubr.f32.gmra.mrb[4].mxu0 %v8888_v20 }
 0x512   : > { %4136 = vmatmul.mubr.f32.gmra.mrb[52].mxu1 %v6917_v33  ;;  %3319 = vmatprep.mubr.f32.mxu0 %v8814_v14 }
 0x513   : > { %4141 = vmatprep.mubr.f32.mxu1 %v8814_v14 }
 0x515   : > { %3322 = vmatmul.mubr.f32.gmra.mrb[6].mxu0 %v8889_v7 }
 0x516   : > { %4143 = vmatmul.mubr.f32.gmra.mrb[54].mxu1 %v6938_v36  ;;  %3327 = vmatprep.mubr.f32.mxu0 %v8814_v14 }
 0x517   : > { %4148 = vmatprep.mubr.f32.mxu1 %v8814_v14 }
 0x519   : > { %3330 = vmatmul.mubr.f32.gmra.mrb[8].mxu0 %v8890_v21 }
 0x51a   : > { %4150 = vmatmul.mubr.f32.gmra.mrb[56].mxu1 %v8878_v8  ;;  %3335 = vmatprep.mubr.f32.mxu0 %v8814_v14 }
 0x51b   : > { %4155 = vmatprep.mubr.f32.mxu1 %v8814_v14 }
 0x51d   : > { %3338 = vmatmul.mubr.f32.gmra.mrb[10].mxu0 %v8891_v41 }
 0x51e   : > { %4157 = vmatmul.mubr.f32.gmra.mrb[58].mxu1 %v8879_v46  ;;  %3343 = vmatprep.mubr.f32.mxu0 %v8814_v14 }
 0x51f   : > { %4162 = vmatprep.mubr.f32.mxu1 %v8814_v14 }
 0x521   : > { %3346 = vmatmul.mubr.f32.gmra.mrb[12].mxu0 %v8892_v42 }
 0x522   : > { %4164 = vmatmul.mubr.f32.gmra.mrb[60].mxu1 %v8880_v28  ;;  %3351 = vmatprep.mubr.f32.mxu0 %v8814_v14 }
 0x523   : > { %4169 = vmatprep.mubr.f32.mxu1 %v8814_v14 }
 0x525   : > { %3354 = vmatmul.mubr.f32.gmra.mrb[14].mxu0 %v8893_v63 }
 0x526   : > { %4171 = vmatmul.mubr.f32.gmra.mrb[62].mxu1 %v8881_v58  ;;  %3359 = vmatprep.mubr.f32.mxu0 %v8814_v14 }
 0x527   : > { %4176 = vmatprep.mubr.f32.mxu1 %v8814_v14 }
 0x529   : > { %3362 = vmatmul.mubr.f32.gmra.mrb[16].mxu0 %v6739_v6 }
 0x52a   : > { %4178 = vmatmul.mubr.f32.gmra.mrb[64].mxu1 %v7034_v35  ;;  %3367 = vmatprep.mubr.f32.mxu0 %v8814_v14 }
 0x52b   : > { %4183 = vmatprep.mubr.f32.mxu1 %v8814_v14 }
 0x52d   : > { %3370 = vmatmul.mubr.f32.gmra.mrb[18].mxu0 %v6753_v54 }
 0x52e   : > { %4185 = vmatmul.mubr.f32.gmra.mrb[66].mxu1 %v7056_v2  ;;  %3375 = vmatprep.mubr.f32.mxu0 %v8814_v14 }
 0x52f   : > { %4190 = vmatprep.mubr.f32.mxu1 %v8814_v14 }
 0x531   : > { %3378 = vmatmul.mubr.f32.gmra.mrb[20].mxu0 %v6767_v11  ;;  %v5908_v11 = vld [vmem:[%s8673_s4 + $0x18] sm:$0xff] }
 0x532   : > { %4192 = vmatmul.mubr.f32.gmra.mrb[4].mxu1 %v8882_v10  ;;  %3383 = vmatprep.mubr.f32.mxu0 %v8814_v14 }
 0x533   : > { %4197 = vmatprep.mubr.f32.mxu1 %v8814_v14 }
 0x535   : > { %3386 = vmatmul.mubr.f32.gmra.mrb[22].mxu0 %v6781_v40  ;;  %v8898_v40 = vld [vmem:[#allocation34_spill] sm:$0xff] }
 0x536   : > { %4199 = vmatmul.mubr.f32.gmra.mrb[6].mxu1 %v8883_v56  ;;  %3391 = vmatprep.mubr.f32.mxu0 %v8814_v14 }
 0x537   : > { %4204 = vmatprep.mubr.f32.mxu1 %v8814_v14 }
 0x539   : > { %3394 = vmatmul.mubr.f32.gmra.mrb[24].mxu0 %v6798_v48 }
 0x53a   : > { %4206 = vmatmul.mubr.f32.gmra.mrb[8].mxu1 %v8884_v51  ;;  %3399 = vmatprep.mubr.f32.mxu0 %v8814_v14 }
 0x53b   : > { %4211 = vmatprep.mubr.f32.mxu1 %v8814_v14 }
 0x53d   : > { %3402 = vmatmul.mubr.f32.gmra.mrb[26].mxu0 %v6819_v53  ;;  %v5909_v53 = vld [vmem:[%s8673_s4 + $0x8] sm:$0xff] }
 0x53e   : > { %4213 = vmatmul.mubr.f32.gmra.mrb[10].mxu1 %v8885_v22  ;;  %3407 = vmatprep.mubr.f32.mxu0 %v8814_v14 }
 0x53f   : > { %4218 = vmatprep.mubr.f32.mxu1 %v8814_v14 }
 0x541   : > { %3410 = vmatmul.mubr.f32.gmra.mrb[28].mxu0 %v6840_v38 }
 0x542   : > { %4220 = vmatmul.mubr.f32.gmra.mrb[12].mxu1 %v8886_v15  ;;  %3415 = vmatprep.mubr.f32.mxu0 %v8814_v14 }
 0x543   : > { %4296 = vmatprep.mubr.f32.mxu1 %v8814_v14 }
 0x545   : > { %3418 = vmatmul.mubr.f32.gmra.mrb[30].mxu0 %v6862_v1 }
 0x546   : > { %4298 = vmatmul.mubr.f32.vlgmr.msra.gmra.mrb[14].mxu1 %v6634_v26  ;;  %3423 = vmatprep.mubr.f32.mxu0 %v8814_v14  ;;  %v8894_v26 = vld [vmem:[#allocation30_spill] sm:$0xff] }
 0x547   : > { %4303 = vmatprep.mubr.f32.mxu1 %v8814_v14 }
 0x549   : > { %3426 = vmatmul.mubr.f32.gmra.mrb[32].mxu0 %v6888_v43 }
 0x54a   : > { %4305 = vmatmul.mubr.f32.gmra.mrb[16].mxu1 %v6645_v24  ;;  %3431 = vmatprep.mubr.f32.mxu0 %v8814_v14  ;;  %v8895_v24 = vld [vmem:[#allocation33_spill] sm:$0xff] }
 0x54b   : > { %4310 = vmatprep.mubr.f32.mxu1 %v8814_v14 }
 0x54d   : > { %3434 = vmatmul.mubr.f32.gmra.mrb[34].mxu0 %v6878_v17 }
 0x54e   : > { %4312 = vmatmul.mubr.f32.gmra.mrb[18].mxu1 %v6662_v13  ;;  %3439 = vmatprep.mubr.f32.mxu0 %v8814_v14  ;;  %v2216_v13 = vsel %vm340_vm3, %v8895_v24, %v8894_v26 }
 0x54f   : > { %4317 = vmatprep.mubr.f32.mxu1 %v8814_v14 }
 0x551   : > { %3442 = vmatmul.mubr.f32.gmra.mrb[36].mxu0 %v6895_v18 }
 0x552   : > { %4319 = vmatmul.mubr.f32.gmra.mrb[20].mxu1 %v6679_v29  ;;  %3447 = vmatprep.mubr.f32.mxu0 %v8814_v14  ;;  %v8896_v29 = vld [vmem:[#allocation27_spill] sm:$0xff] }
 0x553   : > { %4324 = vmatprep.mubr.f32.mxu1 %v8814_v14 }
 0x555   : > { %3450 = vmatmul.mubr.f32.gmra.mrb[38].mxu0 %v6914_v45 }
 0x556   : > { %4326 = vmatmul.mubr.f32.gmra.mrb[22].mxu1 %v6693_v3  ;;  %3455 = vmatprep.mubr.f32.mxu0 %v8814_v14  ;;  %v8897_v3 = vld [vmem:[#allocation31_spill] sm:$0xff] }
 0x557   : > { %4331 = vmatprep.mubr.f32.mxu1 %v8814_v14 }
 0x559   : > { %3458 = vmatmul.mubr.f32.gmra.mrb[40].mxu0 %v6935_v4 }
 0x55a   : > { %4333 = vmatmul.mubr.f32.gmra.mrb[24].mxu1 %v6708_v23  ;;  %3463 = vmatprep.mubr.f32.mxu0 %v8814_v14  ;;  %v2204_v23 = vsel %vm326_vm4, %v8897_v3, %v8896_v29 }
 0x55b   : > { %4338 = vmatprep.mubr.f32.mxu1 %v8814_v14 }
 0x55d   : > { %3466 = vmatmul.mubr.f32.gmra.mrb[42].mxu0 %v6950_v32 }
 0x55e   : > { %4340 = vmatmul.mubr.f32.gmra.mrb[26].mxu1 %v6722_v60  ;;  %3471 = vmatprep.mubr.f32.mxu0 %v8814_v14  ;;  %v2251_v60 = vrot.slane %v2216_v13, 4 }
 0x55f   : > { %4345 = vmatprep.mubr.f32.mxu1 %v8814_v14 }
 0x561   : > { %3474 = vmatmul.mubr.f32.gmra.mrb[44].mxu0 %v6970_v12 }
 0x562   : > { %4347 = vmatmul.mubr.f32.gmra.mrb[28].mxu1 %v6736_v59  ;;  %3479 = vmatprep.mubr.f32.mxu0 %v8814_v14  ;;  %v8899_v59 = vld [vmem:[#allocation35_spill] sm:$0xff] }
 0x563   : > { %4352 = vmatprep.mubr.f32.mxu1 %v8814_v14  ;;  %v2198_v6 = vsel %vm319_vm5, %v8899_v59, %v8898_v40 }
 0x565   : > { %3482 = vmatmul.mubr.f32.gmra.mrb[46].mxu0 %v6978_v44  ;;  %v2210_v44 = vsel %vm333_vm7, %v7060_v49, %v7058_v50 }
 0x566   : > { %4354 = vmatmul.mubr.f32.gmra.mrb[30].mxu1 %v6750_v30  ;;  %3487 = vmatprep.mubr.f32.mxu0 %v8814_v14  ;;  %v2245_v30 = vrot.slane %v2204_v23, 4  ;;  %v2269_v54 = vsel %vm395_vm0, %v2210_v44, %v2251_v60 }
 0x567   : > { %4359 = vmatprep.mubr.f32.mxu1 %v8814_v14  ;;  %v2277_v48 = vmul.f32 %v5908_v11, %v2269_v54 }
 0x569   : > { %3490 = vmatmul.mubr.f32.gmra.mrb[48].mxu0 %v7002_v16 }
 0x56a   : > { %4361 = vmatmul.mubr.f32.gmra.mrb[32].mxu1 %v6764_v61  ;;  %3495 = vmatprep.mubr.f32.mxu0 %v8814_v14  ;;  %v2267_v61 = vsel %vm395_vm0, %v2198_v6, %v2245_v30 }
 0x56b   : > { %4366 = vmatprep.mubr.f32.mxu1 %v8814_v14  ;;  %v2275_v38 = vmul.f32 %v5909_v53, %v2267_v61 }
 0x56d   : > { %3498 = vmatmul.mubr.f32.gmra.mrb[50].mxu0 %v7031_v0 }
 0x56e   : > { %4368 = vmatmul.mubr.f32.gmra.mrb[34].mxu1 %v6778_v34  ;;  %3503 = vmatprep.mubr.f32.mxu0 %v8814_v14  ;;  %v4992_v34 = vpack.c.bf16 %v2277_v48, %v2275_v38 }
 0x56f   : > { %4373 = vmatprep.mubr.f32.mxu1 %v8814_v14 }
 0x571   : > { %3506 = vmatmul.mubr.f32.gmra.mrb[52].mxu0 %v7053_v31 }
 0x572   : > { %4375 = vmatmul.mubr.f32.gmra.mrb[36].mxu1 %v6792_v37  ;;  %3511 = vmatprep.mubr.f32.mxu0 %v8814_v14 }
 0x573   : > { %4380 = vmatprep.mubr.f32.mxu1 %v8814_v14 }
 0x575   : > { %3514 = vmatmul.mubr.f32.gmra.mrb[54].mxu0 %v7084_v19 }
 0x576   : > { %5061 = vmatprep.mubr.bf16.mxu0 %v4992_v34  ;;  %4382 = vmatmul.mubr.f32.gmra.mrb[38].mxu1 %v6810_v57 }
 0x577   : > { %4387 = vmatprep.mubr.f32.mxu1 %v8814_v14 }
 0x57a   : > { %4389 = vmatmul.mubr.f32.gmra.mrb[40].mxu1 %v6831_v62 }
 0x57b   : > { %4394 = vmatprep.mubr.f32.mxu1 %v8814_v14 }
 0x57e   : > { %4396 = vmatmul.mubr.f32.gmra.mrb[42].mxu1 %v8873_v47 }
 0x57f   : > { %4401 = vmatprep.mubr.f32.mxu1 %v8814_v14 }
 0x582   : > { %4403 = vmatmul.mubr.f32.gmra.mrb[44].mxu1 %v6881_v55 }
 0x583   : > { %4408 = vmatprep.mubr.f32.mxu1 %v8814_v14 }
 0x586   : > { %4410 = vmatmul.mubr.f32.gmra.mrb[46].mxu1 %v6852_v5 }
 0x587   : > { %4415 = vmatprep.mubr.f32.mxu1 %v8814_v14 }
 0x58a   : > { %4417 = vmatmul.mubr.f32.gmra.mrb[48].mxu1 %v6869_v25 }
 0x58b   : > { %4422 = vmatprep.mubr.f32.mxu1 %v8814_v14 }
 0x58e   : > { %4424 = vmatmul.mubr.f32.gmra.mrb[50].mxu1 %v8877_v39 }
 0x58f   : > { %4429 = vmatprep.mubr.f32.mxu1 %v8814_v14 }
 0x592   : > { %4431 = vmatmul.mubr.f32.gmra.mrb[52].mxu1 %v6917_v33 }
 0x593   : > { %4436 = vmatprep.mubr.f32.mxu1 %v8814_v14 }
 0x596   : > { %4438 = vmatmul.mubr.f32.gmra.mrb[54].mxu1 %v6938_v36 }
 0x597   : > { %4443 = vmatprep.mubr.f32.mxu1 %v8814_v14 }
 0x59a   : > { %4445 = vmatmul.mubr.f32.gmra.mrb[56].mxu1 %v8878_v8 }
 0x59b   : > { %4450 = vmatprep.mubr.f32.mxu1 %v8814_v14 }
 0x59e   : > { %4452 = vmatmul.mubr.f32.gmra.mrb[58].mxu1 %v8879_v46 }
 0x59f   : > { %4457 = vmatprep.mubr.f32.mxu1 %v8814_v14 }
 0x5a2   : > { %4459 = vmatmul.mubr.f32.gmra.mrb[60].mxu1 %v8880_v28 }
 0x5a3   : > { %4464 = vmatprep.mubr.f32.mxu1 %v8814_v14 }
 0x5a6   : > { %4466 = vmatmul.mubr.f32.gmra.mrb[62].mxu1 %v8881_v58 }
 0x5a7   : > { %4471 = vmatprep.mubr.f32.mxu1 %v8814_v14 }
 0x5aa   : > { %4473 = vmatmul.mubr.f32.gmra.mrb[64].mxu1 %v7034_v35 }
 0x5ab   : > { %4478 = vmatprep.mubr.f32.mxu1 %v8814_v14 }
 0x5ae   : > { %4480 = vmatmul.mubr.f32.gmra.mrb[66].mxu1 %v7056_v2 }
 0x5af   : > { %4485 = vmatprep.mubr.f32.mxu1 %v8814_v14 }
 0x5b2   : > { %4487 = vmatmul.mubr.f32.gmra.mrb[4].mxu1 %v8882_v10 }
 0x5b3   : > { %4492 = vmatprep.mubr.f32.mxu1 %v8814_v14 }
 0x5b6   : > { %4494 = vmatmul.mubr.f32.gmra.mrb[6].mxu1 %v8883_v56 }
 0x5b7   : > { %4499 = vmatprep.mubr.f32.mxu1 %v8814_v14 }
 0x5ba   : > { %4501 = vmatmul.mubr.f32.gmra.mrb[8].mxu1 %v8884_v51 }
 0x5bb   : > { %4506 = vmatprep.mubr.f32.mxu1 %v8814_v14 }
 0x5be   : > { %4508 = vmatmul.mubr.f32.gmra.mrb[10].mxu1 %v8885_v22 }
 0x5bf   : > { %4513 = vmatprep.mubr.f32.mxu1 %v8814_v14 }
 0x5c2   : > { %4515 = vmatmul.mubr.f32.gmra.mrb[12].mxu1 %v8886_v15 }
 0x5cc   : > { %v7471_v25 = vpop.f32.mrb[56].mxu0 }
 0x5cd   : > { %v7473_v37 = vpop.f32.mrb[57].mxu0 }
 0x5d0   : > { %v7475_v57 = vpop.f32.mrb[58].mxu0 }
 0x5d1   : > { %v7477_v62 = vpop.f32.mrb[59].mxu0 }
 0x5d4   : > { %v7479_v5 = vpop.f32.mrb[60].mxu0 }
 0x5d5   : > { %v7481_v1 = vpop.f32.mrb[61].mxu0 }
 0x5d8   : > { %v7483_v17 = vpop.f32.mrb[62].mxu0 }
 0x5d9   : > { %v7485_v55 = vpop.f32.mrb[63].mxu0 }
 0x5dc   : > { %v7487_v43 = vpop.f32.mrb[64].mxu0 }
 0x5dd   : > { %v7489_v14 = vpop.f32.mrb[65].mxu0 }
 0x5e0   : > { %v3307_v18 = vpop.f32.mrb[2].mxu0 }
 0x5e1   : > { %v3309_v45 = vpop.f32.mrb[3].mxu0 }
 0x5e4   : > { %v3315_v4 = vpop.f32.mrb[4].mxu0 }
 0x5e5   : > { %v3317_v33 = vpop.f32.mrb[5].mxu0 }
 0x5e8   : > { %v3323_v32 = vpop.f32.mrb[6].mxu0 }
 0x5e9   : > { %v3325_v36 = vpop.f32.mrb[7].mxu0 }
 0x5ec   : > { %v3331_v12 = vpop.f32.mrb[8].mxu0 }
 0x5ed   : > { %v3333_v31 = vpop.f32.mrb[9].mxu0 }
 0x5f0   : > { %v3339_v16 = vpop.f32.mrb[10].mxu0 }
 0x5f1   : > { %v3341_v35 = vpop.f32.mrb[11].mxu0 }
 0x5f4   : > { %v7491_v0 = vpop.f32.mrb[12].mxu0 }
 0x5f5   : > { %v7493_v2 = vpop.f32.mrb[13].mxu0 }
 0x5f8   : > { %v7495_v50 = vpop.f32.mrb[14].mxu0 }
 0x5f9   : > { %v7497_v49 = vpop.f32.mrb[15].mxu0 }
 0x5fc   : > { %v7499_v19 = vpop.f32.mrb[16].mxu0 }
 0x5fd   : > { %v7501_v47 = vpop.f32.mrb[17].mxu0 }
 0x600   : > { %v7503_v39 = vpop.f32.mrb[18].mxu0 }
 0x601   : > { %v7505_v8 = vpop.f32.mrb[19].mxu0 }
 0x604   : > { %v7507_v46 = vpop.f32.mrb[20].mxu0 }
 0x605   : > { %v7509_v28 = vpop.f32.mrb[21].mxu0 }
 0x608   : > { %v7511_v58 = vpop.f32.mrb[22].mxu0 }
 0x609   : > { %v7513_v10 = vpop.f32.mrb[23].mxu0 }
 0x60c   : > { %v7515_v56 = vpop.f32.mrb[24].mxu0 }
 0x60d   : > { %v7517_v51 = vpop.f32.mrb[25].mxu0 }
 0x610   : > { %v7519_v22 = vpop.f32.mrb[26].mxu0 }
 0x611   : > { %v7521_v15 = vpop.f32.mrb[27].mxu0 }
 0x614   : > { %v7523_v20 = vpop.f32.mrb[28].mxu0 }
 0x615   : > { %v7525_v7 = vpop.f32.mrb[29].mxu0 }
 0x618   : > { %v7527_v21 = vpop.f32.mrb[30].mxu0 }
 0x619   : > { %v7529_v41 = vpop.f32.mrb[31].mxu0  ;;  %v4299_v42 = vpop.f32.mrb[14].mxu1 }
 0x61a   : > { %v5391_v63 = vadd.f32 %v4299_v42, %v3307_v18  ;;  %v4301_v26 = vpop.f32.mrb[15].mxu1 }
 0x61b   : > { %v5392_v24 = vadd.f32 %v4301_v26, %v3309_v45 }
 0x61c   : > { %v7531_v13 = vpop.f32.mrb[32].mxu0  ;;  %v7539_v11 = vmul.f32 10.0, %v5391_v63 }
 0x61d   : > { %v7533_v29 = vpop.f32.mrb[33].mxu0  ;;  %v4306_v3 = vpop.f32.mrb[16].mxu1  ;;  %v7545_v38 = vmul.f32 10.0, %v5392_v24 }
 0x61e   : > { %v5393_v23 = vadd.f32 %v4306_v3, %v3315_v4  ;;  %v4308_v44 = vpop.f32.mrb[17].mxu1 }
 0x61f   : > { %v5394_v60 = vadd.f32 %v4308_v44, %v3317_v33  ;;  %8900 = vst [vmem:[#allocation23_spill] sm:$0xff] %v7545_v38 }
 0x620   : > { %v7535_v40 = vpop.f32.mrb[34].mxu0  ;;  %v7555_v63 = vmul.f32 10.0, %v5393_v23 }
 0x621   : > { %v7537_v59 = vpop.f32.mrb[35].mxu0  ;;  %v4313_v6 = vpop.f32.mrb[18].mxu1  ;;  %v7561_v3 = vmul.f32 10.0, %v5394_v60 }
 0x622   : > { %v5395_v30 = vadd.f32 %v4313_v6, %v3323_v32  ;;  %v4315_v54 = vpop.f32.mrb[19].mxu1 }
 0x623   : > { %v5396_v61 = vadd.f32 %v4315_v54, %v3325_v36  ;;  %8902 = vst [vmem:[#allocation9_spill] sm:$0xff] %v7561_v3 }
 0x624   : > { %v7541_v48 = vmul.f32 10.0, %v5395_v30  ;;  %v7543_v53 = vpop.f32.mrb[36].mxu0 }
 0x625   : > { %v7547_v34 = vmul.f32 10.0, %v5396_v61  ;;  %v7549_v18 = vpop.f32.mrb[37].mxu0  ;;  %v4320_v45 = vpop.f32.mrb[20].mxu1 }
 0x626   : > { %v4585_v4 = vmax.f32 %v7539_v11, %v7541_v48  ;;  %v5397_v33 = vadd.f32 %v4320_v45, %v3331_v12  ;;  %v4322_v32 = vpop.f32.mrb[21].mxu1 }
 0x627   : > { %8901 = vst [vmem:[#allocation10_spill] sm:$0xff] %v7547_v34  ;;  %v4622_v36 = vmax.f32 %v7545_v38, %v7547_v34  ;;  %v5398_v42 = vadd.f32 %v4322_v32, %v3333_v31 }
 0x628   : > { %v7557_v26 = vmul.f32 10.0, %v5397_v33  ;;  %v7559_v24 = vpop.f32.mrb[38].mxu0 }
 0x629   : > { %v7563_v44 = vmul.f32 10.0, %v5398_v42  ;;  %v7565_v6 = vpop.f32.mrb[39].mxu0  ;;  %v4327_v30 = vpop.f32.mrb[22].mxu1 }
 0x62a   : > { %v4586_v12 = vmax.f32 %v7555_v63, %v7557_v26  ;;  %v5399_v54 = vadd.f32 %v4327_v30, %v3339_v16  ;;  %v4329_v61 = vpop.f32.mrb[23].mxu1 }
 0x62b   : > { %8903 = vst [vmem:[#allocation11_spill] sm:$0xff] %v7563_v44  ;;  %v4623_v31 = vmax.f32 %v7561_v3, %v7563_v44  ;;  %v5400_v23 = vadd.f32 %v4329_v61, %v3341_v35 }
 0x62c   : > { %v7571_v45 = vmul.f32 10.0, %v5399_v54  ;;  %v7573_v33 = vpop.f32.mrb[40].mxu0 }
 0x62d   : > { %v7575_v60 = vmul.f32 10.0, %v5400_v23  ;;  %v7577_v32 = vpop.f32.mrb[41].mxu0  ;;  %v4334_v42 = vpop.f32.mrb[24].mxu1 }
 0x62e   : > { %v4587_v52 = vmax.f32 %v4585_v4, %v7571_v45  ;;  %v5401_v9 = vadd.f32 %v4334_v42, %v7491_v0  ;;  %v4336_v27 = vpop.f32.mrb[25].mxu1 }
 0x62f   : > { %8904 = vst [vmem:[#allocation25_spill] sm:$0xff] %v7575_v60  ;;  %v4624_v16 = vmax.f32 %v4622_v36, %v7575_v60  ;;  %v5402_v30 = vadd.f32 %v4336_v27, %v7493_v2 }
 0x630   : > { %v7583_v44 = vmul.f32 10.0, %v5401_v9  ;;  %v7585_v35 = vpop.f32.mrb[42].mxu0 }
 0x631   : > { %v7587_v54 = vmul.f32 10.0, %v5402_v30  ;;  %v7589_v61 = vpop.f32.mrb[43].mxu0  ;;  %v4341_v23 = vpop.f32.mrb[26].mxu1 }
 0x632   : > { %8905 = vst [vmem:[#allocation26_spill] sm:$0xff] %v7583_v44  ;;  %v4588_v34 = vmax.f32 %v4586_v12, %v7583_v44  ;;  %v5403_v4 = vadd.f32 %v4341_v23, %v7495_v50  ;;  %v4343_v3 = vpop.f32.mrb[27].mxu1 }
 0x633   : > { %8906 = vst [vmem:[#allocation28_spill] sm:$0xff] %v7587_v54  ;;  %v4625_v0 = vmax.f32 %v4623_v31, %v7587_v54  ;;  %v5404_v36 = vadd.f32 %v4343_v3, %v7497_v49 }
 0x634   : > { %v7595_v42 = vmul.f32 10.0, %v5403_v4  ;;  %v7597_v27 = vpop.f32.mrb[44].mxu0 }
 0x635   : > { %v7599_v9 = vmul.f32 10.0, %v5404_v36  ;;  %v7601_v2 = vpop.f32.mrb[45].mxu0  ;;  %v4348_v30 = vpop.f32.mrb[28].mxu1 }
 0x636   : > { %8907 = vst [vmem:[#allocation29_spill] sm:$0xff] %v7595_v42  ;;  %v4589_v60 = vmax.f32 %v4587_v52, %v7595_v42  ;;  %v5405_v12 = vadd.f32 %v4348_v30, %v7499_v19  ;;  %v4350_v38 = vpop.f32.mrb[29].mxu1 }
 0x637   : > { %8908 = vst [vmem:[#allocation32_spill] sm:$0xff] %v7599_v9  ;;  %v4626_v50 = vmax.f32 %v4624_v16, %v7599_v9  ;;  %v5406_v31 = vadd.f32 %v4350_v38, %v7501_v47 }
 0x638   : > { %v7607_v23 = vmul.f32 10.0, %v5405_v12  ;;  %v7609_v49 = vpop.f32.mrb[46].mxu0 }
 0x639   : > { %v7611_v3 = vmul.f32 10.0, %v5406_v31  ;;  %v7613_v4 = vpop.f32.mrb[47].mxu0  ;;  %v4355_v36 = vpop.f32.mrb[30].mxu1 }
 0x63a   : > { %8909 = vst [vmem:[#allocation19_spill] sm:$0xff] %v7607_v23  ;;  %v4590_v54 = vmax.f32 %v4588_v34, %v7607_v23  ;;  %v5407_v52 = vadd.f32 %v4355_v36, %v7503_v39  ;;  %v4357_v42 = vpop.f32.mrb[31].mxu1 }
 0x63b   : > { %8910 = vst [vmem:[#allocation20_spill] sm:$0xff] %v7611_v3  ;;  %v4627_v19 = vmax.f32 %v4625_v0, %v7611_v3  ;;  %v5408_v16 = vadd.f32 %v4357_v42, %v7505_v8 }
 0x63c   : > { %v7619_v30 = vmul.f32 10.0, %v5407_v52  ;;  %v7621_v47 = vpop.f32.mrb[48].mxu0 }
 0x63d   : > { %v7623_v38 = vmul.f32 10.0, %v5408_v16  ;;  %v7625_v12 = vpop.f32.mrb[49].mxu0  ;;  %v4362_v31 = vpop.f32.mrb[32].mxu1 }
 0x63e   : > { %8911 = vst [vmem:[#allocation21_spill] sm:$0xff] %v7619_v30  ;;  %v4591_v9 = vmax.f32 %v4589_v60, %v7619_v30  ;;  %v5409_v34 = vadd.f32 %v4362_v31, %v7507_v46  ;;  %v4364_v23 = vpop.f32.mrb[33].mxu1 }
 0x63f   : > { %8912 = vst [vmem:[#allocation22_spill] sm:$0xff] %v7623_v38  ;;  %v4628_v39 = vmax.f32 %v4626_v50, %v7623_v38  ;;  %v5410_v0 = vadd.f32 %v4364_v23, %v7509_v28 }
 0x640   : > { %v7631_v36 = vmul.f32 10.0, %v5409_v34  ;;  %v7633_v8 = vpop.f32.mrb[50].mxu0 }
 0x641   : > { %v7635_v42 = vmul.f32 10.0, %v5410_v0  ;;  %v7637_v52 = vpop.f32.mrb[51].mxu0  ;;  %v4369_v16 = vpop.f32.mrb[34].mxu1 }
 0x642   : > { %8913 = vst [vmem:[#allocation24_spill] sm:$0xff] %v7631_v36  ;;  %v4592_v3 = vmax.f32 %v4590_v54, %v7631_v36  ;;  %v5411_v60 = vadd.f32 %v4369_v16, %v7511_v58  ;;  %v4371_v30 = vpop.f32.mrb[35].mxu1 }
 0x643   : > { %8914 = vst [vmem:[#allocation12_spill] sm:$0xff] %v7635_v42  ;;  %v4629_v46 = vmax.f32 %v4627_v19, %v7635_v42  ;;  %v5412_v50 = vadd.f32 %v4371_v30, %v7513_v10 }
 0x644   : > { %v7643_v31 = vmul.f32 10.0, %v5411_v60  ;;  %v7645_v28 = vpop.f32.mrb[52].mxu0 }
 0x645   : > { %v7647_v23 = vmul.f32 10.0, %v5412_v50  ;;  %v7649_v34 = vpop.f32.mrb[53].mxu0  ;;  %v4376_v0 = vpop.f32.mrb[36].mxu1 }
 0x646   : > { %8915 = vst [vmem:[#allocation13_spill] sm:$0xff] %v7643_v31  ;;  %v4593_v38 = vmax.f32 %v4591_v9, %v7643_v31  ;;  %v5413_v54 = vadd.f32 %v4376_v0, %v7515_v56  ;;  %v4378_v36 = vpop.f32.mrb[37].mxu1 }
 0x647   : > { %8916 = vst [vmem:[#allocation14_spill] sm:$0xff] %v7647_v23  ;;  %v4630_v58 = vmax.f32 %v4628_v39, %v7647_v23  ;;  %v5414_v19 = vadd.f32 %v4378_v36, %v7517_v51 }
 0x648   : > { %v7655_v16 = vmul.f32 10.0, %v5413_v54  ;;  %v7657_v10 = vpop.f32.mrb[54].mxu0 }
 0x649   : > { %v7659_v30 = vmul.f32 10.0, %v5414_v19  ;;  %v7661_v60 = vpop.f32.mrb[55].mxu0  ;;  %v4383_v50 = vpop.f32.mrb[38].mxu1 }
 0x64a   : > { %v4594_v42 = vmax.f32 %v4592_v3, %v7655_v16  ;;  %v5415_v9 = vadd.f32 %v4383_v50, %v7519_v22  ;;  %v4385_v31 = vpop.f32.mrb[39].mxu1 }
 0x64b   : > { %v4631_v56 = vmax.f32 %v4629_v46, %v7659_v30  ;;  %v5416_v39 = vadd.f32 %v4385_v31, %v7521_v15 }
 0x64c   : > { %v7667_v0 = vmul.f32 10.0, %v5415_v9 }
 0x64d   : > { %v7669_v51 = vmul.f32 10.0, %v5416_v39  ;;  %v4390_v36 = vpop.f32.mrb[40].mxu1 }
 0x64e   : > { %v4595_v54 = vmax.f32 %v4593_v38, %v7667_v0  ;;  %v5417_v19 = vadd.f32 %v4390_v36, %v7523_v20  ;;  %v4392_v23 = vpop.f32.mrb[41].mxu1 }
 0x64f   : > { %v4632_v44 = vmax.f32 %v4630_v58, %v7669_v51  ;;  %v5418_v3 = vadd.f32 %v4392_v23, %v7525_v7 }
 0x650   : > { %v7675_v22 = vmul.f32 10.0, %v5417_v19 }
 0x651   : > { %v7677_v50 = vmul.f32 10.0, %v5418_v3  ;;  %v4397_v46 = vpop.f32.mrb[42].mxu1 }
 0x652   : > { %v4596_v15 = vmax.f32 %v4594_v42, %v7675_v22  ;;  %v5419_v31 = vadd.f32 %v4397_v46, %v7527_v21  ;;  %v4399_v9 = vpop.f32.mrb[43].mxu1 }
 0x653   : > { %v4633_v39 = vmax.f32 %v4631_v56, %v7677_v50  ;;  %v5420_v38 = vadd.f32 %v4399_v9, %v7529_v41 }
 0x654   : > { %v7683_v20 = vmul.f32 10.0, %v5419_v31 }
 0x655   : > { %v7685_v36 = vmul.f32 10.0, %v5420_v38  ;;  %v4404_v58 = vpop.f32.mrb[44].mxu1 }
 0x656   : > { %v4597_v7 = vmax.f32 %v4595_v54, %v7683_v20  ;;  %v5421_v23 = vadd.f32 %v4404_v58, %v7531_v13  ;;  %v4406_v19 = vpop.f32.mrb[45].mxu1 }
 0x657   : > { %v4634_v3 = vmax.f32 %v4632_v44, %v7685_v36  ;;  %v5422_v42 = vadd.f32 %v4406_v19, %v7533_v29 }
 0x658   : > { %v7691_v21 = vmul.f32 10.0, %v5421_v23 }
 0x659   : > { %v7693_v46 = vmul.f32 10.0, %v5422_v42  ;;  %v4411_v56 = vpop.f32.mrb[46].mxu1 }
 0x65a   : > { %v4598_v41 = vmax.f32 %v4596_v15, %v7691_v21  ;;  %v5423_v31 = vadd.f32 %v4411_v56, %v7535_v40  ;;  %v4413_v9 = vpop.f32.mrb[47].mxu1 }
 0x65b   : > { %v4635_v38 = vmax.f32 %v4633_v39, %v7693_v46  ;;  %v5424_v54 = vadd.f32 %v4413_v9, %v7537_v59 }
 0x65c   : > { %v7699_v13 = vmul.f32 10.0, %v5423_v31 }
 0x65d   : > { %v7701_v58 = vmul.f32 10.0, %v5424_v54  ;;  %v4418_v44 = vpop.f32.mrb[48].mxu1 }
 0x65e   : > { %v4599_v29 = vmax.f32 %v4597_v7, %v7699_v13  ;;  %v5425_v23 = vadd.f32 %v4418_v44, %v7543_v53  ;;  %v4420_v19 = vpop.f32.mrb[49].mxu1 }
 0x65f   : > { %v4636_v42 = vmax.f32 %v4634_v3, %v7701_v58  ;;  %v5426_v15 = vadd.f32 %v4420_v19, %v7549_v18 }
 0x660   : > { %v7707_v40 = vmul.f32 10.0, %v5425_v23 }
 0x661   : > { %v7709_v56 = vmul.f32 10.0, %v5426_v15  ;;  %v4425_v39 = vpop.f32.mrb[50].mxu1 }
 0x662   : > { %v4600_v59 = vmax.f32 %v4598_v41, %v7707_v40  ;;  %v5427_v31 = vadd.f32 %v4425_v39, %v7559_v24  ;;  %v4427_v9 = vpop.f32.mrb[51].mxu1 }
 0x663   : > { %v7714_v54 = vmax.f32 %v4635_v38, %v7709_v56  ;;  %v5428_v53 = vadd.f32 %v4427_v9, %v7565_v6 }
 0x664   : > { %v7717_v7 = vmul.f32 10.0, %v5427_v31 }
 0x665   : > { %v7719_v3 = vmul.f32 10.0, %v5428_v53  ;;  %v4432_v18 = vpop.f32.mrb[52].mxu1 }
 0x666   : > { %v4601_v44 = vmax.f32 %v4599_v29, %v7717_v7  ;;  %v5429_v23 = vadd.f32 %v4432_v18, %v7573_v33  ;;  %v4434_v19 = vpop.f32.mrb[53].mxu1 }
 0x667   : > { %v4638_v41 = vmax.f32 %v4636_v42, %v7719_v3  ;;  %v5430_v24 = vadd.f32 %v4434_v19, %v7577_v32 }
 0x668   : > { %v7725_v15 = vmul.f32 10.0, %v5429_v23 }
 0x669   : > { %v7727_v38 = vmul.f32 10.0, %v5430_v24  ;;  %v4439_v39 = vpop.f32.mrb[54].mxu1 }
 0x66a   : > { %v4602_v6 = vmax.f32 %v4600_v59, %v7725_v15  ;;  %v5431_v31 = vadd.f32 %v4439_v39, %v7585_v35  ;;  %v4441_v9 = vpop.f32.mrb[55].mxu1 }
 0x66b   : > { %v4639_v29 = vmax.f32 %v7714_v54, %v7727_v38  ;;  %v5432_v33 = vadd.f32 %v4441_v9, %v7589_v61 }
 0x66c   : > { %v7734_v53 = vmul.f32 10.0, %v5431_v31 }
 0x66d   : > { %v7736_v42 = vmul.f32 10.0, %v5432_v33  ;;  %v4446_v32 = vpop.f32.mrb[56].mxu1 }
 0x66e   : > { %v4603_v18 = vmax.f32 %v4601_v44, %v7734_v53  ;;  %v5433_v23 = vadd.f32 %v4446_v32, %v7597_v27  ;;  %v4448_v19 = vpop.f32.mrb[57].mxu1 }
 0x66f   : > { %8917 = vst [vmem:[#allocation15_spill] sm:$0xff] %v7736_v42  ;;  %v4640_v59 = vmax.f32 %v4638_v41, %v7736_v42  ;;  %v5434_v35 = vadd.f32 %v4448_v19, %v7601_v2 }
 0x670   : > { %v7742_v24 = vmul.f32 10.0, %v5433_v23 }
 0x671   : > { %v4453_v39 = vpop.f32.mrb[58].mxu1 }
 0x672   : > { %v4604_v54 = vmax.f32 %v4602_v6, %v7742_v24  ;;  %v5435_v61 = vadd.f32 %v4453_v39, %v7609_v49  ;;  %v4455_v31 = vpop.f32.mrb[59].mxu1 }
 0x673   : > { %v5436_v9 = vadd.f32 %v4455_v31, %v7613_v4 }
 0x674   : > { %v7747_v33 = vmul.f32 10.0, %v5435_v61 }
 0x675   : > { %v4460_v44 = vpop.f32.mrb[60].mxu1  ;;  %v7761_v42 = vmul.f32 10.0, %v5436_v9 }
 0x676   : > { %v4605_v27 = vmax.f32 %v4603_v18, %v7747_v33  ;;  %v5437_v32 = vadd.f32 %v4460_v44, %v7621_v47  ;;  %v4462_v41 = vpop.f32.mrb[61].mxu1 }
 0x677   : > { %v5438_v2 = vadd.f32 %v4462_v41, %v7625_v12  ;;  %8918 = vst [vmem:[#allocation16_spill] sm:$0xff] %v7761_v42 }
 0x678   : > { %v7752_v23 = vmul.f32 10.0, %v5437_v32 }
 0x679   : > { %v4467_v19 = vpop.f32.mrb[62].mxu1 }
 0x67a   : > { %v4606_v6 = vmax.f32 %v4604_v54, %v7752_v23  ;;  %v5439_v49 = vadd.f32 %v4467_v19, %v7633_v8  ;;  %v4469_v39 = vpop.f32.mrb[63].mxu1  ;;  %v7766_v54 = vmul.f32 10.0, %v5434_v35 }
 0x67b   : > { %v5440_v4 = vadd.f32 %v4469_v39, %v7637_v52 }
 0x67c   : > { %v7757_v61 = vmul.f32 10.0, %v5439_v49 }
 0x67d   : > { %v4474_v31 = vpop.f32.mrb[64].mxu1  ;;  %v7768_v8 = vmul.f32 10.0, %v5440_v4 }
 0x67e   : > { %v4607_v18 = vmax.f32 %v4605_v27, %v7757_v61  ;;  %v5441_v47 = vadd.f32 %v4474_v31, %v7645_v28  ;;  %v4476_v44 = vpop.f32.mrb[65].mxu1  ;;  %v4642_v27 = vmax.f32 %v4640_v59, %v7761_v42  ;;  %v7773_v28 = vmul.f32 10.0, %v5438_v2 }
 0x67f   : > { %v5442_v12 = vadd.f32 %v4476_v44, %v7649_v34  ;;  %8919 = vst [vmem:[#allocation17_spill] sm:$0xff] %v7768_v8  ;;  %v4641_v34 = vmax.f32 %v4639_v29, %v7766_v54 }
 0x680   : > { %v7764_v32 = vmul.f32 10.0, %v5441_v47  ;;  %8920 = vst [vmem:[#allocation18_spill] sm:$0xff] %v7773_v28  ;;  %v4644_v35 = vmax.f32 %v4642_v27, %v7768_v8 }
 0x681   : > { %v4481_v41 = vpop.f32.mrb[66].mxu1  ;;  %v7780_v4 = vmul.f32 10.0, %v5442_v12  ;;  %v4643_v2 = vmax.f32 %v4641_v34, %v7773_v28 }
 0x682   : > { %v4608_v52 = vmax.f32 %v4606_v6, %v7764_v32  ;;  %v5443_v19 = vadd.f32 %v4481_v41, %v7657_v10  ;;  %v4483_v49 = vpop.f32.mrb[67].mxu1 }
 0x683   : > { %v5444_v9 = vadd.f32 %v4483_v49, %v7661_v60  ;;  %8921 = vst [vmem:[#allocation30_spill] sm:$0xff] %v7780_v4  ;;  %v4645_v29 = vmax.f32 %v4643_v2, %v7780_v4 }
 0x684   : > { %v7776_v39 = vmul.f32 10.0, %v5443_v19 }
 0x685   : > { %v7782_v31 = vmul.f32 10.0, %v5444_v9  ;;  %v4488_v6 = vpop.f32.mrb[4].mxu1 }
 0x686   : > { %v4609_v10 = vmax.f32 %v4607_v18, %v7776_v39  ;;  %v5445_v47 = vadd.f32 %v4488_v6, %v7471_v25  ;;  %v4490_v59 = vpop.f32.mrb[5].mxu1 }
 0x687   : > { %v4646_v60 = vmax.f32 %v4644_v35, %v7782_v31  ;;  %v5446_v44 = vadd.f32 %v4490_v59, %v7473_v37 }
 0x688   : > { %v7789_v41 = vmul.f32 10.0, %v5445_v47 }
 0x689   : > { %v7792_v12 = vmul.f32 10.0, %v5446_v44  ;;  %v4495_v19 = vpop.f32.mrb[6].mxu1 }
 0x68a   : > { %v4610_v49 = vmax.f32 %v4608_v52, %v7789_v41  ;;  %v5447_v18 = vadd.f32 %v4495_v19, %v7475_v57  ;;  %v4497_v27 = vpop.f32.mrb[7].mxu1 }
 0x68b   : > { %v4647_v25 = vmax.f32 %v4645_v29, %v7792_v12  ;;  %v5448_v9 = vadd.f32 %v4497_v27, %v7477_v62 }
 0x68c   : > { %v7798_v34 = vmul.f32 10.0, %v5447_v18 }
 0x68d   : > { %v7800_v35 = vmul.f32 10.0, %v5448_v9  ;;  %v4502_v37 = vpop.f32.mrb[8].mxu1 }
 0x68e   : > { %v4611_v6 = vmax.f32 %v4609_v10, %v7798_v34  ;;  %v5449_v47 = vadd.f32 %v4502_v37, %v7479_v5  ;;  %v4504_v59 = vpop.f32.mrb[9].mxu1 }
 0x68f   : > { %v4648_v2 = vmax.f32 %v4646_v60, %v7800_v35  ;;  %v5450_v52 = vadd.f32 %v4504_v59, %v7481_v1 }
 0x690   : > { %v7806_v57 = vmul.f32 10.0, %v5449_v47 }
 0x691   : > { %v7808_v44 = vmul.f32 10.0, %v5450_v52  ;;  %v4509_v29 = vpop.f32.mrb[10].mxu1 }
 0x692   : > { %v4612_v62 = vmax.f32 %v4610_v49, %v7806_v57  ;;  %v5451_v19 = vadd.f32 %v4509_v29, %v7483_v17  ;;  %v4511_v18 = vpop.f32.mrb[11].mxu1 }
 0x693   : > { %v4649_v27 = vmax.f32 %v4647_v25, %v7808_v44  ;;  %v5452_v10 = vadd.f32 %v4511_v18, %v7485_v55 }
 0x694   : > { %v7814_v5 = vmul.f32 10.0, %v5451_v19 }
 0x695   : > { %v7816_v9 = vmul.f32 10.0, %v5452_v10  ;;  %v4516_v60 = vpop.f32.mrb[12].mxu1 }
 0x696   : > { %v4613_v1 = vmax.f32 %v4611_v6, %v7814_v5  ;;  %v5453_v37 = vadd.f32 %v4516_v60, %v7487_v43  ;;  %v4518_v47 = vpop.f32.mrb[13].mxu1 }
 0x697   : > { %v4650_v59 = vmax.f32 %v4648_v2, %v7816_v9  ;;  %v5454_v49 = vadd.f32 %v4518_v47, %v7489_v14 }
 0x698   : > { %v7822_v17 = vmul.f32 10.0, %v5453_v37 }
 0x699   : > { %v7824_v52 = vmul.f32 10.0, %v5454_v49  ;;  %v8923_v49 = vld [vmem:[#allocation29_spill] sm:$0xff] }
 0x69a   : > { %v4614_v55 = vmax.f32 %v4612_v62, %v7822_v17 }
 0x69b   : > { %v4651_v25 = vmax.f32 %v4649_v27, %v7824_v52 }
 0x69c   : > { %v4615_v29 = vmax.f32 %v4613_v1, %v4614_v55 }
 0x69d   : > { %v4652_v19 = vmax.f32 %v4650_v59, %v4651_v25 }
 0x69e   : > { %v4616_v18 = vrot.slane %v4615_v29, 4 }
 0x69f   : > { %v4653_v10 = vrot.slane %v4652_v19, 4 }
 0x6a0   : > { %v4617_v6 = vmax.f32 %v4615_v29, %v4616_v18 }
 0x6a1   : > { %v4654_v4 = vmax.f32 %v4652_v19, %v4653_v10  ;;  %v8939_v10 = vld [vmem:[#allocation12_spill] sm:$0xff] }
 0x6a2   : > { %v4618_v43 = vrot.slane %v4617_v6, 2 }
 0x6a3   : > { %v4655_v60 = vrot.slane %v4654_v4, 2 }
 0x6a4   : > { %v4619_v8 = vmax.f32 %v4617_v6, %v4618_v43  ;;  %v8928_v43 = vld [vmem:[#allocation23_spill] sm:$0xff] }
 0x6a5   : > { %v4656_v2 = vmax.f32 %v4654_v4, %v4655_v60 }
 0x6a6   : > { %v4620_v28 = vrot.slane %v4619_v8, 1 }
 0x6a7   : > { %v4657_v14 = vrot.slane %v4656_v2, 1 }
 0x6a8   : > { %v7828_v37 = vmax.f32 %v4619_v8, %v4620_v28  ;;  %v8922_v8 = vld [vmem:[#allocation26_spill] sm:$0xff] }
 0x6a9   : > { %v7830_v47 = vmax.f32 %v4656_v2, %v4657_v14  ;;  %v8931_v14 = vld [vmem:[#allocation11_spill] sm:$0xff] }
 0x6aa   : > { %v4659_v62 = vsub.f32 %v7539_v11, %v7828_v37  ;;  %v4661_v27 = vsub.f32 %v7555_v63, %v7828_v37  ;;  %v4663_v1 = vsub.f32 %v7541_v48, %v7828_v37  ;;  %v4665_v59 = vsub.f32 %v7557_v26, %v7828_v37  ;;  %v8924_v11 = vld [vmem:[#allocation19_spill] sm:$0xff]  ;;  %v8925_v63 = vld [vmem:[#allocation21_spill] sm:$0xff]  ;;  %v8926_v48 = vld [vmem:[#allocation24_spill] sm:$0xff] }
 0x6ab   : > { %v4667_v4 = vsub.f32 %v7571_v45, %v7828_v37  ;;  %v4669_v28 = vsub.f32 %v8922_v8, %v7828_v37  ;;  %v4671_v55 = vsub.f32 %v8923_v49, %v7828_v37  ;;  %v4673_v25 = vsub.f32 %v8924_v11, %v7828_v37  ;;  %v8927_v26 = vld [vmem:[#allocation13_spill] sm:$0xff] }
 0x6ac   : > { %v4675_v29 = vsub.f32 %v8925_v63, %v7828_v37  ;;  %v4677_v19 = vsub.f32 %v8926_v48, %v7828_v37  ;;  %v4723_v60 = vmul.f32 1.442695, %v4659_v62  ;;  %v4727_v8 = vmul.f32 1.442695, %v4661_v27  ;;  %v8929_v11 = vld [vmem:[#allocation9_spill] sm:$0xff]  ;;  %v8930_v62 = vld [vmem:[#allocation10_spill] sm:$0xff] }
 0x6ad   : > { %v4731_v6 = vmul.f32 1.442695, %v4663_v1  ;;  %v4735_v63 = vmul.f32 1.442695, %v4665_v59  ;;  %v4739_v48 = vmul.f32 1.442695, %v4667_v4 }
 0x6ae   : > { %5774 = vpow2.f32 %v4723_v60  ;;  %v4743_v45 = vmul.f32 1.442695, %v4669_v28  ;;  %v4747_v2 = vmul.f32 1.442695, %v4671_v55  ;;  %v4751_v18 = vmul.f32 1.442695, %v4673_v25 }
 0x6af   : > { %5776 = vpow2.f32 %v4727_v8  ;;  %v8932_v49 = vld [vmem:[#allocation25_spill] sm:$0xff]  ;;  %v8933_v60 = vld [vmem:[#allocation28_spill] sm:$0xff]  ;;  %v4755_v4 = vmul.f32 1.442695, %v4675_v29  ;;  %v8940_v59 = vld [vmem:[#allocation14_spill] sm:$0xff] }
 0x6b0   : > { %5778 = vpow2.f32 %v4731_v6  ;;  %v8935_v28 = vld [vmem:[#allocation32_spill] sm:$0xff]  ;;  %v4759_v42 = vmul.f32 1.442695, %v4677_v19  ;;  %v8943_v19 = vld [vmem:[#allocation15_spill] sm:$0xff] }
 0x6b1   : > { %5780 = vpow2.f32 %v4735_v63  ;;  %v8936_v25 = vld [vmem:[#allocation20_spill] sm:$0xff]  ;;  %v8945_v63 = vsub.f32 %v7655_v16, %v7828_v37 }
 0x6b2   : > { %5782 = vpow2.f32 %v4739_v48 }
 0x6b3   : > { %5784 = vpow2.f32 %v4743_v45  ;;  %v8937_v45 = vld [vmem:[#allocation22_spill] sm:$0xff]  ;;  %v4767_v8 = vmul.f32 1.442695, %v8945_v63  ;;  %v8948_v63 = vsub.f32 %v7683_v20, %v7828_v37  ;;  %v8951_v20 = vsub.f32 %v7707_v40, %v7828_v37 }
 0x6b4   : > { %5786 = vpow2.f32 %v4747_v2 }
 0x6b5   : > { %5788 = vpow2.f32 %v4751_v18  ;;  %v8942_v18 = vsub.f32 %v8927_v26, %v7828_v37  ;;  %v8946_v26 = vsub.f32 %v7667_v0, %v7828_v37  ;;  %v4779_v16 = vmul.f32 1.442695, %v8948_v63 }
 0x6b6   : > { %5790 = vpow2.f32 %v4755_v4  ;;  %v4791_v63 = vmul.f32 1.442695, %v8951_v20 }
 0x6b7   : > { %v4763_v1 = vmul.f32 1.442695, %v8942_v18  ;;  %5792 = vpow2.f32 %v4759_v42  ;;  %v4771_v18 = vmul.f32 1.442695, %v8946_v26 }
 0x6b8   : > { %v7908_v6 = vpop.eup %5774 }
 0x6b9   : > { %8934 = vst [vmem:[#allocation33_spill] sm:$0xff] %v7908_v6  ;;  %v7916_v48 = vpop.eup %5776  ;;  %5794 = vpow2.f32 %v4763_v1 }
 0x6ba   : > { %8938 = vst [vmem:[#allocation27_spill] sm:$0xff] %v7916_v48  ;;  %v4851_v55 = vadd.f32 %v7916_v48, %v7908_v6  ;;  %v7930_v2 = vpop.eup %5778  ;;  %5796 = vpow2.f32 %v4767_v8 }
 0x6bb   : > { %8941 = vst [vmem:[#allocation31_spill] sm:$0xff] %v7930_v2  ;;  %v7943_v48 = vpop.eup %5780  ;;  %5798 = vpow2.f32 %v4771_v18 }
 0x6bc   : > { %v4852_v29 = vadd.f32 %v7930_v2, %v4851_v55  ;;  %v7953_v2 = vpop.eup %5782 }
 0x6bd   : > { %8944 = vst [vmem:[#allocation34_spill] sm:$0xff] %v7953_v2  ;;  %v7968_v42 = vpop.eup %5784 }
 0x6be   : > { %v4853_v55 = vadd.f32 %v7943_v48, %v4852_v29  ;;  %v7977_v26 = vpop.eup %5786  ;;  %v8947_v29 = vsub.f32 %v7675_v22, %v7828_v37  ;;  %v8950_v22 = vsub.f32 %v7699_v13, %v7828_v37  ;;  %v8954_v13 = vsub.f32 %v8929_v11, %v7830_v47 }
 0x6bf   : > { %v7983_v4 = vpop.eup %5788 }
 0x6c0   : > { %v4854_v27 = vadd.f32 %v7953_v2, %v4853_v55  ;;  %v4775_v6 = vmul.f32 1.442695, %v8947_v29  ;;  %v7989_v2 = vpop.eup %5790  ;;  %v4787_v29 = vmul.f32 1.442695, %v8950_v22 }
 0x6c1   : > { %v7998_v18 = vpop.eup %5792 }
 0x6c2   : > { %v4855_v55 = vadd.f32 %v7968_v42, %v4854_v27  ;;  %5800 = vpow2.f32 %v4775_v6  ;;  %v8949_v27 = vsub.f32 %v7691_v21, %v7828_v37  ;;  %v8952_v6 = vsub.f32 %v8928_v43, %v7830_v47 }
 0x6c3   : > { %5802 = vpow2.f32 %v4779_v16  ;;  %v8955_v16 = vsub.f32 %v7717_v7, %v7828_v37  ;;  %v8957_v43 = vsub.f32 %v8930_v62, %v7830_v47  ;;  %v8960_v7 = vsub.f32 %v8931_v14, %v7830_v47 }
 0x6c4   : > { %v4856_v1 = vadd.f32 %v7977_v26, %v4855_v55  ;;  %v4783_v8 = vmul.f32 1.442695, %v8949_v27  ;;  %v4725_v21 = vmul.f32 1.442695, %v8952_v6  ;;  %v8007_v27 = vpop.eup %5794 }
 0x6c5   : > { %8953 = vst [vmem:[#allocation35_spill] sm:$0xff] %v8007_v27  ;;  %v4795_v22 = vmul.f32 1.442695, %v8955_v16  ;;  %v8016_v20 = vpop.eup %5796 }
 0x6c6   : > { %v4857_v0 = vadd.f32 %v7983_v4, %v4856_v1  ;;  %5804 = vpow2.f32 %v4783_v8  ;;  %8956 = vst [vmem:[#allocation26_spill] sm:$0xff] %v8016_v20  ;;  %v8958_v8 = vsub.f32 %v7725_v15, %v7828_v37  ;;  %v8963_v15 = vsub.f32 %v8932_v49, %v7830_v47 }
 0x6c7   : > { %5806 = vpow2.f32 %v4787_v29  ;;  %v8025_v29 = vpop.eup %5798 }
 0x6c8   : > { %v4858_v55 = vadd.f32 %v7989_v2, %v4857_v0  ;;  %v4729_v0 = vmul.f32 1.442695, %v8954_v13  ;;  %5808 = vpow2.f32 %v4791_v63  ;;  %v4799_v6 = vmul.f32 1.442695, %v8958_v8  ;;  %8959 = vst [vmem:[#allocation29_spill] sm:$0xff] %v8025_v29 }
 0x6c9   : > { %5810 = vpow2.f32 %v4725_v21  ;;  %v8961_v63 = vsub.f32 %v7734_v53, %v7828_v37  ;;  %v4741_v21 = vmul.f32 1.442695, %v8963_v15  ;;  %v8965_v53 = vsub.f32 %v8933_v60, %v7830_v47 }
 0x6ca   : > { %v4859_v1 = vadd.f32 %v7998_v18, %v4858_v55  ;;  %v4733_v55 = vmul.f32 1.442695, %v8957_v43  ;;  %5812 = vpow2.f32 %v4729_v0  ;;  %v8964_v0 = vsub.f32 %v7742_v24, %v7828_v37 }
 0x6cb   : > { %5814 = vpow2.f32 %v4795_v22  ;;  %v4803_v62 = vmul.f32 1.442695, %v8961_v63  ;;  %v4745_v43 = vmul.f32 1.442695, %v8965_v53  ;;  %v8967_v24 = vsub.f32 %v8935_v28, %v7830_v47 }
 0x6cc   : > { %v4860_v40 = vadd.f32 %v8007_v27, %v4859_v1  ;;  %v4737_v1 = vmul.f32 1.442695, %v8960_v7  ;;  %v8034_v16 = vpop.eup %5800  ;;  %5816 = vpow2.f32 %v4733_v55  ;;  %v4807_v14 = vmul.f32 1.442695, %v8964_v0 }
 0x6cd   : > { %8962 = vst [vmem:[#allocation19_spill] sm:$0xff] %v8034_v16  ;;  %5818 = vpow2.f32 %v4799_v6  ;;  %v8966_v55 = vsub.f32 %v7747_v33, %v7828_v37  ;;  %v8968_v60 = vsub.f32 %v7752_v23, %v7828_v37  ;;  %v8970_v28 = vsub.f32 %v7757_v61, %v7828_v37 }
 0x6ce   : > { %v4861_v11 = vadd.f32 %v8016_v20, %v4860_v40  ;;  %v8043_v40 = vpop.eup %5802  ;;  %5820 = vpow2.f32 %v4737_v1 }
 0x6cf   : > { %5822 = vpow2.f32 %v4803_v62  ;;  %v4811_v49 = vmul.f32 1.442695, %v8966_v55  ;;  %v4815_v1 = vmul.f32 1.442695, %v8968_v60  ;;  %v8969_v62 = vsub.f32 %v8936_v25, %v7830_v47 }
 0x6d0   : > { %v4862_v13 = vadd.f32 %v8025_v29, %v4861_v11  ;;  %v8052_v6 = vpop.eup %5804  ;;  %5824 = vpow2.f32 %v4741_v21  ;;  %v4749_v11 = vmul.f32 1.442695, %v8967_v24  ;;  %v4819_v21 = vmul.f32 1.442695, %v8970_v28 }
 0x6d1   : > { %v8057_v7 = vpop.eup %5806  ;;  %5826 = vpow2.f32 %v4807_v14  ;;  %v8971_v14 = vsub.f32 %v8937_v45, %v7830_v47  ;;  %v8972_v25 = vsub.f32 %v7764_v32, %v7828_v37  ;;  %v8976_v28 = vsub.f32 %v7789_v41, %v7828_v37 }
 0x6d2   : > { %v4863_v22 = vadd.f32 %v8034_v16, %v4862_v13  ;;  %v8063_v33 = vpop.eup %5808  ;;  %5828 = vpow2.f32 %v4745_v43  ;;  %v4753_v13 = vmul.f32 1.442695, %v8969_v62  ;;  %v8975_v62 = vsub.f32 %v8940_v59, %v7830_v47 }
 0x6d3   : > { %v8068_v15 = vpop.eup %5810  ;;  %5830 = vpow2.f32 %v4811_v49  ;;  %v4823_v43 = vmul.f32 1.442695, %v8972_v25 }
 0x6d4   : > { %v4864_v8 = vadd.f32 %v8043_v40, %v4863_v22  ;;  %v8074_v23 = vpop.eup %5812  ;;  %5832 = vpow2.f32 %v4749_v11  ;;  %v4757_v22 = vmul.f32 1.442695, %v8971_v14  ;;  %v8974_v11 = vsub.f32 %v7776_v39, %v7828_v37 }
 0x6d5   : > { %v8079_v53 = vpop.eup %5814  ;;  %5834 = vpow2.f32 %v4815_v1  ;;  %v4888_v61 = vadd.f32 %v8074_v23, %v8068_v15 }
 0x6d6   : > { %v4865_v63 = vadd.f32 %v8052_v6, %v4864_v8  ;;  %v8087_v49 = vpop.eup %5816  ;;  %5836 = vpow2.f32 %v4753_v13  ;;  %v8973_v8 = vsub.f32 %v8939_v10, %v7830_v47  ;;  %v4827_v32 = vmul.f32 1.442695, %v8974_v11 }
 0x6d7   : > { %v8092_v24 = vpop.eup %5818  ;;  %5838 = vpow2.f32 %v4819_v21  ;;  %v4889_v1 = vadd.f32 %v8087_v49, %v4888_v61  ;;  %v4765_v13 = vmul.f32 1.442695, %v8975_v62  ;;  %v4831_v21 = vmul.f32 1.442695, %v8976_v28 }
 0x6d8   : > { %v4866_v0 = vadd.f32 %v8057_v7, %v4865_v63  ;;  %v4761_v45 = vmul.f32 1.442695, %v8973_v8  ;;  %v8099_v63 = vpop.eup %5820  ;;  %5840 = vpow2.f32 %v4757_v22  ;;  %v8977_v22 = vsub.f32 %v7659_v30, %v7830_v47 }
 0x6d9   : > { %v8104_v10 = vpop.eup %5822  ;;  %5842 = vpow2.f32 %v4823_v43  ;;  %v8978_v43 = vsub.f32 %v7798_v34, %v7828_v37 }
 0x6da   : > { %v4867_v55 = vadd.f32 %v8063_v33, %v4866_v0  ;;  %v4890_v0 = vadd.f32 %v8099_v63, %v4889_v1  ;;  %v8111_v14 = vpop.eup %5824  ;;  %5844 = vpow2.f32 %v4761_v45  ;;  %v4769_v25 = vmul.f32 1.442695, %v8977_v22 }
 0x6db   : > { %v8116_v59 = vpop.eup %5826  ;;  %5846 = vpow2.f32 %v4827_v32  ;;  %v8979_v45 = vsub.f32 %v7669_v51, %v7830_v47  ;;  %v8980_v32 = vsub.f32 %v7806_v57, %v7828_v37 }
 0x6dc   : > { %v4868_v60 = vadd.f32 %v8079_v53, %v4867_v55  ;;  %v4835_v55 = vmul.f32 1.442695, %v8978_v43  ;;  %v4891_v61 = vadd.f32 %v8111_v14, %v4890_v0  ;;  %v8123_v8 = vpop.eup %5828  ;;  %5848 = vpow2.f32 %v4765_v13 }
 0x6dd   : > { %v4773_v11 = vmul.f32 1.442695, %v8979_v45  ;;  %v8128_v30 = vpop.eup %5830  ;;  %5850 = vpow2.f32 %v4831_v21  ;;  %v8981_v13 = vsub.f32 %v7677_v50, %v7830_v47  ;;  %v8982_v21 = vsub.f32 %v7814_v5, %v7828_v37 }
 0x6de   : > { %v4869_v39 = vadd.f32 %v8092_v24, %v4868_v60  ;;  %v4839_v60 = vmul.f32 1.442695, %v8980_v32  ;;  %v4892_v1 = vadd.f32 %v8123_v8, %v4891_v61  ;;  %v8135_v62 = vpop.eup %5832  ;;  %5852 = vpow2.f32 %v4769_v25 }
 0x6df   : > { %v4777_v28 = vmul.f32 1.442695, %v8981_v13  ;;  %v8140_v51 = vpop.eup %5834  ;;  %5854 = vpow2.f32 %v4835_v55  ;;  %v8983_v25 = vsub.f32 %v7685_v36, %v7830_v47  ;;  %v8984_v55 = vsub.f32 %v7822_v17, %v7828_v37 }
 0x6e0   : > { %v4870_v41 = vadd.f32 %v8104_v10, %v4869_v39  ;;  %v4843_v39 = vmul.f32 1.442695, %v8982_v21  ;;  %v4893_v0 = vadd.f32 %v8135_v62, %v4892_v1  ;;  %v8147_v22 = vpop.eup %5836  ;;  %5856 = vpow2.f32 %v4773_v11 }
 0x6e1   : > { %v4781_v43 = vmul.f32 1.442695, %v8983_v25  ;;  %v8152_v50 = vpop.eup %5838  ;;  %5858 = vpow2.f32 %v4839_v60  ;;  %v8985_v11 = vsub.f32 %v7693_v46, %v7830_v47  ;;  %v8986_v37 = vsub.f32 %v7701_v58, %v7830_v47 }
 0x6e2   : > { %v4871_v34 = vadd.f32 %v8116_v59, %v4870_v41  ;;  %v4847_v41 = vmul.f32 1.442695, %v8984_v55  ;;  %v4894_v61 = vadd.f32 %v8147_v22, %v4893_v0  ;;  %v8159_v45 = vpop.eup %5840  ;;  %5860 = vpow2.f32 %v4777_v28 }
 0x6e3   : > { %v4785_v32 = vmul.f32 1.442695, %v8985_v11  ;;  %v8164_v36 = vpop.eup %5842  ;;  %5862 = vpow2.f32 %v4843_v39  ;;  %v4789_v1 = vmul.f32 1.442695, %v8986_v37  ;;  %v8987_v39 = vsub.f32 %v7709_v56, %v7830_v47 }
 0x6e4   : > { %v4872_v57 = vadd.f32 %v8128_v30, %v4871_v34  ;;  %v4895_v34 = vadd.f32 %v8159_v45, %v4894_v61  ;;  %v8168_v17 = vpop.eup %5844  ;;  %5864 = vpow2.f32 %v4781_v43  ;;  %v8989_v55 = vsub.f32 %v7719_v3, %v7830_v47 }
 0x6e5   : > { %v8173_v13 = vpop.eup %5846  ;;  %5866 = vpow2.f32 %v4847_v41 }
 0x6e6   : > { %v4873_v5 = vadd.f32 %v8140_v51, %v4872_v57  ;;  %v4896_v28 = vadd.f32 %v8168_v17, %v4895_v34  ;;  %v8177_v21 = vpop.eup %5848  ;;  %5868 = vpow2.f32 %v4785_v32  ;;  %v4793_v57 = vmul.f32 1.442695, %v8987_v39 }
 0x6e7   : > { %v8182_v0 = vpop.eup %5850  ;;  %5870 = vpow2.f32 %v4789_v1  ;;  %v4797_v41 = vmul.f32 1.442695, %v8989_v55  ;;  %v4702_v32 = vsub.f32 %v7766_v54, %v7830_v47  ;;  %v8994_v54 = vsub.f32 %v8943_v19, %v7830_v47 }
 0x6e8   : > { %v4874_v60 = vadd.f32 %v8152_v50, %v4873_v5  ;;  %v4897_v58 = vadd.f32 %v8177_v21, %v4896_v28  ;;  %v8186_v43 = vpop.eup %5852  ;;  %5872 = vpow2.f32 %v4793_v57  ;;  %v8993_v28 = vld [vmem:[#allocation16_spill] sm:$0xff] }
 0x6e9   : > { %8988 = vst [vmem:[#allocation21_spill] sm:$0xff] %v8186_v43  ;;  %v8191_v5 = vpop.eup %5854  ;;  %v4704_v39 = vsub.f32 %v8993_v28, %v7830_v47  ;;  %5874 = vpow2.f32 %v4797_v41  ;;  %v4805_v57 = vmul.f32 1.442695, %v8994_v54  ;;  %v8996_v54 = vld [vmem:[#allocation17_spill] sm:$0xff] }
 0x6ea   : > { %v4875_v46 = vadd.f32 %v8164_v36, %v4874_v60  ;;  %v4898_v56 = vadd.f32 %v8186_v43, %v4897_v58  ;;  %v8195_v11 = vpop.eup %5856  ;;  %v8991_v60 = vsub.f32 %v7727_v38, %v7830_v47 }
 0x6eb   : > { %8990 = vst [vmem:[#allocation24_spill] sm:$0xff] %v8195_v11  ;;  %v8202_v37 = vpop.eup %5858 }
 0x6ec   : > { %v4876_v25 = vadd.f32 %v8173_v13, %v4875_v46  ;;  %v4801_v34 = vmul.f32 1.442695, %v8991_v60  ;;  %v4899_v1 = vadd.f32 %v8195_v11, %v4898_v56  ;;  %v8206_v46 = vpop.eup %5860  ;;  %v4809_v60 = vmul.f32 1.442695, %v4702_v32  ;;  %v8997_v32 = vld [vmem:[#allocation30_spill] sm:$0xff] }
 0x6ed   : > { %8992 = vst [vmem:[#allocation13_spill] sm:$0xff] %v8206_v46 }
 0x6ee   : > { %v4877_v61 = vadd.f32 %v8182_v0, %v4876_v25  ;;  %v8213_v25 = vpop.eup %5862  ;;  %v4900_v58 = vadd.f32 %v8206_v46, %v4899_v1  ;;  %5876 = vpow2.f32 %v4801_v34  ;;  %v4813_v1 = vmul.f32 1.442695, %v4704_v39 }
 0x6ef   : > { %v8217_v55 = vpop.eup %5864  ;;  %5878 = vpow2.f32 %v4805_v57  ;;  %v4710_v34 = vsub.f32 %v8997_v32, %v7830_v47 }
 0x6f0   : > { %v4878_v3 = vadd.f32 %v8191_v5, %v4877_v61  ;;  %v8995_v61 = vld [vmem:[#allocation18_spill] sm:$0xff]  ;;  %v8221_v16 = vpop.eup %5866  ;;  %v4901_v19 = vadd.f32 %v8217_v55, %v4900_v58  ;;  %5880 = vpow2.f32 %v4809_v60 }
 0x6f1   : > { %v4706_v56 = vsub.f32 %v8995_v61, %v7830_v47  ;;  %v8225_v28 = vpop.eup %5868  ;;  %5882 = vpow2.f32 %v4813_v1 }
 0x6f2   : > { %v4879_v38 = vadd.f32 %v8202_v37, %v4878_v3  ;;  %v4708_v3 = vsub.f32 %v8996_v54, %v7830_v47  ;;  %v4902_v46 = vadd.f32 %v8225_v28, %v4901_v19  ;;  %v8231_v61 = vpop.eup %5870  ;;  %v4825_v19 = vmul.f32 1.442695, %v4710_v34 }
 0x6f3   : > { %v8236_v20 = vpop.eup %5872 }
 0x6f4   : > { %v4880_v41 = vadd.f32 %v8213_v25, %v4879_v38  ;;  %v4817_v38 = vmul.f32 1.442695, %v4706_v56  ;;  %v4903_v58 = vadd.f32 %v8231_v61, %v4902_v46  ;;  %v4821_v54 = vmul.f32 1.442695, %v4708_v3 }
 0x6f5   : > { %v8998_v46 = vsub.f32 %v7782_v31, %v7830_v47  ;;  %v9000_v31 = vsub.f32 %v7800_v35, %v7830_v47 }
 0x6f6   : > { %v4881_v29 = vadd.f32 %v8221_v16, %v4880_v41  ;;  %v4904_v39 = vadd.f32 %v8236_v20, %v4903_v58  ;;  %v8239_v41 = vpop.eup %5874  ;;  %5884 = vpow2.f32 %v4817_v38 }
 0x6f7   : > { %5886 = vpow2.f32 %v4821_v54  ;;  %v4829_v56 = vmul.f32 1.442695, %v8998_v46  ;;  %v4837_v54 = vmul.f32 1.442695, %v9000_v31 }
 0x6f8   : > { %v4882_v11 = vrot.slane %v4881_v29, 4  ;;  %v4905_v43 = vadd.f32 %v8239_v41, %v4904_v39  ;;  %v8242_v32 = vpop.eup %5876  ;;  %5888 = vpow2.f32 %v4825_v19 }
 0x6f9   : > { %5890 = vpow2.f32 %v4829_v56  ;;  %v9002_v56 = vsub.f32 %v7816_v9, %v7830_v47 }
 0x6fa   : > { %v4883_v57 = vadd.f32 %v4882_v11, %v4881_v29  ;;  %v4906_v3 = vadd.f32 %v8242_v32, %v4905_v43  ;;  %v8248_v29 = vpop.eup %5878  ;;  %v8999_v11 = vsub.f32 %v7792_v12, %v7830_v47 }
 0x6fb   : > { %v8254_v58 = vpop.eup %5880  ;;  %v4845_v35 = vmul.f32 1.442695, %v9002_v56 }
 0x6fc   : > { %v4884_v27 = vrot.slane %v4883_v57, 2  ;;  %v4833_v1 = vmul.f32 1.442695, %v8999_v11  ;;  %v4907_v38 = vadd.f32 %v8248_v29, %v4906_v3  ;;  %v8263_v39 = vpop.eup %5882  ;;  %v9003_v11 = vsub.f32 %v7824_v52, %v7830_v47 }
 0x6fe   : > { %v4885_v60 = vadd.f32 %v4884_v27, %v4883_v57  ;;  %v9001_v27 = vsub.f32 %v7808_v44, %v7830_v47  ;;  %v4908_v57 = vadd.f32 %v8254_v58, %v4907_v38  ;;  %5892 = vpow2.f32 %v4833_v1 }
 0x6ff   : > { %5894 = vpow2.f32 %v4837_v54 }
 0x700   : > { %v4886_v34 = vrot.slane %v4885_v60, 1  ;;  %v4841_v43 = vmul.f32 1.442695, %v9001_v27  ;;  %v4909_v19 = vadd.f32 %v8263_v39, %v4908_v57  ;;  %v8266_v46 = vpop.eup %5884 }
 0x701   : > { %v8272_v44 = vpop.eup %5886 }
 0x702   : > { %v4887_v12 = vadd.f32 %v4886_v34, %v4885_v60  ;;  %5896 = vpow2.f32 %v4841_v43  ;;  %v4910_v3 = vadd.f32 %v8266_v46, %v4909_v19  ;;  %v4849_v60 = vmul.f32 1.442695, %v9003_v11  ;;  %v8278_v34 = vpop.eup %5888 }
 0x703   : > { %v8281_v31 = vpop.eup %5890 }
 0x704   : > { %5898 = vrcp.f32 %v4887_v12  ;;  %v4911_v1 = vadd.f32 %v8272_v44, %v4910_v3 }
 0x705   : > { %5900 = vpow2.f32 %v4845_v35 }
 0x706   : > { %v4912_v38 = vadd.f32 %v8278_v34, %v4911_v1  ;;  %5902 = vpow2.f32 %v4849_v60 }
 0x708   : > { %v4913_v9 = vadd.f32 %v8281_v31, %v4912_v38  ;;  %v8284_v54 = vpop.eup %5892 }
 0x709   : > { %v8287_v43 = vpop.eup %5894 }
 0x70a   : > { %v4914_v27 = vadd.f32 %v8284_v54, %v4913_v9 }
 0x70c   : > { %v8289_v52 = vpop.eup %5896  ;;  %v4915_v47 = vadd.f32 %v8287_v43, %v4914_v27 }
 0x70e   : > { %v8292_v57 = vpop.eup %5898  ;;  %v4916_v12 = vadd.f32 %v8289_v52, %v4915_v47 }
 0x70f   : > { %v8295_v19 = vpop.eup %5900  ;;  %v8300_v35 = vmul.f32 %v8292_v57, %v8043_v40  ;;  %v8304_v3 = vmul.f32 %v8292_v57, %v8052_v6  ;;  %v8310_v60 = vmul.f32 %v8292_v57, %v8057_v7  ;;  %v8314_v1 = vmul.f32 %v8292_v57, %v8063_v33 }
 0x710   : > { %v4917_v56 = vadd.f32 %v8295_v19, %v4916_v12  ;;  %v8306_v11 = vpop.eup %5902  ;;  %v8321_v9 = vmul.f32 %v8292_v57, %v8079_v53  ;;  %v8325_v6 = vmul.f32 %v8292_v57, %v8092_v24  ;;  %v8331_v33 = vmul.f32 %v8292_v57, %v8104_v10 }
 0x711   : > { %v8335_v27 = vmul.f32 %v8292_v57, %v8116_v59  ;;  %v8339_v47 = vmul.f32 %v8292_v57, %v8128_v30  ;;  %v8345_v12 = vmul.f32 %v8292_v57, %v8140_v51  ;;  %v8349_v10 = vmul.f32 %v8292_v57, %v8152_v50 }
 0x712   : > { %v4918_v38 = vadd.f32 %v8306_v11, %v4917_v56  ;;  %v8355_v56 = vmul.f32 %v8292_v57, %v8164_v36  ;;  %v8359_v30 = vmul.f32 %v8292_v57, %v8173_v13  ;;  %v8363_v24 = vmul.f32 %v8292_v57, %v8182_v0 }
 0x713   : > { %9004 = vst [vmem:[#allocation23_spill] sm:$0xff] %v8349_v10  ;;  %v8369_v7 = vmul.f32 %v8292_v57, %v8191_v5  ;;  %v8373_v36 = vmul.f32 %v8292_v57, %v8202_v37  ;;  %v8381_v0 = vmul.f32 %v8292_v57, %v8213_v25  ;;  %v9010_v10 = vld [vmem:[#allocation31_spill] sm:$0xff] }
 0x714   : > { %v4919_v53 = vrot.slane %v4918_v38, 4  ;;  %9005 = vst [vmem:[#allocation9_spill] sm:$0xff] %v8355_v56  ;;  %9006 = vst [vmem:[#allocation10_spill] sm:$0xff] %v8359_v30  ;;  %v9008_v30 = vld [vmem:[#allocation33_spill] sm:$0xff]  ;;  %v4931_v56 = vmul.f32 %v8292_v57, %v9010_v10 }
 0x715   : > { %9007 = vst [vmem:[#allocation11_spill] sm:$0xff] %v8363_v24  ;;  %v4927_v25 = vmul.f32 %v8292_v57, %v9008_v30  ;;  %v9009_v24 = vld [vmem:[#allocation27_spill] sm:$0xff] }
 0x716   : > { %v4920_v51 = vadd.f32 %v4919_v53, %v4918_v38  ;;  %v8385_v38 = vmul.f32 %v8292_v57, %v8221_v16  ;;  %v4929_v16 = vmul.f32 %v8292_v57, %v9009_v24  ;;  %v4933_v53 = vmul.f32 %v8292_v57, %v7943_v48 }
 0x718   : > { %v4921_v5 = vrot.slane %v4920_v51, 2  ;;  %v4997_v48 = vpack.c.bf16 %v4929_v16, %v4927_v25 }
 0x71a   : > { %v4922_v50 = vadd.f32 %v4921_v5, %v4920_v51  ;;  %v9011_v5 = vld [vmem:[#allocation34_spill] sm:$0xff] }
 0x71c   : > { %v4923_v13 = vrot.slane %v4922_v50, 1 }
 0x71e   : > { %v4924_v40 = vadd.f32 %v4923_v13, %v4922_v50 }
 0x720   : > { %5904 = vrcp.f32 %v4924_v40 }
 0x72a   : > { %v8391_v59 = vpop.eup %5904 }
 0x72b   : > { %v4928_v51 = vmul.f32 %v8391_v59, %v8068_v15  ;;  %v4930_v40 = vmul.f32 %v8391_v59, %v8074_v23  ;;  %v4932_v50 = vmul.f32 %v8391_v59, %v8087_v49  ;;  %v4934_v30 = vmul.f32 %v8391_v59, %v8099_v63 }
 0x72c   : > { %v4936_v24 = vmul.f32 %v8391_v59, %v8111_v14  ;;  %v4938_v10 = vmul.f32 %v8391_v59, %v8123_v8  ;;  %v4935_v15 = vmul.f32 %v8292_v57, %v9011_v5  ;;  %v4937_v23 = vmul.f32 %v8292_v57, %v7968_v42 }
 0x72d   : > { %v4998_v13 = vpack.c.bf16 %v4930_v40, %v4928_v51  ;;  %v4939_v49 = vmul.f32 %v8292_v57, %v7977_v26  ;;  %v5000_v37 = vpack.c.bf16 %v4934_v30, %v4932_v50  ;;  %v4999_v63 = vpack.c.bf16 %v4933_v53, %v4931_v56 }
 0x72e   : > { %v4940_v51 = vmul.f32 %v8391_v59, %v8135_v62  ;;  %v8423_v14 = vmul.f32 %v8391_v59, %v8217_v55  ;;  %v4942_v8 = vmul.f32 %v8391_v59, %v8147_v22  ;;  %v4958_v42 = vmul.f32 %v8391_v59, %v8225_v28 }
 0x72f   : > { %5029 = vmatprep.subr.bf16.mxu0 %v4998_v13  ;;  %v4960_v26 = vmul.f32 %v8391_v59, %v8231_v61  ;;  %v4962_v56 = vmul.f32 %v8391_v59, %v8236_v20  ;;  %v5002_v53 = vpack.c.bf16 %v4938_v10, %v4936_v24  ;;  %v4964_v62 = vmul.f32 %v8391_v59, %v8239_v41 }
 0x730   : > { %5030 = vmatpush1.bf16.msra.mxu0 %v4997_v48  ;;  %v4966_v55 = vmul.f32 %v8391_v59, %v8242_v32  ;;  %v4968_v22 = vmul.f32 %v8391_v59, %v8248_v29  ;;  %v5012_v25 = vpack.c.bf16 %v4958_v42, %v8423_v14  ;;  %v4970_v61 = vmul.f32 %v8391_v59, %v8254_v58  ;;  %v9016_v42 = vld [vmem:[#allocation13_spill] sm:$0xff] }
 0x731   : > { %5031 = vmatprep.subr.bf16.mxu0 %v5000_v37  ;;  %v5014_v28 = vpack.c.bf16 %v4962_v56, %v4960_v26  ;;  %v4972_v20 = vmul.f32 %v8391_v59, %v8263_v39  ;;  %v4974_v16 = vmul.f32 %v8391_v59, %v8266_v46  ;;  %v4976_v41 = vmul.f32 %v8391_v59, %v8272_v44  ;;  %v9017_v56 = vld [vmem:[#allocation29_spill] sm:$0xff] }
 0x732   : > { %v5016_v37 = vpack.c.bf16 %v4966_v55, %v4964_v62  ;;  %v4978_v32 = vmul.f32 %v8391_v59, %v8278_v34  ;;  %v5018_v29 = vpack.c.bf16 %v4970_v61, %v4968_v22  ;;  %v4980_v40 = vmul.f32 %v8391_v59, %v8281_v31  ;;  %v9018_v62 = vld [vmem:[#allocation19_spill] sm:$0xff] }
 0x733   : > { %v4982_v58 = vmul.f32 %v8391_v59, %v8284_v54  ;;  %v8456_v39 = vmul.f32 %v8391_v59, %v8287_v43  ;;  %v5020_v46 = vpack.c.bf16 %v4974_v16, %v4972_v20  ;;  %v4986_v44 = vmul.f32 %v8391_v59, %v8289_v52 }
 0x734   : > { %5032 = vmatpush1.bf16.msra.mxu0 %v4999_v63  ;;  %v5022_v50 = vpack.c.bf16 %v4978_v32, %v4976_v41  ;;  %v8462_v34 = vmul.f32 %v8391_v59, %v8295_v19  ;;  %v5001_v30 = vpack.c.bf16 %v4937_v23, %v4935_v15  ;;  %v4941_v31 = vmul.f32 %v8292_v57, %v7983_v4  ;;  %v9012_v15 = vld [vmem:[#allocation21_spill] sm:$0xff]  ;;  %v9013_v63 = vld [vmem:[#allocation35_spill] sm:$0xff]  ;;  %v2221_v41 = vpop.permute.xlu1 %2220 }
 0x735   : > { %5033 = vmatprep.subr.bf16.mxu0 %v5002_v53  ;;  %v5024_v13 = vpack.c.bf16 %v4982_v58, %v4980_v40  ;;  %v8468_v54 = vmul.f32 %v8391_v59, %v8306_v11  ;;  %v5004_v43 = vpack.c.bf16 %v4942_v8, %v4940_v51  ;;  %v4944_v24 = vmul.f32 %v8391_v59, %v8159_v45  ;;  %v9015_v8 = vld [vmem:[#allocation24_spill] sm:$0xff] }
 0x736   : > { %v4946_v52 = vmul.f32 %v8391_v59, %v8168_v17  ;;  %v5026_v10 = vpack.c.bf16 %v4986_v44, %v8456_v39  ;;  %v5003_v4 = vpack.c.bf16 %v4941_v31, %v4939_v49  ;;  %v4943_v48 = vmul.f32 %v8292_v57, %v7989_v2  ;;  %v9014_v49 = vld [vmem:[#allocation26_spill] sm:$0xff] }
 0x737   : > { %v5028_v19 = vpack.c.bf16 %v8468_v54, %v8462_v34  ;;  %v4945_v11 = vmul.f32 %v8292_v57, %v7998_v18  ;;  %v4948_v45 = vmul.f32 %v8391_v59, %v8177_v21  ;;  %v4950_v17 = vmul.f32 %v8391_v59, %v9012_v15  ;;  %v9032_v34 = vld [vmem:[#allocation8_spill] sm:$0xff] }
 0x738   : > { %5034 = vmatpush1.bf16.msra.mxu0 %v5001_v30  ;;  %v5006_v5 = vpack.c.bf16 %v4946_v52, %v4944_v24  ;;  %v4947_v51 = vmul.f32 %v8292_v57, %v9013_v63  ;;  %v4949_v14 = vmul.f32 %v8292_v57, %v9014_v49  ;;  %v4952_v18 = vmul.f32 %v8391_v59, %v9015_v8  ;;  %v9035_v15 = vld [vmem:[#allocation36_spill] sm:$0xff] }
 0x739   : > { %5035 = vmatprep.subr.bf16.mxu0 %v5004_v43  ;;  %v5005_v23 = vpack.c.bf16 %v4945_v11, %v4943_v48  ;;  %v5008_v2 = vpack.c.bf16 %v4950_v17, %v4948_v45  ;;  %v4954_v26 = vmul.f32 %v8391_v59, %v9016_v42  ;;  %v4951_v53 = vmul.f32 %v8292_v57, %v9017_v56  ;;  %v9034_v45 = vld [vmem:[#allocation37_spill] sm:$0xff] }
 0x73a   : > { %v5007_v21 = vpack.c.bf16 %v4949_v14, %v4947_v51  ;;  %v4953_v55 = vmul.f32 %v8292_v57, %v9018_v62  ;;  %v9019_v20 = vpack.c.bf16 %v8304_v3, %v8300_v35  ;;  %v9020_v59 = vpack.c.bf16 %v8314_v1, %v8310_v60  ;;  %v2219_v57 = vpop.permute.xlu0 %2218  ;;  %v2233_v60 = vpop.permute.xlu1 %2232  ;;  %v9024_v1 = vld [vmem:[#allocation9_spill] sm:$0xff]  ;;  %v8568_v51 = vld [vmem:[%s8673_s4 + $0x48] sm:$0xf] }
 0x73b   : > { %v5010_v22 = vpack.c.bf16 %v4954_v26, %v4952_v18  ;;  %v9021_v16 = vpack.c.bf16 %v8325_v6, %v8321_v9  ;;  %v9023_v3 = vpack.c.bf16 %v8345_v12, %v8339_v47  ;;  %v2223_v32 = vsel %vm347_vm8, %v2221_v41, %v2219_v57  ;;  %v9028_v47 = vld [vmem:[#allocation11_spill] sm:$0xff]  ;;  %v9029_v12 = vld [vmem:[#allocation10_spill] sm:$0xff]  ;;  %v8574_v14 = vld [vmem:[%s8673_s4 + $0x20] sm:$0xff] }
 0x73c   : > { %5036 = vmatpush1.bf16.msra.mxu0 %v5003_v4  ;;  %v5009_v61 = vpack.c.bf16 %v4953_v55, %v4951_v53  ;;  %v9030_v40 = vpack.c.bf16 %v9028_v47, %v9029_v12  ;;  %v2257_v58 = vrot.slane %v2223_v32, 4  ;;  %v2222_v44 = vsel %vm347_vm8, %v2219_v57, %v2221_v41  ;;  %v5915_v26 = vld [vmem:[%s8673_s4 + $0x40] sm:$0xf] }
 0x73d   : > { %5037 = vmatprep.subr.bf16.mxu0 %v5006_v5  ;;  %v9033_v52 = vpack.c.bf16 %v8385_v38, %v8381_v0  ;;  %v9036_v17 = vpack.c.bf16 %v9034_v45, %v9035_v15  ;;  %v9037_v0 = vld [vmem:[#allocation7_spill] sm:$0xff] }
 0x73e   : > { %v2231_v35 = vpop.permute.xlu0 %2230  ;;  %v2271_v30 = vsel %vm395_vm0, %v9032_v34, %v2257_v58 }
 0x73f   : > { %v2234_v31 = vsel %vm361_vm9, %v2231_v35, %v2233_v60 }
 0x740   : > { %5038 = vmatpush1.bf16.msra.mxu0 %v5005_v23  ;;  %v2262_v43 = vrot.slane %v2234_v31, 4  ;;  %v8562_v23 = vld [vmem:[%s8673_s4 + $0x30] sm:$0xff] }
 0x741   : > { %5039 = vmatprep.subr.bf16.mxu0 %v5008_v2 }
 0x742   : > { %v2225_v9 = vpop.permute.xlu0 %2224 }
 0x744   : > { %5040 = vmatpush1.bf16.msra.mxu0 %v5007_v21 }
 0x745   : > { %5041 = vmatprep.subr.bf16.mxu0 %v5010_v22 }
 0x746   : > { %v2237_v24 = vpop.permute.xlu0 %2236 }
 0x748   : > { %5042 = vmatpush1.bf16.msra.mxu0 %v5009_v61 }
 0x749   : > { %5043 = vmatprep.subr.bf16.mxu0 %v5012_v25  ;;  %v9022_v25 = vpack.c.bf16 %v8335_v27, %v8331_v33  ;;  %v2235_v33 = vsel %vm361_vm9, %v2233_v60, %v2231_v35  ;;  %v2227_v27 = vpop.permute.xlu1 %2226 }
 0x74a   : > { %v2263_v39 = vrot.slane %v2235_v33, 4 }
 0x74c   : > { %5044 = vmatpush1.bf16.msra.mxu0 %v9019_v20 }
 0x74d   : > { %5045 = vmatprep.subr.bf16.mxu0 %v5014_v28  ;;  %v9025_v28 = vld [vmem:[#allocation23_spill] sm:$0xff]  ;;  %v2239_v4 = vpop.permute.xlu1 %2238 }
 0x74e   : > { %v2241_v5 = vsel %vm368_vm11, %v2239_v4, %v2237_v24  ;;  %v2240_v18 = vsel %vm368_vm11, %v2237_v24, %v2239_v4 }
 0x74f   : > { %v2283_v49 = vmul.f32 %v8568_v51, %v2241_v5  ;;  %v2282_v21 = vmul.f32 %v5915_v26, %v2240_v18 }
 0x750   : > { %5046 = vmatpush1.bf16.msra.mxu0 %v9020_v59 }
 0x751   : > { %5047 = vmatprep.subr.bf16.mxu0 %v5016_v37  ;;  %v9026_v37 = vpack.c.bf16 %v9024_v1, %v9025_v28  ;;  %v4996_v42 = vpack.c.bf16 %v2283_v49, %v2283_v49  ;;  %v4995_v56 = vpack.c.bf16 %v2282_v21, %v2282_v21 }
 0x754   : > { %5048 = vmatpush1.bf16.msra.mxu0 %v9021_v16 }
 0x755   : > { %5049 = vmatprep.subr.bf16.mxu0 %v5018_v29  ;;  %v2229_v29 = vsel %vm354_vm10, %v2227_v27, %v2225_v9 }
 0x758   : > { %5050 = vmatpush1.bf16.msra.mxu0 %v9022_v25 }
 0x759   : > { %5051 = vmatprep.subr.bf16.mxu0 %v5020_v46  ;;  %v2273_v46 = vsel %vm395_vm0, %v2229_v29, %v2263_v39 }
 0x75c   : > { %5052 = vmatpush1.bf16.msra.mxu0 %v9023_v3 }
 0x75d   : > { %5053 = vmatprep.subr.bf16.mxu0 %v5022_v50  ;;  %v9031_v50 = vpack.c.bf16 %v8373_v36, %v8369_v7  ;;  %v2228_v7 = vsel %vm354_vm10, %v2225_v9, %v2227_v27  ;;  %v2256_v36 = vrot.slane %v2222_v44, 4 }
 0x75e   : > { %v2272_v48 = vsel %vm395_vm0, %v2228_v7, %v2262_v43  ;;  %v5146_v43 = vrot.slane %v8574_v14, 4 }
 0x75f   : > { %v2270_v38 = vsel %vm395_vm0, %v9037_v0, %v2256_v36  ;;  %v2280_v63 = vmul.f32 %v8562_v23, %v2272_v48 }
 0x760   : > { %5054 = vmatpush1.bf16.msra.mxu0 %v9026_v37  ;;  %v2278_v2 = vmul.f32 %v8574_v14, %v2270_v38 }
 0x761   : > { %5055 = vmatprep.subr.bf16.mxu0 %v5024_v13  ;;  %v8537_v13 = vld [vmem:[%s8673_s4 + $0x38] sm:$0xff] }
 0x762   : > { %v2281_v54 = vmul.f32 %v8537_v13, %v2273_v46  ;;  %v4993_v8 = vpack.c.bf16 %v2280_v63, %v2278_v2  ;;  %v5115_v58 = vrot.slane %v8537_v13, 4 }
 0x764   : > { %5056 = vmatpush1.bf16.msra.mxu0 %v9030_v40  ;;  %v5114_v40 = vrot.slane %v8562_v23, 4 }
 0x765   : > { %5057 = vmatprep.subr.bf16.mxu0 %v5026_v10  ;;  %v8548_v10 = vld [vmem:[%s8673_s4 + $0x28] sm:$0xff] }
 0x766   : > { %v5147_v24 = vrot.slane %v8548_v10, 4 }
 0x768   : > { %5058 = vmatpush1.bf16.msra.mxu0 %v9031_v50 }
 0x769   : > { %5059 = vmatprep.subr.bf16.mxu0 %v5028_v19  ;;  %v2279_v19 = vmul.f32 %v8548_v10, %v2271_v30 }
 0x76b   : > { %v4994_v11 = vpack.c.bf16 %v2281_v54, %v2279_v19 }
 0x76c   : > { %5060 = vmatpush1.bf16.msra.mxu0 %v9033_v52 }
 0x76f   : > { %5062 = vmatmul.mubr.bf16.vlgmr.msra.gmra.mrb[68].mxu0 %v9036_v17 }
 0x770   : > { %5071 = vmatprep.mubr.bf16.mxu0 %v4994_v11 }
 0x777   : > { %5072 = vmatmul.mubr.bf16.gmra.mrb[72].mxu0 %v4993_v8 }
 0x778   : > { %5081 = vmatprep.mubr.bf16.mxu0 %v4996_v42 }
 0x77f   : > { %5082 = vmatmul.mubr.bf16.gmra.mrb[76].mxu0 %v4995_v56 }
 0x842   : > { %v5063_v53 = vpop.f32.mrb[68].mxu0 }
 0x843   : > { %5090 = vrot.lane.b32.xlu0 %v5063_v53, %s5957_s20  ;;  %v5065_v62 = vpop.f32.mrb[69].mxu0  ;;  %v5102_v22 = vrot.slane %v5063_v53, 4 }
 0x844   : > { %5092 = vrot.lane.b32.xlu1 %v5065_v62, %s5957_s20  ;;  %v5067_v55 = vpop.f32.mrb[70].mxu0  ;;  %v5103_v20 = vrot.slane %v5065_v62, 4 }
 0x845   : > { %v5069_v61 = vpop.f32.mrb[71].mxu0  ;;  %v5134_v41 = vrot.slane %v5067_v55, 4 }
 0x846   : > { %v5135_v35 = vrot.slane %v5069_v61, 4 }
 0x847   : > { %5106 = vrot.lane.b32.xlu0 %v5102_v22, %s5954_s18 }
 0x848   : > { %5108 = vrot.lane.b32.xlu1 %v5103_v20, %s5954_s18 }
 0x84a   : > { %v8586_v59 = vpop.f32.mrb[72].mxu0 }
 0x84b   : > { %5122 = vrot.lane.b32.xlu0 %v5067_v55, %s5955_s19  ;;  %v8589_v16 = vpop.f32.mrb[73].mxu0  ;;  %v5160_v3 = vrot.slane %v8586_v59, 4  ;;  %v5154_v55 = vmul.f32 %v8574_v14, %v8586_v59 }
 0x84c   : > { %5124 = vrot.lane.b32.xlu1 %v5069_v61, %s5955_s19  ;;  %v5077_v57 = vpop.f32.mrb[74].mxu0  ;;  %v5161_v60 = vrot.slane %v8589_v16, 4  ;;  %v5155_v22 = vmul.f32 %v8548_v10, %v8589_v16 }
 0x84d   : > { %v5079_v25 = vpop.f32.mrb[75].mxu0  ;;  %v5192_v32 = vrot.slane %v5077_v57, 4 }
 0x84e   : > { %v5193_v33 = vrot.slane %v5079_v25, 4 }
 0x84f   : > { %5138 = vrot.lane.b32.xlu0 %v5134_v41, %s5953_s17  ;;  %v5918_v41 = vld [vmem:[%s8673_s4] sm:$0xff] }
 0x850   : > { %5140 = vrot.lane.b32.xlu1 %v5135_v35, %s5953_s17  ;;  %v5919_v35 = vld [vmem:[%s8673_s4 + $0x8] sm:$0xff] }
 0x851   : > { %v5205_v14 = vrot.slane %v5919_v35, 4 }
 0x852   : > { %v5083_v1 = vpop.f32.mrb[76].mxu0 }
 0x853   : > { %5164 = vrot.lane.b32.xlu0 %v5160_v3, %s5949_s13  ;;  %v5085_v28 = vpop.f32.mrb[77].mxu0 }
 0x854   : > { %5166 = vrot.lane.b32.xlu1 %v5161_v60, %s5949_s13  ;;  %v5087_v37 = vpop.f32.mrb[78].mxu0 }
 0x855   : > { %v5088_v9 = vpop.f32.mrb[79].mxu0 }
 0x857   : > { %5180 = vrot.lane.b32.xlu0 %v5077_v57, %s5952_s16 }
 0x858   : > { %5182 = vrot.lane.b32.xlu1 %v5079_v25, %s5952_s16  ;;  %v5204_v25 = vrot.slane %v5918_v41, 4 }
 0x85b   : > { %5196 = vrot.lane.b32.xlu0 %v5192_v32, %s5950_s14 }
 0x85c   : > { %5198 = vrot.lane.b32.xlu1 %v5193_v33, %s5950_s14 }
 0x85f   : > { %5212 = vrot.lane.b32.xlu0 %v5083_v1, %s5951_s15 }
 0x860   : > { %5214 = vrot.lane.b32.xlu1 %v5085_v28, %s5951_s15 }
 0x8b5   : > { %v5091_v27 = vpop.permute.xlu0 %5090 }
 0x8b6   : > { %v5093_v29 = vpop.permute.xlu1 %5092 }
 0x8b7   : > { %v5094_v34 = vsel %vm368_vm11, %v5091_v27, %v5093_v29  ;;  %v5095_v30 = vsel %vm368_vm11, %v5093_v29, %v5091_v27 }
 0x8b8   : > { %v5096_v19 = vmul.f32 %v5915_v26, %v5094_v34  ;;  %v5097_v4 = vmul.f32 %v8568_v51, %v5095_v30  ;;  %v5917_v26 = vld [vmem:[%s8673_s4 + $0x18] sm:$0xff] }
 0x8b9   : > { %v5107_v47 = vpop.permute.xlu0 %5106  ;;  %v5173_v21 = vrot.slane %v5917_v26, 4 }
 0x8ba   : > { %v5109_v12 = vpop.permute.xlu1 %5108 }
 0x8bb   : > { %v5110_v39 = vsel %vm361_vm9, %v5107_v47, %v5109_v12  ;;  %v5111_v46 = vsel %vm361_vm9, %v5109_v12, %v5107_v47 }
 0x8bc   : > { %v5118_v7 = vmul.f32 %v5114_v40, %v5110_v39  ;;  %v5119_v36 = vmul.f32 %v5115_v58, %v5111_v46 }
 0x8bd   : > { %v5123_v50 = vpop.permute.xlu0 %5122 }
 0x8be   : > { %v5125_v44 = vpop.permute.xlu1 %5124  ;;  %v5120_v17 = vadd.f32 %v5118_v7, %v5096_v19  ;;  %v5121_v0 = vadd.f32 %v5119_v36, %v5097_v4  ;;  %v5920_v36 = vld [vmem:[%s6028_s12] sm:$0xff] }
 0x8bf   : > { %v5126_v31 = vsel %vm354_vm10, %v5123_v50, %v5125_v44  ;;  %v5127_v54 = vsel %vm354_vm10, %v5125_v44, %v5123_v50 }
 0x8c0   : > { %v5128_v48 = vmul.f32 %v8562_v23, %v5126_v31  ;;  %v5129_v11 = vmul.f32 %v8537_v13, %v5127_v54  ;;  %v5916_v13 = vld [vmem:[%s8673_s4 + $0x10] sm:$0xff] }
 0x8c1   : > { %v5139_v52 = vpop.permute.xlu0 %5138  ;;  %v5172_v23 = vrot.slane %v5916_v13, 4 }
 0x8c2   : > { %v5141_v5 = vpop.permute.xlu1 %5140  ;;  %v5130_v2 = vadd.f32 %v5128_v48, %v5120_v17  ;;  %v5131_v8 = vadd.f32 %v5129_v11, %v5121_v0 }
 0x8c3   : > { %v5142_v45 = vsel %vm347_vm8, %v5139_v52, %v5141_v5  ;;  %v5143_v15 = vsel %vm347_vm8, %v5141_v5, %v5139_v52 }
 0x8c4   : > { %v5150_v38 = vmul.f32 %v5146_v43, %v5142_v45  ;;  %v5151_v63 = vmul.f32 %v5147_v24, %v5143_v15  ;;  %v9038_v24 = vld [vmem:[#allocation5_spill] sm:$0xff] }
 0x8c5   : > { %v5165_v49 = vpop.permute.xlu0 %5164 }
 0x8c6   : > { %v5167_v18 = vpop.permute.xlu1 %5166  ;;  %v5152_v51 = vadd.f32 %v5150_v38, %v5130_v2  ;;  %v5153_v42 = vadd.f32 %v5151_v63, %v5131_v8 }
 0x8c7   : > { %v5168_v56 = vsel %vm340_vm3, %v5165_v49, %v5167_v18  ;;  %v5169_v53 = vsel %vm340_vm3, %v5167_v18, %v5165_v49 }
 0x8c8   : > { %v5156_v59 = vadd.f32 %v5154_v55, %v5152_v51  ;;  %v5157_v3 = vadd.f32 %v5155_v22, %v5153_v42  ;;  %v5176_v10 = vmul.f32 %v5172_v23, %v5169_v53  ;;  %v5177_v16 = vmul.f32 %v5173_v21, %v5168_v56 }
 0x8c9   : > { %v5181_v62 = vpop.permute.xlu0 %5180 }
 0x8ca   : > { %v5183_v61 = vpop.permute.xlu1 %5182  ;;  %v5178_v33 = vadd.f32 %v5176_v10, %v5156_v59  ;;  %v5179_v27 = vadd.f32 %v5177_v16, %v5157_v3 }
 0x8cb   : > { %v5184_v20 = vsel %vm333_vm7, %v5181_v62, %v5183_v61  ;;  %v5185_v57 = vsel %vm333_vm7, %v5183_v61, %v5181_v62 }
 0x8cc   : > { %v5186_v1 = vmul.f32 %v5916_v13, %v5185_v57  ;;  %v5187_v28 = vmul.f32 %v5917_v26, %v5184_v20 }
 0x8cd   : > { %v5197_v60 = vpop.permute.xlu0 %5196 }
 0x8ce   : > { %v5199_v37 = vpop.permute.xlu1 %5198  ;;  %v5188_v40 = vadd.f32 %v5186_v1, %v5178_v33  ;;  %v5189_v58 = vadd.f32 %v5187_v28, %v5179_v27 }
 0x8cf   : > { %v5200_v9 = vsel %vm326_vm4, %v5197_v60, %v5199_v37  ;;  %v5201_v32 = vsel %vm326_vm4, %v5199_v37, %v5197_v60 }
 0x8d0   : > { %v5208_v29 = vmul.f32 %v5204_v25, %v5201_v32  ;;  %v5209_v47 = vmul.f32 %v5205_v14, %v5200_v9 }
 0x8d1   : > { %v5213_v12 = vpop.permute.xlu0 %5212 }
 0x8d2   : > { %v5215_v39 = vpop.permute.xlu1 %5214  ;;  %v5210_v44 = vadd.f32 %v5208_v29, %v5188_v40  ;;  %v5211_v34 = vadd.f32 %v5209_v47, %v5189_v58 }
 0x8d3   : > { %v5216_v46 = vsel %vm319_vm5, %v5213_v12, %v5215_v39  ;;  %v5217_v50 = vsel %vm319_vm5, %v5215_v39, %v5213_v12 }
 0x8d4   : > { %v5218_v30 = vmul.f32 %v5918_v41, %v5217_v50  ;;  %v5219_v31 = vmul.f32 %v5919_v35, %v5216_v46 }
 0x8d6   : > { %v5220_v54 = vadd.f32 %v5218_v30, %v5210_v44  ;;  %v5221_v7 = vadd.f32 %v5219_v31, %v5211_v34 }
 0x8d8   : > { %v5222_v43 = vadd.f32 %v5920_v36, %v5220_v54  ;;  %v5223_v52 = vadd.f32 %v5221_v7, %v9038_v24 }
 0x8da   : > { %v5226_v19 = vcombine.low %v5222_v43, %v5223_v52 }
 0x8dc   : > { %v5228_v4 = vadd.f32 %v5920_v36, %v5226_v19 }
 0x8de   : > { %5229 = vst [vmem:[%s292_s10] sm:$0xff] %v5228_v4 }
 0x8df PF: > { %s18_s24 = sadd.s32 1, %s5946_s24  }
 0x8e0   : > { %p15_p1 = scmp.ge.s32.totalorder %s18_s24, 4  }
 0x8e2   :  { %17 = sbr.rel (!%p15_p1) target bundleno = 1 (0x1), region = 83 }
 0x8e9   :  { %5251 = vsyncpa [#allocation3], 1 }
 0x8ea   :  { %5253 = vsyncpa [#allocation3 + $0x1], 1 }

</bundles_post_ra>
